<compile_context>
chip_gen: v5e
topology: v5e:2x2
jax: 0.10.0
libtpu: 0.0.40
codegen_flags: <defaults>
</compile_context>

<pallas_src>
import functools

import jax
import jax.numpy as jnp
from jax.experimental import pallas as pl
from jax.experimental.pallas import tpu as pltpu

FEATURE_DIM = 768 * 2     # 1536
H1 = 512
H2 = 256
H3 = 64
N_MOVES = 1968
N_MOVES_PAD = 2048        # pad to multiple of 128 -> full MXU tiles, unmasked stores
TGT_PAD = 128             # attack-target width padded 64 -> 128 (lane dense)
SCORE_PAD = 128           # 1-wide heads padded to 128 lanes
BN_EPS = 1e-5


# ----------------------------------------------------------------------------
# Pure forward math (shared between the Pallas kernels and the JAX reference)
# ----------------------------------------------------------------------------
def _mm(h, w):
    # bf16 matmul operands, f32 accumulation; elementwise math stays f32
    # (v5e has no bf16 VPU/EUP).
    return jnp.dot(h.astype(jnp.bfloat16), w, preferred_element_type=jnp.float32)


def _forward_default(x, w_ft, t_ft, w_b, t_b, w_td2, t_td2,
                     w_pe2, t_pe2, w_pe3, t_pe3):
    base = jnp.maximum(_mm(x, w_ft) + t_ft, 0.0)
    z = _mm(base, w_b) + t_b                       # fused [td1 | pe1]
    h_td = jnp.maximum(z[:, 0:H2], 0.0)
    h_pe = jnp.maximum(z[:, H2:2 * H2], 0.0)
    tgt = jax.nn.sigmoid(_mm(h_td, w_td2) + t_td2)                  # (TB, 128)
    h = jnp.maximum(_mm(h_pe, w_pe2) + t_pe2, 0.0)
    pos = 100.0 * jnp.tanh((_mm(h, w_pe3) + t_pe3) * 0.01)          # (TB, 128)
    return tgt, pos


def _attack_heads(z_ce, z_me, targets, w_t, w_ce2, t_ce2, w_me2, t_me2, pos):
    zt = _mm(targets, w_t)                         # fused [ce1b | me1b]
    h_ce = jnp.maximum(z_ce + zt[:, 0:H2], 0.0)
    h_me = jnp.maximum(z_me + zt[:, H2:2 * H2], 0.0)
    coord = jax.nn.sigmoid(_mm(h_ce, w_ce2) + t_ce2)                # (TB, 128)
    moves = _mm(h_me, w_me2) + t_me2                                # (TB, 2048)
    blend = pos * (1.0 - coord) + 150.0 * coord                     # (TB, 128)
    return blend, coord, moves


def _forward_planning(x, w_ft, t_ft, w_b, t_b, w_td2, t_td2, w_t,
                      w_pe2, t_pe2, w_pe3, t_pe3, w_ce2, t_ce2, w_me2, t_me2):
    base = jnp.maximum(_mm(x, w_ft) + t_ft, 0.0)
    z = _mm(base, w_b) + t_b                       # fused [td1 | pe1 | ce1 | me1]
    h_td = jnp.maximum(z[:, 0:H2], 0.0)
    targets = jax.nn.sigmoid(_mm(h_td, w_td2) + t_td2)
    h_pe = jnp.maximum(z[:, H2:2 * H2], 0.0)
    h = jnp.maximum(_mm(h_pe, w_pe2) + t_pe2, 0.0)
    pos = 100.0 * jnp.tanh((_mm(h, w_pe3) + t_pe3) * 0.01)
    blend, coord, moves = _attack_heads(z[:, 2 * H2:3 * H2], z[:, 3 * H2:4 * H2],
                                        targets, w_t, w_ce2, t_ce2, w_me2, t_me2, pos)
    return targets, blend, coord, moves


def _forward_prev(x, prev, w_ft, t_ft, w_b, t_b, w_t,
                  w_pe2, t_pe2, w_pe3, t_pe3, w_ce2, t_ce2, w_me2, t_me2):
    base = jnp.maximum(_mm(x, w_ft) + t_ft, 0.0)
    z = _mm(base, w_b) + t_b                       # fused [pe1 | ce1 | me1]
    h_pe = jnp.maximum(z[:, 0:H2], 0.0)
    h = jnp.maximum(_mm(h_pe, w_pe2) + t_pe2, 0.0)
    pos = 100.0 * jnp.tanh((_mm(h, w_pe3) + t_pe3) * 0.01)
    blend, coord, moves = _attack_heads(z[:, H2:2 * H2], z[:, 2 * H2:3 * H2],
                                        prev, w_t, w_ce2, t_ce2, w_me2, t_me2, pos)
    return blend, coord, moves


# ----------------------------------------------------------------------------
# Pallas kernels (one statically-specialized variant per forward mode)
# ----------------------------------------------------------------------------
def _kernel_default(x_ref, *rest):
    *w, tgt_ref, pos_ref = rest
    tgt, pos = _forward_default(x_ref[...], *(r[...] for r in w))
    tgt_ref[...] = tgt
    pos_ref[...] = pos


def _kernel_planning(x_ref, *rest):
    *w, tgt_ref, score_ref, move_ref = rest
    tgt, blend, coord, moves = _forward_planning(x_ref[...], *(r[...] for r in w))
    tgt_ref[...] = tgt
    score_ref[:, 0:SCORE_PAD] = blend
    score_ref[:, SCORE_PAD:2 * SCORE_PAD] = coord
    move_ref[...] = moves


def _kernel_prev(x_ref, prev_ref, *rest):
    *w, score_ref, move_ref = rest
    blend, coord, moves = _forward_prev(x_ref[...], prev_ref[...],
                                        *(r[...] for r in w))
    score_ref[:, 0:SCORE_PAD] = blend
    score_ref[:, SCORE_PAD:2 * SCORE_PAD] = coord
    move_ref[...] = moves


_KERNELS = {"default": _kernel_default, "planning": _kernel_planning,
            "prev": _kernel_prev}
_N_ACT = {"default": 1, "planning": 1, "prev": 2}


def _out_shapes(variant, b):
    if variant == "default":
        return (jax.ShapeDtypeStruct((b, TGT_PAD), jnp.float32),       # targets
                jax.ShapeDtypeStruct((b, SCORE_PAD), jnp.float32))     # position
    if variant == "planning":
        return (jax.ShapeDtypeStruct((b, TGT_PAD), jnp.float32),       # targets
                jax.ShapeDtypeStruct((b, 2 * SCORE_PAD), jnp.float32), # [blend|coord]
                jax.ShapeDtypeStruct((b, N_MOVES_PAD), jnp.float32))   # moves
    return (jax.ShapeDtypeStruct((b, 2 * SCORE_PAD), jnp.float32),
            jax.ShapeDtypeStruct((b, N_MOVES_PAD), jnp.float32))


@functools.partial(jax.jit, static_argnums=(0, 1))
def _nnue_call(variant, tb, *args):
    n_act = _N_ACT[variant]
    b = args[0].shape[0]
    grid = (b // tb,)

    # Activations / outputs blocked on the batch axis; weights are full-array
    # blocks with a constant index_map so they stay VMEM-resident across tiles.
    act_specs = [pl.BlockSpec((tb, a.shape[1]), lambda i: (i, 0))
                 for a in args[:n_act]]
    w_specs = [pl.BlockSpec(a.shape, lambda i: (0, 0)) for a in args[n_act:]]
    out_shape = _out_shapes(variant, b)
    out_specs = tuple(pl.BlockSpec((tb, s.shape[1]), lambda i: (i, 0))
                      for s in out_shape)

    return pl.pallas_call(
        _KERNELS[variant],
        out_shape=out_shape,
        grid=grid,
        in_specs=act_specs + w_specs,
        out_specs=out_specs,
        compiler_params=pltpu.CompilerParams(
            dimension_semantics=("parallel",),        # megacore batch sharding (v7x)
            vmem_limit_bytes=32 * 1024 * 1024),       # fits v7x 64 MiB physical VMEM
    )(*args)


# ----------------------------------------------------------------------------
# Parameter initialization (raw, PyTorch-layout) and packing (bf16 / fused)
# ----------------------------------------------------------------------------
_LAYER_DEFS = [
    # name, in_features, out_features, has_bn
    ("ft",  FEATURE_DIM, H1, True),
    ("td1", H1,          H2, True),
    ("td2", H2,          64, False),
    ("pe1", H1,          H2, True),
    ("pe2", H2,          H3, False),
    ("pe3", H3,          1,  False),
    ("ce1", H1 + 64,     H2, True),
    ("ce2", H2,          1,  False),
    ("me1", H1 + 64,     H2, True),
    ("me2", H2,      N_MOVES, False),
]


def init_params(key):
    """Deterministic Kaiming-style init with non-trivial BN running stats."""
    params = {}
    for name, in_f, out_f, has_bn in _LAYER_DEFS:
        key, kw, kb, kg, kbe, km, kv = jax.random.split(key, 7)
        std = (2.0 / out_f) ** 0.5                       # fan_out, relu gain
        w = jax.random.normal(kw, (out_f, in_f), jnp.float32) * std
        b = 0.01 * jax.random.normal(kb, (out_f,), jnp.float32)
        bn = None
        if has_bn:
            gamma = 1.0 + 0.1 * jax.random.normal(kg, (out_f,), jnp.float32)
            beta = 0.1 * jax.random.normal(kbe, (out_f,), jnp.float32)
            mean = 0.1 * jax.random.normal(km, (out_f,), jnp.float32)
            var = 0.5 + jax.random.uniform(kv, (out_f,), jnp.float32)
            bn = (gamma, beta, mean, var)
        params[name] = {"w": w, "b": b, "bn": bn}
    return params


def pack_params(raw):
    """Fold BN into weights, transpose to [in,out], pad, fuse, cast to bf16."""
    def fold(name):
        p = raw[name]
        w, b, bn = p["w"], p["b"], p["bn"]
        if bn is None:
            scale = jnp.ones_like(b)
            shift = b
        else:
            gamma, beta, mean, var = bn
            scale = gamma * jax.lax.rsqrt(var + BN_EPS)
            shift = (b - mean) * scale + beta
        wt = (w * scale[:, None]).T                      # scale folded into W
        return wt.astype(jnp.float32), shift[None, :].astype(jnp.float32)

    def pad_cols(w, shift, out_pad):
        extra = out_pad - w.shape[1]
        if extra > 0:
            w = jnp.pad(w, ((0, 0), (0, extra)))
            shift = jnp.pad(shift, ((0, 0), (0, extra)))
        return w, shift

    w_ft, t_ft = fold("ft")
    w_td1, t_td1 = fold("td1")
    w_td2, t_td2 = pad_cols(*fold("td2"), TGT_PAD)
    w_pe1, t_pe1 = fold("pe1")
    w_pe2, t_pe2 = fold("pe2")
    w_pe3, t_pe3 = pad_cols(*fold("pe3"), SCORE_PAD)
    w_ce1, t_ce1 = fold("ce1")
    w_ce2, t_ce2 = pad_cols(*fold("ce2"), SCORE_PAD)
    w_me1, t_me1 = fold("me1")
    w_me2, t_me2 = pad_cols(*fold("me2"), N_MOVES_PAD)

    # Split the 576-row concat weights into base(512) / target(64) parts; the
    # target parts get their input rows padded 64 -> 128 (targets are padded).
    w_ce1a = w_ce1[:H1]
    w_ce1b = jnp.pad(w_ce1[H1:], ((0, TGT_PAD - 64), (0, 0)))
    w_me1a = w_me1[:H1]
    w_me1b = jnp.pad(w_me1[H1:], ((0, TGT_PAD - 64), (0, 0)))

    bf = lambda a: a.astype(jnp.bfloat16)
    w_t = bf(jnp.concatenate([w_ce1b, w_me1b], axis=1))   # [128, 512]

    packed = {
        # default path: base consumers = [td1 | pe1]
        "default": [
            bf(w_ft), t_ft,
            bf(jnp.concatenate([w_td1, w_pe1], axis=1)),
            jnp.concatenate([t_td1, t_pe1], axis=1),
            bf(w_td2), t_td2,
            bf(w_pe2), t_pe2, bf(w_pe3), t_pe3,
        ],
        # planning path: base consumers = [td1 | pe1 | ce1a | me1a]
        "planning": [
            bf(w_ft), t_ft,
            bf(jnp.concatenate([w_td1, w_pe1, w_ce1a, w_me1a], axis=1)),
            jnp.concatenate([t_td1, t_pe1, t_ce1, t_me1], axis=1),
            bf(w_td2), t_td2, w_t,
            bf(w_pe2), t_pe2, bf(w_pe3), t_pe3,
            bf(w_ce2), t_ce2, bf(w_me2), t_me2,
        ],
        # prev_target path: target detector skipped; base = [pe1 | ce1a | me1a]
        "prev": [
            bf(w_ft), t_ft,
            bf(jnp.concatenate([w_pe1, w_ce1a, w_me1a], axis=1)),
            jnp.concatenate([t_pe1, t_ce1, t_me1], axis=1),
            w_t,
            bf(w_pe2), t_pe2, bf(w_pe3), t_pe3,
            bf(w_ce2), t_ce2, bf(w_me2), t_me2,
        ],
    }
    return packed


# ----------------------------------------------------------------------------
# Wrapper mirroring AttackCoordinationNNUE.forward
# ----------------------------------------------------------------------------
def _round_up(n, m):
    return ((n + m - 1) // m) * m


def nnue_forward(packed, x, prev_target=None, planning_mode=False):
    """Matches AttackCoordinationNNUE.forward(x, prev_target, planning_mode)."""
    b = x.shape[0]
    tb = min(256, _round_up(b, 8))          # large tiles when batch allows
    b_pad = _round_up(b, tb)

    # NNUE features are 0/1 one-hots -> bf16 is exact; halves activation HBM
    # traffic.  Cast once here (outside the kernel) so each batch tile is a
    # bf16 DMA instead of an f32 DMA + in-kernel cast.
    x = x.astype(jnp.bfloat16)
    if b_pad != b:
        x = jnp.pad(x, ((0, b_pad - b), (0, 0)))

    if prev_target is not None:
        prev = jnp.pad(prev_target.astype(jnp.bfloat16),
                       ((0, b_pad - prev_target.shape[0]),
                        (0, TGT_PAD - prev_target.shape[1])))
        scores, moves = _nnue_call("prev", tb, x, prev, *packed["prev"])
        blended = scores[:b, 0:1]
        coord = scores[:b, SCORE_PAD:SCORE_PAD + 1]
        return blended, prev_target, coord, moves[:b, :N_MOVES]

    if planning_mode:
        tgt, scores, moves = _nnue_call("planning", tb, x, *packed["planning"])
        blended = scores[:b, 0:1]
        coord = scores[:b, SCORE_PAD:SCORE_PAD + 1]
        return blended, tgt[:b, :64], coord, moves[:b, :N_MOVES]

    tgt, pos = _nnue_call("default", tb, x, *packed["default"])
    # PyTorch returns fixed-shape zeros(1,1) / zeros(1,1968) in this branch.
    return (pos[:b, 0:1], tgt[:b, :64],
            jnp.zeros((1, 1), jnp.float32), jnp.zeros((1, N_MOVES), jnp.float32))


# ----------------------------------------------------------------------------
# Pure-JAX f32 reference of the original PyTorch math (for sanity checks)
# ----------------------------------------------------------------------------
def _raw_reference_default(raw, x):
    def layer(h, name, relu=False):
        p = raw[name]
        z = h @ p["w"].T + p["b"]
        if p["bn"] is not None:
            gamma, beta, mean, var = p["bn"]
            z = (z - mean) / jnp.sqrt(var + BN_EPS) * gamma + beta
        return jnp.maximum(z, 0.0) if relu else z

    base = layer(x, "ft", relu=True)
    tgt = jax.nn.sigmoid(layer(layer(base, "td1", relu=True), "td2"))
    h = layer(layer(base, "pe1", relu=True), "pe2", relu=True)
    pos = 100.0 * jnp.tanh(layer(h, "pe3") / 100.0)
    return pos, tgt


# ----------------------------------------------------------------------------
if __name__ == "__main__":
    key = jax.random.PRNGKey(0)
    pkey, xkey = jax.random.split(key, 2)

    raw = init_params(pkey)
    packed = pack_params(raw)

    B = 8
    x = jax.random.normal(xkey, (B, FEATURE_DIM), dtype=jnp.float32)

    # 1) default path (planning_mode=False, no prev_target)
    pos, tgt, coord0, moves0 = nnue_forward(packed, x)
    # 2) planning path
    blended, tgt_p, coord_p, moves_p = nnue_forward(packed, x, planning_mode=True)
    # 3) prev_target override path
    prev = jnp.zeros((B, 64), jnp.float32).at[:, 27].set(1.0)
    blended2, tgt_o, coord_o, moves_o = nnue_forward(packed, x, prev_target=prev)

    jax.block_until_ready((pos, tgt, coord0, moves0,
                           blended, tgt_p, coord_p, moves_p,
                           blended2, tgt_o, coord_o, moves_o))

    # --- shape / bound / semantics checks -----------------------------------
    assert pos.shape == (B, 1) and tgt.shape == (B, 64)
    assert coord0.shape == (1, 1) and moves0.shape == (1, N_MOVES)
    assert blended.shape == (B, 1) and coord_p.shape == (B, 1)
    assert moves_p.shape == (B, N_MOVES) and moves_o.shape == (B, N_MOVES)
    assert bool(jnp.all(jnp.abs(pos) <= 100.0))              # 100*tanh(.) bound
    assert bool(jnp.all((tgt_p >= 0.0) & (tgt_p <= 1.0)))    # sigmoid bound
    assert bool(jnp.all((coord_p >= 0.0) & (coord_p <= 1.0)))
    assert bool(jnp.allclose(tgt_o, prev))                   # prev_target override

    # --- kernel vs. same-precision JAX math (catches Pallas-side bugs) -------
    r_tgt, r_bl, r_co, r_mv = _forward_planning(x, *packed["planning"])
    assert float(jnp.max(jnp.abs(tgt_p - r_tgt[:, :64]))) < 5e-2
    assert float(jnp.max(jnp.abs(coord_p - r_co[:, 0:1]))) < 5e-2
    assert float(jnp.max(jnp.abs(moves_p - r_mv[:, :N_MOVES]))) < 2e-1
    assert float(jnp.max(jnp.abs(blended - r_bl[:, 0:1]))) < 1.0

    # --- kernel (bf16 weights) vs. full-f32 original math (loose) ------------
    f_pos, f_tgt = _raw_reference_default(raw, x)
    assert float(jnp.max(jnp.abs(pos - f_pos))) < 5.0
    assert float(jnp.max(jnp.abs(tgt - f_tgt))) < 0.25

    # TODO(synk): chess board encoding / move-selection heuristics
    # (ChessFeatureEncoder, select_best_move, coordination state machine) are
    # host-side Python logic and are intentionally not ported to the kernel.

    print("KERNEL_OK")
</pallas_src>

<mosaic_0001>
module attributes {stable_mosaic.version = 11 : i64} {
  func.func @_kernel_default(%arg0: i32, %arg1: memref<8x1536xbf16, #tpu.memory_space<vmem>>, %arg2: memref<1536x512xbf16, #tpu.memory_space<vmem>>, %arg3: memref<1x512xf32, #tpu.memory_space<vmem>>, %arg4: memref<512x512xbf16, #tpu.memory_space<vmem>>, %arg5: memref<1x512xf32, #tpu.memory_space<vmem>>, %arg6: memref<256x128xbf16, #tpu.memory_space<vmem>>, %arg7: memref<1x128xf32, #tpu.memory_space<vmem>>, %arg8: memref<256x64xbf16, #tpu.memory_space<vmem>>, %arg9: memref<1x64xf32, #tpu.memory_space<vmem>>, %arg10: memref<64x128xbf16, #tpu.memory_space<vmem>>, %arg11: memref<1x128xf32, #tpu.memory_space<vmem>>, %arg12: memref<8x128xf32, #tpu.memory_space<vmem>>, %arg13: memref<8x128xf32, #tpu.memory_space<vmem>>) attributes {dimension_semantics = [#tpu.dimension_semantics<parallel>], iteration_bounds = array<i64: 1>, scalar_prefetch = 0 : i64, scratch_operands = 0 : i64, tpu.core_type = #tpu.core_type<tc>, window_params = [{transform_indices = @transform_0, window_bounds = array<i64: 8, 1536>}, {pipeline_mode = #tpu.pipeline_mode<synchronous>, transform_indices = @transform_1, window_bounds = array<i64: 1536, 512>}, {pipeline_mode = #tpu.pipeline_mode<synchronous>, transform_indices = @transform_2, window_bounds = array<i64: 1, 512>}, {pipeline_mode = #tpu.pipeline_mode<synchronous>, transform_indices = @transform_3, window_bounds = array<i64: 512, 512>}, {pipeline_mode = #tpu.pipeline_mode<synchronous>, transform_indices = @transform_4, window_bounds = array<i64: 1, 512>}, {pipeline_mode = #tpu.pipeline_mode<synchronous>, transform_indices = @transform_5, window_bounds = array<i64: 256, 128>}, {pipeline_mode = #tpu.pipeline_mode<synchronous>, transform_indices = @transform_6, window_bounds = array<i64: 1, 128>}, {pipeline_mode = #tpu.pipeline_mode<synchronous>, transform_indices = @transform_7, window_bounds = array<i64: 256, 64>}, {pipeline_mode = #tpu.pipeline_mode<synchronous>, transform_indices = @transform_8, window_bounds = array<i64: 1, 64>}, {pipeline_mode = #tpu.pipeline_mode<synchronous>, transform_indices = @transform_9, window_bounds = array<i64: 64, 128>}, {pipeline_mode = #tpu.pipeline_mode<synchronous>, transform_indices = @transform_10, window_bounds = array<i64: 1, 128>}, {transform_indices = @transform_11, window_bounds = array<i64: 8, 128>}, {transform_indices = @transform_12, window_bounds = array<i64: 8, 128>}]} {
    %c0 = arith.constant 0 : index
    %c0_0 = arith.constant 0 : index
    %0 = vector.load %arg1[%c0, %c0_0] : memref<8x1536xbf16, #tpu.memory_space<vmem>>, vector<8x1536xbf16>
    %c0_1 = arith.constant 0 : index
    %c0_2 = arith.constant 0 : index
    %1 = vector.load %arg2[%c0_1, %c0_2] : memref<1536x512xbf16, #tpu.memory_space<vmem>>, vector<1536x512xbf16>
    %c0_3 = arith.constant 0 : index
    %c0_4 = arith.constant 0 : index
    %2 = vector.load %arg3[%c0_3, %c0_4] : memref<1x512xf32, #tpu.memory_space<vmem>>, vector<1x512xf32>
    %c0_5 = arith.constant 0 : index
    %c0_6 = arith.constant 0 : index
    %3 = vector.load %arg4[%c0_5, %c0_6] : memref<512x512xbf16, #tpu.memory_space<vmem>>, vector<512x512xbf16>
    %c0_7 = arith.constant 0 : index
    %c0_8 = arith.constant 0 : index
    %4 = vector.load %arg5[%c0_7, %c0_8] : memref<1x512xf32, #tpu.memory_space<vmem>>, vector<1x512xf32>
    %c0_9 = arith.constant 0 : index
    %c0_10 = arith.constant 0 : index
    %5 = vector.load %arg6[%c0_9, %c0_10] : memref<256x128xbf16, #tpu.memory_space<vmem>>, vector<256x128xbf16>
    %c0_11 = arith.constant 0 : index
    %c0_12 = arith.constant 0 : index
    %6 = vector.load %arg7[%c0_11, %c0_12] : memref<1x128xf32, #tpu.memory_space<vmem>>, vector<1x128xf32>
    %c0_13 = arith.constant 0 : index
    %c0_14 = arith.constant 0 : index
    %7 = vector.load %arg8[%c0_13, %c0_14] : memref<256x64xbf16, #tpu.memory_space<vmem>>, vector<256x64xbf16>
    %c0_15 = arith.constant 0 : index
    %c0_16 = arith.constant 0 : index
    %8 = vector.load %arg9[%c0_15, %c0_16] : memref<1x64xf32, #tpu.memory_space<vmem>>, vector<1x64xf32>
    %c0_17 = arith.constant 0 : index
    %c0_18 = arith.constant 0 : index
    %9 = vector.load %arg10[%c0_17, %c0_18] : memref<64x128xbf16, #tpu.memory_space<vmem>>, vector<64x128xbf16>
    %c0_19 = arith.constant 0 : index
    %c0_20 = arith.constant 0 : index
    %10 = vector.load %arg11[%c0_19, %c0_20] : memref<1x128xf32, #tpu.memory_space<vmem>>, vector<1x128xf32>
    %cst = arith.constant dense<0.000000e+00> : vector<8x512xf32>
    %11 = tpu.matmul %0, %1, %cst {dimension_numbers = #tpu.dot_dimension_numbers<[1], [0], [0], [1], [0, 0, 1, 1], [], []>} : vector<8x1536xbf16>, vector<1536x512xbf16>, vector<8x512xf32> -> vector<8x512xf32>
    %12 = vector.broadcast %2 : vector<1x512xf32> to vector<8x512xf32>
    %13 = arith.addf %11, %12 : vector<8x512xf32>
    %cst_21 = arith.constant 0.000000e+00 : f32
    %14 = vector.broadcast %cst_21 : f32 to vector<8x512xf32>
    %15 = arith.maximumf %13, %14 : vector<8x512xf32>
    %16 = arith.truncf %15 : vector<8x512xf32> to vector<8x512xbf16>
    %cst_22 = arith.constant dense<0.000000e+00> : vector<8x512xf32>
    %17 = tpu.matmul %16, %3, %cst_22 {dimension_numbers = #tpu.dot_dimension_numbers<[1], [0], [0], [1], [0, 0, 1, 1], [], []>} : vector<8x512xbf16>, vector<512x512xbf16>, vector<8x512xf32> -> vector<8x512xf32>
    %18 = vector.broadcast %4 : vector<1x512xf32> to vector<8x512xf32>
    %19 = arith.addf %17, %18 : vector<8x512xf32>
    %20 = vector.extract_strided_slice %19 {offsets = [0, 0], sizes = [8, 256], strides = [1, 1]} : vector<8x512xf32> to vector<8x256xf32>
    %cst_23 = arith.constant 0.000000e+00 : f32
    %21 = vector.broadcast %cst_23 : f32 to vector<8x256xf32>
    %22 = arith.maximumf %20, %21 : vector<8x256xf32>
    %23 = vector.extract_strided_slice %19 {offsets = [0, 256], sizes = [8, 256], strides = [1, 1]} : vector<8x512xf32> to vector<8x256xf32>
    %cst_24 = arith.constant 0.000000e+00 : f32
    %24 = vector.broadcast %cst_24 : f32 to vector<8x256xf32>
    %25 = arith.maximumf %23, %24 : vector<8x256xf32>
    %26 = arith.truncf %22 : vector<8x256xf32> to vector<8x256xbf16>
    %cst_25 = arith.constant dense<0.000000e+00> : vector<8x128xf32>
    %27 = tpu.matmul %26, %5, %cst_25 {dimension_numbers = #tpu.dot_dimension_numbers<[1], [0], [0], [1], [0, 0, 1, 1], [], []>} : vector<8x256xbf16>, vector<256x128xbf16>, vector<8x128xf32> -> vector<8x128xf32>
    %28 = vector.broadcast %6 : vector<1x128xf32> to vector<8x128xf32>
    %29 = arith.addf %27, %28 : vector<8x128xf32>
    %30 = arith.negf %29 : vector<8x128xf32>
    %31 = math.exp %30 : vector<8x128xf32>
    %cst_26 = arith.constant 1.000000e+00 : f32
    %32 = vector.broadcast %cst_26 : f32 to vector<8x128xf32>
    %33 = arith.addf %32, %31 : vector<8x128xf32>
    %34 = arith.divf %32, %33 : vector<8x128xf32>
    %35 = arith.truncf %25 : vector<8x256xf32> to vector<8x256xbf16>
    %cst_27 = arith.constant dense<0.000000e+00> : vector<8x64xf32>
    %36 = tpu.matmul %35, %7, %cst_27 {dimension_numbers = #tpu.dot_dimension_numbers<[1], [0], [0], [1], [0, 0, 1, 1], [], []>} : vector<8x256xbf16>, vector<256x64xbf16>, vector<8x64xf32> -> vector<8x64xf32>
    %37 = vector.broadcast %8 : vector<1x64xf32> to vector<8x64xf32>
    %38 = arith.addf %36, %37 : vector<8x64xf32>
    %cst_28 = arith.constant 0.000000e+00 : f32
    %39 = vector.broadcast %cst_28 : f32 to vector<8x64xf32>
    %40 = arith.maximumf %38, %39 : vector<8x64xf32>
    %41 = arith.truncf %40 : vector<8x64xf32> to vector<8x64xbf16>
    %cst_29 = arith.constant dense<0.000000e+00> : vector<8x128xf32>
    %42 = tpu.matmul %41, %9, %cst_29 {dimension_numbers = #tpu.dot_dimension_numbers<[1], [0], [0], [1], [0, 0, 1, 1], [], []>} : vector<8x64xbf16>, vector<64x128xbf16>, vector<8x128xf32> -> vector<8x128xf32>
    %43 = vector.broadcast %10 : vector<1x128xf32> to vector<8x128xf32>
    %44 = arith.addf %42, %43 : vector<8x128xf32>
    %cst_30 = arith.constant 0.00999999977 : f32
    %45 = vector.broadcast %cst_30 : f32 to vector<8x128xf32>
    %46 = arith.mulf %44, %45 : vector<8x128xf32>
    %47 = math.tanh %46 : vector<8x128xf32>
    %cst_31 = arith.constant 1.000000e+02 : f32
    %48 = vector.broadcast %cst_31 : f32 to vector<8x128xf32>
    %49 = arith.mulf %48, %47 : vector<8x128xf32>
    %c0_32 = arith.constant 0 : index
    %c0_33 = arith.constant 0 : index
    %50 = vector.load %arg12[%c0_32, %c0_33] : memref<8x128xf32, #tpu.memory_space<vmem>>, vector<8x128xf32>
    tpu.vector_store %arg12[%c0_32, %c0_33], %34 {strides = array<i32>} : memref<8x128xf32, #tpu.memory_space<vmem>>, vector<8x128xf32>,
    %c0_34 = arith.constant 0 : index
    %c0_35 = arith.constant 0 : index
    %51 = vector.load %arg13[%c0_34, %c0_35] : memref<8x128xf32, #tpu.memory_space<vmem>>, vector<8x128xf32>
    tpu.vector_store %arg13[%c0_34, %c0_35], %49 {strides = array<i32>} : memref<8x128xf32, #tpu.memory_space<vmem>>, vector<8x128xf32>,
    return
  }
  func.func @transform_0(%arg0: i32) -> (i32, i32) {
    %c0_i32 = arith.constant 0 : i32
    %c0_i32_0 = arith.constant 0 : i32
    return %arg0, %c0_i32 : i32, i32
  }
  func.func @transform_1(%arg0: i32) -> (i32, i32) {
    %c0_i32 = arith.constant 0 : i32
    %c0_i32_0 = arith.constant 0 : i32
    %c0_i32_1 = arith.constant 0 : i32
    return %c0_i32, %c0_i32_0 : i32, i32
  }
  func.func @transform_2(%arg0: i32) -> (i32, i32) {
    %c0_i32 = arith.constant 0 : i32
    %c0_i32_0 = arith.constant 0 : i32
    %c0_i32_1 = arith.constant 0 : i32
    return %c0_i32, %c0_i32_0 : i32, i32
  }
  func.func @transform_3(%arg0: i32) -> (i32, i32) {
    %c0_i32 = arith.constant 0 : i32
    %c0_i32_0 = arith.constant 0 : i32
    %c0_i32_1 = arith.constant 0 : i32
    return %c0_i32, %c0_i32_0 : i32, i32
  }
  func.func @transform_4(%arg0: i32) -> (i32, i32) {
    %c0_i32 = arith.constant 0 : i32
    %c0_i32_0 = arith.constant 0 : i32
    %c0_i32_1 = arith.constant 0 : i32
    return %c0_i32, %c0_i32_0 : i32, i32
  }
  func.func @transform_5(%arg0: i32) -> (i32, i32) {
    %c0_i32 = arith.constant 0 : i32
    %c0_i32_0 = arith.constant 0 : i32
    %c0_i32_1 = arith.constant 0 : i32
    return %c0_i32, %c0_i32_0 : i32, i32
  }
  func.func @transform_6(%arg0: i32) -> (i32, i32) {
    %c0_i32 = arith.constant 0 : i32
    %c0_i32_0 = arith.constant 0 : i32
    %c0_i32_1 = arith.constant 0 : i32
    return %c0_i32, %c0_i32_0 : i32, i32
  }
  func.func @transform_7(%arg0: i32) -> (i32, i32) {
    %c0_i32 = arith.constant 0 : i32
    %c0_i32_0 = arith.constant 0 : i32
    %c0_i32_1 = arith.constant 0 : i32
    return %c0_i32, %c0_i32_0 : i32, i32
  }
  func.func @transform_8(%arg0: i32) -> (i32, i32) {
    %c0_i32 = arith.constant 0 : i32
    %c0_i32_0 = arith.constant 0 : i32
    %c0_i32_1 = arith.constant 0 : i32
    return %c0_i32, %c0_i32_0 : i32, i32
  }
  func.func @transform_9(%arg0: i32) -> (i32, i32) {
    %c0_i32 = arith.constant 0 : i32
    %c0_i32_0 = arith.constant 0 : i32
    %c0_i32_1 = arith.constant 0 : i32
    return %c0_i32, %c0_i32_0 : i32, i32
  }
  func.func @transform_10(%arg0: i32) -> (i32, i32) {
    %c0_i32 = arith.constant 0 : i32
    %c0_i32_0 = arith.constant 0 : i32
    %c0_i32_1 = arith.constant 0 : i32
    return %c0_i32, %c0_i32_0 : i32, i32
  }
  func.func @transform_11(%arg0: i32) -> (i32, i32) {
    %c0_i32 = arith.constant 0 : i32
    %c0_i32_0 = arith.constant 0 : i32
    return %arg0, %c0_i32 : i32, i32
  }
  func.func @transform_12(%arg0: i32) -> (i32, i32) {
    %c0_i32 = arith.constant 0 : i32
    %c0_i32_0 = arith.constant 0 : i32
    return %arg0, %c0_i32 : i32, i32
  }
}

</mosaic_0001>

<bundles_post_ra>
// kernel: _nnue_call.1
= control target key start
LH: loop header
LB: loop body
LE: loop exit
PB: predicated region body
PF: predicated region fallthrough
CT: control target
= control target key end

     0   :  { %18 = vsyncpa [#allocation3], 0  ;;  %s8030_s0 = inlined_call_operand.hbm [shape: bf16[8,1536], index: 0, kind: input, shape index: {}]   ;;  %s8031_s1 = inlined_call_operand.hbm [shape: bf16[1536,512], index: 1, kind: input, shape index: {}]   ;;  %s8032_s2 = inlined_call_operand.hbm [shape: f32[1,512], index: 2, kind: input, shape index: {}]   ;;  %s8033_s3 = inlined_call_operand.hbm [shape: bf16[512,512], index: 3, kind: input, shape index: {}]   ;;  %s8034_s4 = inlined_call_operand.hbm [shape: f32[1,512], index: 4, kind: input, shape index: {}]   ;;  %s8035_s5 = inlined_call_operand.hbm [shape: bf16[256,128], index: 5, kind: input, shape index: {}]   ;;  %s8036_s6 = inlined_call_operand.hbm [shape: f32[1,128], index: 6, kind: input, shape index: {}]   ;;  %s8037_s7 = inlined_call_operand.vmem [shape: bf16[256,64], index: 7, kind: input, shape index: {}]   ;;  %s8038_s8 = inlined_call_operand.hbm [shape: f32[1,64], index: 8, kind: input, shape index: {}]   ;;  %s8039_s9 = inlined_call_operand.hbm [shape: bf16[64,128], index: 9, kind: input, shape index: {}]   ;;  %s8040_s10 = inlined_call_operand.hbm [shape: f32[1,128], index: 10, kind: input, shape index: {}]   ;;  %s8041_s11 = inlined_call_operand.hbm [shape: f32[8,128], index: 11, kind: output, shape index: {0}]   ;;  %s8042_s12 = inlined_call_operand.hbm [shape: f32[8,128], index: 12, kind: output, shape index: {1}]  }
   0x1   :  { %19 = vsyncpa [#allocation6], 0 }
   0x2   :  { %20 = vsyncpa [#allocation9], 0 }
   0x3   :  { %21 = vsyncpa [#allocation12], 0 }
   0x4   :  { %22 = vsyncpa [#allocation15], 0 }
   0x5   :  { %23 = vsyncpa [#allocation18], 0 }
   0x6   :  { %24 = vsyncpa [#allocation4], 0  ;;  %s41_s23 = sshll.u32 %s8031_s1, 4  ;;  %s42_s23 = int_to_ptr.hbm [resolvable:$true] %s41_s23 }
   0x7   :  { %25 = vsyncpa [#allocation21], 0  ;;  %s7680_s24 = smov [#allocation5]   ;;  %s65_s28 = sshll.u32 %s8033_s3, 4  ;;  %s66_s28 = int_to_ptr.hbm [resolvable:$true] %s65_s28 }
   0x8   :  { %s43_s25 = sshll.u32 %s7680_s24, 4  ;;  %s7681_s29 = smov 256   ;;  %s44_s25 = int_to_ptr.vmem [resolvable:$true] %s43_s25 }
   0x9   :  { %s7682_s30 = smov 16   ;;  %s7683_s13 = smov [#allocation8]  }
   0xa   :  { %49 = dma.hbm_to_vmem [thread:$0]  %s42_s23, 49152, %s44_s25, [#allocation6], %s7681_s29, %s7681_s29, %s7682_s30  }
   0xb   :  { %s67_s14 = sshll.u32 %s7683_s13, 4  ;;  %s89_s17 = sshll.u32 %s8035_s5, 4  ;;  %s68_s14 = int_to_ptr.vmem [resolvable:$true] %s67_s14  ;;  %s90_s17 = int_to_ptr.hbm [resolvable:$true] %s89_s17 }
   0xc   :  { %73 = dma.hbm_to_vmem [thread:$0]  %s66_s28, 16384, %s68_s14, [#allocation9], %s7681_s29, %s7681_s29, %s7682_s30  }
   0xd   :  { %s7684_s1 = smov [#allocation11]   ;;  %s116_s3 = sshll.u32 %s8038_s8, 4  ;;  %s117_s3 = int_to_ptr.hbm [resolvable:$true] %s116_s3 }
   0xe   :  { %s91_s18 = sshll.u32 %s7684_s1, 4  ;;  %s7685_s21 = smov 64   ;;  %s92_s18 = int_to_ptr.vmem [resolvable:$true] %s91_s18 }
   0xf   :  { %s7686_s22 = smov 4   ;;  %s7687_s23 = smov [#allocation14]  }
  0x10   :  { %97 = dma.hbm_to_vmem [thread:$0]  %s90_s17, 2048, %s92_s18, [#allocation12], %s7685_s21, %s7685_s21, %s7686_s22  }
  0x11   :  { %s118_s24 = sshll.u32 %s7687_s23, 4  ;;  %s31_s26 = sshll.u32 %s8030_s0, 4  ;;  %s119_s24 = int_to_ptr.vmem [resolvable:$true] %s118_s24  ;;  %s32_s26 = int_to_ptr.hbm [resolvable:$true] %s31_s26 }
  0x12   :  { %121 = dma.hbm_to_vmem [thread:$0]  %s117_s3, 16, %s119_s24, [#allocation15]  }
  0x13   :  { %s55_s8 = sshll.u32 %s8032_s2, 4  ;;  %s7688_s29 = smov [#allocation2]   ;;  %s56_s8 = int_to_ptr.hbm [resolvable:$true] %s55_s8 }
  0x14   :  { %s33_s30 = sshll.u32 %s7688_s29, 4  ;;  %s7689_s13 = smov [#allocation7]   ;;  %s34_s30 = int_to_ptr.vmem [resolvable:$true] %s33_s30 }
  0x15   :  { %36 = dma.hbm_to_vmem [thread:$0]  %s32_s26, 768, %s34_s30, [#allocation3]  }
  0x16   :  { %s57_s14 = sshll.u32 %s7689_s13, 4  ;;  %s79_s17 = sshll.u32 %s8034_s4, 4  ;;  %s58_s14 = int_to_ptr.vmem [resolvable:$true] %s57_s14  ;;  %s80_s17 = int_to_ptr.hbm [resolvable:$true] %s79_s17 }
  0x17   :  { %60 = dma.hbm_to_vmem [thread:$0]  %s56_s8, 64, %s58_s14, [#allocation6]  }
  0x18   :  { %s103_s18 = sshll.u32 %s8036_s6, 4  ;;  %s7690_s19 = smov [#allocation10]   ;;  %s104_s18 = int_to_ptr.hbm [resolvable:$true] %s103_s18 }
  0x19   :  { %s81_s2 = sshll.u32 %s7690_s19, 4  ;;  %s7691_s20 = smov [#allocation13]   ;;  %s82_s2 = int_to_ptr.vmem [resolvable:$true] %s81_s2 }
  0x1a   :  { %84 = dma.hbm_to_vmem [thread:$0]  %s80_s17, 64, %s82_s2, [#allocation9]  }
  0x1b   :  { %s105_s3 = sshll.u32 %s7691_s20, 4  ;;  %s126_s5 = sshll.u32 %s8039_s9, 4  ;;  %s106_s3 = int_to_ptr.vmem [resolvable:$true] %s105_s3  ;;  %s127_s5 = int_to_ptr.hbm [resolvable:$true] %s126_s5 }
  0x1c   :  { %108 = dma.hbm_to_vmem [thread:$0]  %s104_s18, 16, %s106_s3, [#allocation12]  }
  0x1d   :  { %s140_s26 = sshll.u32 %s8040_s10, 4  ;;  %s7692_s27 = smov [#allocation16]   ;;  %s141_s26 = int_to_ptr.hbm [resolvable:$true] %s140_s26 }
  0x1e   :  { %s128_s6 = sshll.u32 %s7692_s27, 4  ;;  %s7693_s28 = smov [#allocation17]   ;;  %s129_s6 = int_to_ptr.vmem [resolvable:$true] %s128_s6 }
  0x1f   :  { %134 = dma.hbm_to_vmem [thread:$0]  %s127_s5, 512, %s129_s6, [#allocation15], %s7685_s21, %s7685_s21, %s7686_s22  }
  0x20   :  { %s142_s8 = sshll.u32 %s7693_s28, 4  ;;  %s143_s8 = int_to_ptr.vmem [resolvable:$true] %s142_s8 }
  0x21   :  { %145 = dma.hbm_to_vmem [thread:$0]  %s141_s26, 16, %s143_s8, [#allocation18]  }
  0x22   :  { %7664 = dma.done.wait [#allocation3], 768  }
  0x23   :  { %7665 = vsyncadd [#allocation3], 4294966528 }
  0x24   :  { %7666 = dma.done.wait [#allocation6], 49216  }
  0x25   :  { %7667 = vsyncadd [#allocation6], 4294918080 }
  0x26   :  { %7668 = dma.done.wait [#allocation9], 16448  }
  0x27   :  { %7669 = vsyncadd [#allocation9], 4294950848 }
  0x28   :  { %7670 = dma.done.wait [#allocation12], 2064  }
  0x29   :  { %7671 = vsyncadd [#allocation12], 4294965232 }
  0x2a   :  { %7672 = dma.done.wait [#allocation15], 528  }
  0x2b   :  { %7673 = vsyncadd [#allocation15], 4294966768 }
  0x2c   :  { %7674 = dma.done.wait [#allocation18], 16  }
  0x2d   :  { %7675 = vsyncadd [#allocation18], 4294967280  ;;  %v4722_v0 = vld [vmem:[#allocation5 + $0xe0] sm:$0xf]  ;;  %v6832_v1 = vld [vmem:[#allocation5 + $0xec] sm:$0xf0] }
  0x2e   :  { %v4850_v2 = vld [vmem:[#allocation5 + $0x1e0] sm:$0xf]  ;;  %v4723_v3 = vor.u32 %v6832_v1, %v4722_v0  ;;  %v6864_v4 = vld [vmem:[#allocation5 + $0x1ec] sm:$0xf0]  ;;  %vm4548_vm4 = vcmask 523264   ;;  %s4577_s14 = sshll.u32 %s8041_s11, 4  ;;  %s4578_s14 = int_to_ptr.hbm [resolvable:$true] %s4577_s14 }
  0x2f   :  { %v4978_v5 = vld [vmem:[#allocation5 + $0x2e0] sm:$0xf]  ;;  %v6896_v6 = vld [vmem:[#allocation5 + $0x2ec] sm:$0xf0]  ;;  %v4851_v7 = vor.u32 %v6864_v4, %v4850_v2  ;;  %s7695_s15 = smov [#allocation20]   ;;  %s4588_s1 = sshll.u32 %s8042_s12, 4  ;;  %s4589_s1 = int_to_ptr.hbm [resolvable:$true] %s4588_s1 }
  0x30   :  { %v4979_v8 = vor.u32 %v6896_v6, %v4978_v5  ;;  %v5106_v9 = vld [vmem:[#allocation5 + $0x3e0] sm:$0xf]  ;;  %v6928_v10 = vld [vmem:[#allocation5 + $0x3ec] sm:$0xf0]  ;;  %2753 = vmatpush.bf16.msra.mxu0 %v4723_v3  ;;  %s4586_s16 = sshll.u32 %s7695_s15, 4  ;;  %s4587_s16 = int_to_ptr.vmem [resolvable:$true] %s4586_s16 }
  0x31   :  { %v4706_v11 = vld [vmem:[#allocation5 + $0xc0] sm:$0xf]  ;;  %v5107_v12 = vor.u32 %v6928_v10, %v5106_v9  ;;  %v6828_v13 = vld [vmem:[#allocation5 + $0xcc] sm:$0xf0]  ;;  %2766 = vmatpush.bf16.msra.mxu1 %v4851_v7 }
  0x32   :  { %v4834_v14 = vld [vmem:[#allocation5 + $0x1c0] sm:$0xf]  ;;  %v6860_v15 = vld [vmem:[#allocation5 + $0x1cc] sm:$0xf0]  ;;  %2779 = vmatpush.bf16.msra.mxu2 %v4979_v8  ;;  %v4707_v16 = vor.u32 %v6828_v13, %v4706_v11 }
  0x33   :  { %v4835_v17 = vor.u32 %v6860_v15, %v4834_v14  ;;  %v4962_v18 = vld [vmem:[#allocation5 + $0x2c0] sm:$0xf]  ;;  %v6892_v19 = vld [vmem:[#allocation5 + $0x2cc] sm:$0xf0]  ;;  %2792 = vmatpush.bf16.msra.mxu3 %v5107_v12 }
  0x34   :  { %v5090_v20 = vld [vmem:[#allocation5 + $0x3c0] sm:$0xf]  ;;  %v4963_v21 = vor.u32 %v6892_v19, %v4962_v18  ;;  %v6924_v22 = vld [vmem:[#allocation5 + $0x3cc] sm:$0xf0]  ;;  %2754 = vmatpush.bf16.msra.mxu0 %v4707_v16 }
  0x35   :  { %v4690_v23 = vld [vmem:[#allocation5 + $0xa0] sm:$0xf]  ;;  %v6824_v24 = vld [vmem:[#allocation5 + $0xac] sm:$0xf0]  ;;  %v5091_v25 = vor.u32 %v6924_v22, %v5090_v20  ;;  %2767 = vmatpush.bf16.msra.mxu1 %v4835_v17 }
  0x36   :  { %v4818_v26 = vld [vmem:[#allocation5 + $0x1a0] sm:$0xf]  ;;  %v6856_v27 = vld [vmem:[#allocation5 + $0x1ac] sm:$0xf0]  ;;  %v4691_v29 = vor.u32 %v6824_v24, %v4690_v23  ;;  %2780 = vmatpush.bf16.msra.mxu2 %v4963_v21 }
  0x37   :  { %v4946_v28 = vld [vmem:[#allocation5 + $0x2a0] sm:$0xf]  ;;  %v6888_v30 = vld [vmem:[#allocation5 + $0x2ac] sm:$0xf0]  ;;  %v4819_v33 = vor.u32 %v6856_v27, %v4818_v26  ;;  %2793 = vmatpush.bf16.msra.mxu3 %v5091_v25 }
  0x38   :  { %v5074_v31 = vld [vmem:[#allocation5 + $0x3a0] sm:$0xf]  ;;  %v6920_v32 = vld [vmem:[#allocation5 + $0x3ac] sm:$0xf0]  ;;  %v4947_v34 = vor.u32 %v6888_v30, %v4946_v28  ;;  %2755 = vmatpush.bf16.msra.mxu0 %v4691_v29 }
  0x39   :  { %v4674_v35 = vld [vmem:[#allocation5 + $0x80] sm:$0xf]  ;;  %v6820_v36 = vld [vmem:[#allocation5 + $0x8c] sm:$0xf0]  ;;  %v5075_v38 = vor.u32 %v6920_v32, %v5074_v31  ;;  %2768 = vmatpush.bf16.msra.mxu1 %v4819_v33 }
  0x3a   :  { %v4802_v37 = vld [vmem:[#allocation5 + $0x180] sm:$0xf]  ;;  %v6852_v39 = vld [vmem:[#allocation5 + $0x18c] sm:$0xf0]  ;;  %v4675_v44 = vor.u32 %v6820_v36, %v4674_v35  ;;  %2781 = vmatpush.bf16.msra.mxu2 %v4947_v34 }
  0x3b   :  { %v4930_v40 = vld [vmem:[#allocation5 + $0x280] sm:$0xf]  ;;  %v6884_v41 = vld [vmem:[#allocation5 + $0x28c] sm:$0xf0]  ;;  %v4803_v45 = vor.u32 %v6852_v39, %v4802_v37  ;;  %2794 = vmatpush.bf16.msra.mxu3 %v5075_v38 }
  0x3c   :  { %v5058_v42 = vld [vmem:[#allocation5 + $0x380] sm:$0xf]  ;;  %v6916_v43 = vld [vmem:[#allocation5 + $0x38c] sm:$0xf0]  ;;  %v4931_v46 = vor.u32 %v6884_v41, %v4930_v40  ;;  %2756 = vmatpush.bf16.msra.mxu0 %v4675_v44 }
  0x3d   :  { %v4658_v47 = vld [vmem:[#allocation5 + $0x60] sm:$0xf]  ;;  %v6816_v48 = vld [vmem:[#allocation5 + $0x6c] sm:$0xf0]  ;;  %v5059_v50 = vor.u32 %v6916_v43, %v5058_v42  ;;  %2769 = vmatpush.bf16.msra.mxu1 %v4803_v45 }
  0x3e   :  { %v4786_v49 = vld [vmem:[#allocation5 + $0x160] sm:$0xf]  ;;  %v6848_v51 = vld [vmem:[#allocation5 + $0x16c] sm:$0xf0]  ;;  %v4659_v56 = vor.u32 %v6816_v48, %v4658_v47  ;;  %2782 = vmatpush.bf16.msra.mxu2 %v4931_v46 }
  0x3f   :  { %v4914_v52 = vld [vmem:[#allocation5 + $0x260] sm:$0xf]  ;;  %v6880_v53 = vld [vmem:[#allocation5 + $0x26c] sm:$0xf0]  ;;  %v4787_v57 = vor.u32 %v6848_v51, %v4786_v49  ;;  %2795 = vmatpush.bf16.msra.mxu3 %v5059_v50 }
  0x40   :  { %v5042_v54 = vld [vmem:[#allocation5 + $0x360] sm:$0xf]  ;;  %v6912_v55 = vld [vmem:[#allocation5 + $0x36c] sm:$0xf0]  ;;  %v4915_v58 = vor.u32 %v6880_v53, %v4914_v52  ;;  %2757 = vmatpush.bf16.msra.mxu0 %v4659_v56 }
  0x41   :  { %v4642_v59 = vld [vmem:[#allocation5 + $0x40] sm:$0xf]  ;;  %v6812_v60 = vld [vmem:[#allocation5 + $0x4c] sm:$0xf0]  ;;  %v5043_v62 = vor.u32 %v6912_v55, %v5042_v54  ;;  %2770 = vmatpush.bf16.msra.mxu1 %v4787_v57 }
  0x42   :  { %v4770_v61 = vld [vmem:[#allocation5 + $0x140] sm:$0xf]  ;;  %v6844_v63 = vld [vmem:[#allocation5 + $0x14c] sm:$0xf0]  ;;  %v4643_v4 = vor.u32 %v6812_v60, %v4642_v59  ;;  %2783 = vmatpush.bf16.msra.mxu2 %v4915_v58 }
  0x43   :  { %v4898_v0 = vld [vmem:[#allocation5 + $0x240] sm:$0xf]  ;;  %v6876_v1 = vld [vmem:[#allocation5 + $0x24c] sm:$0xf0]  ;;  %v4771_v5 = vor.u32 %v6844_v63, %v4770_v61  ;;  %2796 = vmatpush.bf16.msra.mxu3 %v5043_v62 }
  0x44   :  { %v5026_v2 = vld [vmem:[#allocation5 + $0x340] sm:$0xf]  ;;  %v6908_v3 = vld [vmem:[#allocation5 + $0x34c] sm:$0xf0]  ;;  %v4899_v6 = vor.u32 %v6876_v1, %v4898_v0  ;;  %2758 = vmatpush.bf16.msra.mxu0 %v4643_v4 }
  0x45   :  { %v4626_v7 = vld [vmem:[#allocation5 + $0x20] sm:$0xf]  ;;  %v6808_v8 = vld [vmem:[#allocation5 + $0x2c] sm:$0xf0]  ;;  %v5027_v10 = vor.u32 %v6908_v3, %v5026_v2  ;;  %2771 = vmatpush.bf16.msra.mxu1 %v4771_v5  ;;  %v188_v2 = vld [vmem:[#allocation2 + $0x8] sm:$0xff] }
  0x46   :  { %v4754_v9 = vld [vmem:[#allocation5 + $0x120] sm:$0xf]  ;;  %v6840_v11 = vld [vmem:[#allocation5 + $0x12c] sm:$0xf0]  ;;  %v4627_v16 = vor.u32 %v6808_v8, %v4626_v7  ;;  %2784 = vmatpush.bf16.msra.mxu2 %v4899_v6  ;;  %v799_v8 = vunpack.c.l.b16 %v188_v2 }
  0x47   :  { %v4882_v12 = vld [vmem:[#allocation5 + $0x220] sm:$0xf]  ;;  %v6872_v13 = vld [vmem:[#allocation5 + $0x22c] sm:$0xf0]  ;;  %v4755_v19 = vor.u32 %v6840_v11, %v4754_v9  ;;  %2797 = vmatpush.bf16.msra.mxu3 %v5027_v10  ;;  %v800_v10 = vunpack.c.h.b16 %v188_v2 }
  0x48   :  { %v5010_v14 = vld [vmem:[#allocation5 + $0x320] sm:$0xf]  ;;  %v6904_v15 = vld [vmem:[#allocation5 + $0x32c] sm:$0xf0]  ;;  %v4883_v20 = vor.u32 %v6872_v13, %v4882_v12  ;;  %2759 = vmatpush.bf16.msra.mxu0 %v4627_v16 }
  0x49   :  { %v4610_v17 = vld [vmem:[#allocation5] sm:$0xf]  ;;  %v6804_v18 = vld [vmem:[#allocation5 + $0xc] sm:$0xf0]  ;;  %v5011_v24 = vor.u32 %v6904_v15, %v5010_v14  ;;  %2772 = vmatpush.bf16.msra.mxu1 %v4755_v19 }
  0x4a   :  { %v4738_v21 = vld [vmem:[#allocation5 + $0x100] sm:$0xf]  ;;  %v6836_v22 = vld [vmem:[#allocation5 + $0x10c] sm:$0xf0]  ;;  %v4611_v31 = vor.u32 %v6804_v18, %v4610_v17  ;;  %2785 = vmatpush.bf16.msra.mxu2 %v4883_v20  ;;  %v7797_v18 = vpack.c.b16 %v799_v8, %v799_v8  ;;  %v7801_v20 = vpack.c.b16 %v800_v10, %v800_v10 }
  0x4b   :  { %v4866_v23 = vld [vmem:[#allocation5 + $0x200] sm:$0xf]  ;;  %v6868_v25 = vld [vmem:[#allocation5 + $0x20c] sm:$0xf0]  ;;  %v4739_v35 = vor.u32 %v6836_v22, %v4738_v21  ;;  %2798 = vmatpush.bf16.msra.mxu3 %v5011_v24 }
  0x4c   :  { %v4994_v26 = vld [vmem:[#allocation5 + $0x300] sm:$0xf]  ;;  %v6900_v27 = vld [vmem:[#allocation5 + $0x30c] sm:$0xf0]  ;;  %v4867_v36 = vor.u32 %v6868_v25, %v4866_v23  ;;  %2760 = vmatpush.bf16.msra.mxu0 %v4611_v31 }
  0x4d   :  { %v5234_v28 = vld [vmem:[#allocation5 + $0x4e0] sm:$0xf]  ;;  %v6960_v29 = vld [vmem:[#allocation5 + $0x4ec] sm:$0xf0]  ;;  %v4995_v39 = vor.u32 %v6900_v27, %v4994_v26  ;;  %2773 = vmatpush.bf16.msra.mxu1 %v4739_v35 }
  0x4e   :  { %v5362_v30 = vld [vmem:[#allocation5 + $0x5e0] sm:$0xf]  ;;  %v6992_v32 = vld [vmem:[#allocation5 + $0x5ec] sm:$0xf0]  ;;  %v5235_v40 = vor.u32 %v6960_v29, %v5234_v28  ;;  %2786 = vmatpush.bf16.msra.mxu2 %v4867_v36 }
  0x4f   :  { %v5490_v33 = vld [vmem:[#allocation5 + $0x6e0] sm:$0xf]  ;;  %v7024_v34 = vld [vmem:[#allocation5 + $0x6ec] sm:$0xf0]  ;;  %v5363_v41 = vor.u32 %v6992_v32, %v5362_v30  ;;  %2799 = vmatpush.bf16.msra.mxu3 %v4995_v39 }
  0x50   :  { %v5618_v37 = vld [vmem:[#allocation5 + $0x7e0] sm:$0xf]  ;;  %v7056_v38 = vld [vmem:[#allocation5 + $0x7ec] sm:$0xf0]  ;;  %v5491_v42 = vor.u32 %v7024_v34, %v5490_v33  ;;  %2805 = vmatpush.bf16.msrb.mxu0 %v5235_v40 }
  0x51   :  { %v5218_v43 = vld [vmem:[#allocation5 + $0x4c0] sm:$0xf]  ;;  %v6956_v44 = vld [vmem:[#allocation5 + $0x4cc] sm:$0xf0]  ;;  %v5619_v46 = vor.u32 %v7056_v38, %v5618_v37  ;;  %2818 = vmatpush.bf16.msrb.mxu1 %v5363_v41  ;;  %2787 = vmatmul.bf16.vlgmr.msra.gmra.mxu2 %v7797_v18 }
  0x52   :  { %v5346_v45 = vld [vmem:[#allocation5 + $0x5c0] sm:$0xf]  ;;  %v6988_v47 = vld [vmem:[#allocation5 + $0x5cc] sm:$0xf0]  ;;  %v5219_v52 = vor.u32 %v6956_v44, %v5218_v43  ;;  %2831 = vmatpush.bf16.msrb.mxu2 %v5491_v42  ;;  %2800 = vmatmul.bf16.vlgmr.msra.gmra.mxu3 %v7801_v20 }
  0x53   :  { %v5474_v48 = vld [vmem:[#allocation5 + $0x6c0] sm:$0xf]  ;;  %v7020_v49 = vld [vmem:[#allocation5 + $0x6cc] sm:$0xf0]  ;;  %v5347_v54 = vor.u32 %v6988_v47, %v5346_v45  ;;  %2844 = vmatpush.bf16.msrb.mxu3 %v5619_v46 }
  0x54   :  { %v5602_v50 = vld [vmem:[#allocation5 + $0x7c0] sm:$0xf]  ;;  %v7052_v51 = vld [vmem:[#allocation5 + $0x7cc] sm:$0xf0]  ;;  %v5475_v55 = vor.u32 %v7020_v49, %v5474_v48  ;;  %2806 = vmatpush.bf16.msrb.mxu0 %v5219_v52 }
  0x55   :  { %v5202_v53 = vld [vmem:[#allocation5 + $0x4a0] sm:$0xf]  ;;  %v6952_v56 = vld [vmem:[#allocation5 + $0x4ac] sm:$0xf0]  ;;  %v5603_v59 = vor.u32 %v7052_v51, %v5602_v50  ;;  %2819 = vmatpush.bf16.msrb.mxu1 %v5347_v54 }
  0x56   :  { %v5330_v57 = vld [vmem:[#allocation5 + $0x5a0] sm:$0xf]  ;;  %v6984_v58 = vld [vmem:[#allocation5 + $0x5ac] sm:$0xf0]  ;;  %v5203_v0 = vor.u32 %v6952_v56, %v5202_v53  ;;  %2832 = vmatpush.bf16.msrb.mxu2 %v5475_v55 }
  0x57   :  { %v5458_v60 = vld [vmem:[#allocation5 + $0x6a0] sm:$0xf]  ;;  %v7016_v61 = vld [vmem:[#allocation5 + $0x6ac] sm:$0xf0]  ;;  %v5331_v1 = vor.u32 %v6984_v58, %v5330_v57  ;;  %2845 = vmatpush.bf16.msrb.mxu3 %v5603_v59 }
  0x58   :  { %v5586_v62 = vld [vmem:[#allocation5 + $0x7a0] sm:$0xf]  ;;  %v7048_v63 = vld [vmem:[#allocation5 + $0x7ac] sm:$0xf0]  ;;  %v5459_v4 = vor.u32 %v7016_v61, %v5458_v60  ;;  %2807 = vmatpush.bf16.msrb.mxu0 %v5203_v0 }
  0x59   :  { %v187_v3 = vld [vmem:[#allocation2] sm:$0xff]  ;;  %v5186_v5 = vld [vmem:[#allocation5 + $0x480] sm:$0xf]  ;;  %v5587_v11 = vor.u32 %v7048_v63, %v5586_v62  ;;  %2820 = vmatpush.bf16.msrb.mxu1 %v5331_v1 }
  0x5a   :  { %v6948_v6 = vld [vmem:[#allocation5 + $0x48c] sm:$0xf0]  ;;  %v5314_v7 = vld [vmem:[#allocation5 + $0x580] sm:$0xf]  ;;  %v797_v9 = vunpack.c.l.b16 %v187_v3  ;;  %v798_v15 = vunpack.c.h.b16 %v187_v3  ;;  %2833 = vmatpush.bf16.msrb.mxu2 %v5459_v4  ;;  %v190_v3 = vld [vmem:[#allocation2 + $0x18] sm:$0xff] }
  0x5b   :  { %v6980_v12 = vld [vmem:[#allocation5 + $0x58c] sm:$0xf0]  ;;  %v5442_v13 = vld [vmem:[#allocation5 + $0x680] sm:$0xf]  ;;  %v5187_v21 = vor.u32 %v6948_v6, %v5186_v5  ;;  %2846 = vmatpush.bf16.msrb.mxu3 %v5587_v11 }
  0x5c   :  { %v7012_v14 = vld [vmem:[#allocation5 + $0x68c] sm:$0xf0]  ;;  %v5570_v16 = vld [vmem:[#allocation5 + $0x780] sm:$0xf]  ;;  %v7799_v19 = vpack.c.b16 %v797_v9, %v797_v9  ;;  %v7803_v22 = vpack.c.b16 %v798_v15, %v798_v15  ;;  %v5315_v23 = vor.u32 %v6980_v12, %v5314_v7  ;;  %v803_v15 = vunpack.c.l.b16 %v190_v3 }
  0x5d   :  { %v7044_v17 = vld [vmem:[#allocation5 + $0x78c] sm:$0xf0]  ;;  %v5443_v24 = vor.u32 %v7012_v14, %v5442_v13  ;;  %v5170_v25 = vld [vmem:[#allocation5 + $0x460] sm:$0xf]  ;;  %2808 = vmatpush.bf16.msrb.mxu0 %v5187_v21 }
  0x5e   :  { %v6944_v26 = vld [vmem:[#allocation5 + $0x46c] sm:$0xf0]  ;;  %v5298_v27 = vld [vmem:[#allocation5 + $0x560] sm:$0xf]  ;;  %v5571_v28 = vor.u32 %v7044_v17, %v5570_v16  ;;  %2761 = vmatmul.bf16.vlgmr.msra.gmra.mxu0 %v7799_v19  ;;  %2774 = vmatmul.bf16.vlgmr.msra.gmra.mxu1 %v7803_v22 }
  0x5f   :  { %v6976_v29 = vld [vmem:[#allocation5 + $0x56c] sm:$0xf0]  ;;  %v5426_v30 = vld [vmem:[#allocation5 + $0x660] sm:$0xf]  ;;  %v5171_v34 = vor.u32 %v6944_v26, %v5170_v25  ;;  %2821 = vmatpush.bf16.msrb.mxu1 %v5315_v23  ;;  %2834 = vmatpush.bf16.msrb.mxu2 %v5443_v24  ;;  %v804_v25 = vunpack.c.h.b16 %v190_v3 }
  0x60   :  { %v7008_v31 = vld [vmem:[#allocation5 + $0x66c] sm:$0xf0]  ;;  %v5554_v32 = vld [vmem:[#allocation5 + $0x760] sm:$0xf]  ;;  %v5299_v35 = vor.u32 %v6976_v29, %v5298_v27  ;;  %2847 = vmatpush.bf16.msrb.mxu3 %v5571_v28 }
  0x61   :  { %v7040_v33 = vld [vmem:[#allocation5 + $0x76c] sm:$0xf0]  ;;  %v5427_v36 = vor.u32 %v7008_v31, %v5426_v30  ;;  %v5154_v37 = vld [vmem:[#allocation5 + $0x440] sm:$0xf]  ;;  %2809 = vmatpush.bf16.msrb.mxu0 %v5171_v34 }
  0x62   :  { %v6940_v38 = vld [vmem:[#allocation5 + $0x44c] sm:$0xf0]  ;;  %v5282_v39 = vld [vmem:[#allocation5 + $0x540] sm:$0xf]  ;;  %v5555_v40 = vor.u32 %v7040_v33, %v5554_v32 }
  0x63   :  { %v6972_v41 = vld [vmem:[#allocation5 + $0x54c] sm:$0xf0]  ;;  %v5410_v42 = vld [vmem:[#allocation5 + $0x640] sm:$0xf]  ;;  %v5155_v46 = vor.u32 %v6940_v38, %v5154_v37  ;;  %2822 = vmatpush.bf16.msrb.mxu1 %v5299_v35  ;;  %2835 = vmatpush.bf16.msrb.mxu2 %v5427_v36  ;;  %v7809_v38 = vpack.c.b16 %v803_v15, %v803_v15 }
  0x64   :  { %v7004_v43 = vld [vmem:[#allocation5 + $0x64c] sm:$0xf0]  ;;  %v5538_v44 = vld [vmem:[#allocation5 + $0x740] sm:$0xf]  ;;  %v5283_v47 = vor.u32 %v6972_v41, %v5282_v39  ;;  %2848 = vmatpush.bf16.msrb.mxu3 %v5555_v40 }
  0x65   :  { %v7036_v45 = vld [vmem:[#allocation5 + $0x74c] sm:$0xf0]  ;;  %v5411_v48 = vor.u32 %v7004_v43, %v5410_v42  ;;  %v5138_v49 = vld [vmem:[#allocation5 + $0x420] sm:$0xf]  ;;  %2810 = vmatpush.bf16.msrb.mxu0 %v5155_v46  ;;  %v7813_v42 = vpack.c.b16 %v804_v25, %v804_v25 }
  0x66   :  { %v6936_v50 = vld [vmem:[#allocation5 + $0x42c] sm:$0xf0]  ;;  %v5266_v51 = vld [vmem:[#allocation5 + $0x520] sm:$0xf]  ;;  %v5539_v52 = vor.u32 %v7036_v45, %v5538_v44 }
  0x67   :  { %v6968_v53 = vld [vmem:[#allocation5 + $0x52c] sm:$0xf0]  ;;  %v5394_v54 = vld [vmem:[#allocation5 + $0x620] sm:$0xf]  ;;  %v5139_v59 = vor.u32 %v6936_v50, %v5138_v49  ;;  %2823 = vmatpush.bf16.msrb.mxu1 %v5283_v47  ;;  %2836 = vmatpush.bf16.msrb.mxu2 %v5411_v48 }
  0x68   :  { %v7000_v55 = vld [vmem:[#allocation5 + $0x62c] sm:$0xf0]  ;;  %v5522_v56 = vld [vmem:[#allocation5 + $0x720] sm:$0xf]  ;;  %v5267_v63 = vor.u32 %v6968_v53, %v5266_v51  ;;  %2849 = vmatpush.bf16.msrb.mxu3 %v5539_v52 }
  0x69   :  { %v7032_v57 = vld [vmem:[#allocation5 + $0x72c] sm:$0xf0]  ;;  %v5122_v58 = vld [vmem:[#allocation5 + $0x400] sm:$0xf]  ;;  %v5395_v0 = vor.u32 %v7000_v55, %v5394_v54  ;;  %2811 = vmatpush.bf16.msrb.mxu0 %v5139_v59 }
  0x6a   :  { %v6932_v60 = vld [vmem:[#allocation5 + $0x40c] sm:$0xf0]  ;;  %v5250_v61 = vld [vmem:[#allocation5 + $0x500] sm:$0xf]  ;;  %v5523_v4 = vor.u32 %v7032_v57, %v5522_v56 }
  0x6b   :  { %v6964_v62 = vld [vmem:[#allocation5 + $0x50c] sm:$0xf0]  ;;  %v5378_v1 = vld [vmem:[#allocation5 + $0x600] sm:$0xf]  ;;  %v5123_v11 = vor.u32 %v6932_v60, %v5122_v58  ;;  %2824 = vmatpush.bf16.msrb.mxu1 %v5267_v63  ;;  %2837 = vmatpush.bf16.msrb.mxu2 %v5395_v0 }
  0x6c   :  { %v6996_v2 = vld [vmem:[#allocation5 + $0x60c] sm:$0xf0]  ;;  %v5506_v5 = vld [vmem:[#allocation5 + $0x700] sm:$0xf]  ;;  %v5251_v16 = vor.u32 %v6964_v62, %v5250_v61  ;;  %2850 = vmatpush.bf16.msrb.mxu3 %v5523_v4 }
  0x6d   :  { %v7028_v6 = vld [vmem:[#allocation5 + $0x70c] sm:$0xf0]  ;;  %v189_v7 = vld [vmem:[#allocation2 + $0x10] sm:$0xff]  ;;  %v5379_v17 = vor.u32 %v6996_v2, %v5378_v1  ;;  %2812 = vmatpush.bf16.msrb.mxu0 %v5123_v11 }
  0x6e   :  { %v5746_v8 = vld [vmem:[#allocation5 + $0x8e0] sm:$0xf]  ;;  %v7088_v9 = vld [vmem:[#allocation5 + $0x8ec] sm:$0xf0]  ;;  %v801_v24 = vunpack.c.l.b16 %v189_v7  ;;  %v5507_v26 = vor.u32 %v7028_v6, %v5506_v5  ;;  %v802_v28 = vunpack.c.h.b16 %v189_v7 }
  0x6f   :  { %v5874_v10 = vld [vmem:[#allocation5 + $0x9e0] sm:$0xf]  ;;  %v7120_v12 = vld [vmem:[#allocation5 + $0x9ec] sm:$0xf0]  ;;  %v5747_v27 = vor.u32 %v7088_v9, %v5746_v8  ;;  %2825 = vmatpush.bf16.msrb.mxu1 %v5251_v16  ;;  %2838 = vmatpush.bf16.msrb.mxu2 %v5379_v17 }
  0x70   :  { %v6002_v13 = vld [vmem:[#allocation5 + $0xae0] sm:$0xf]  ;;  %v7152_v14 = vld [vmem:[#allocation5 + $0xaec] sm:$0xf0]  ;;  %v5875_v29 = vor.u32 %v7120_v12, %v5874_v10  ;;  %v7811_v41 = vpack.c.b16 %v801_v24, %v801_v24  ;;  %2851 = vmatpush.bf16.msrb.mxu3 %v5507_v26  ;;  %v7815_v44 = vpack.c.b16 %v802_v28, %v802_v28 }
  0x71   :  { %v6130_v21 = vld [vmem:[#allocation5 + $0xbe0] sm:$0xf]  ;;  %v7184_v23 = vld [vmem:[#allocation5 + $0xbec] sm:$0xf0]  ;;  %v6003_v30 = vor.u32 %v7152_v14, %v6002_v13  ;;  %2857 = vmatpush.bf16.msra.mxu0 %v5747_v27 }
  0x72   :  { %v5730_v31 = vld [vmem:[#allocation5 + $0x8c0] sm:$0xf]  ;;  %v7084_v32 = vld [vmem:[#allocation5 + $0x8cc] sm:$0xf0]  ;;  %v6131_v34 = vor.u32 %v7184_v23, %v6130_v21  ;;  %2839 = vmatmul.bf16.vlgmr.msrb.gmra.mxu2 %v7809_v38  ;;  %2813 = vmatmul.bf16.vlgmr.msrb.gmra.mxu0 %v7811_v41 }
  0x73   :  { %v5858_v33 = vld [vmem:[#allocation5 + $0x9c0] sm:$0xf]  ;;  %v7116_v35 = vld [vmem:[#allocation5 + $0x9cc] sm:$0xf0]  ;;  %v5731_v43 = vor.u32 %v7084_v32, %v5730_v31  ;;  %2870 = vmatpush.bf16.msra.mxu1 %v5875_v29  ;;  %2883 = vmatpush.bf16.msra.mxu2 %v6003_v30 }
  0x74   :  { %v5986_v36 = vld [vmem:[#allocation5 + $0xac0] sm:$0xf]  ;;  %v7148_v37 = vld [vmem:[#allocation5 + $0xacc] sm:$0xf0]  ;;  %v5859_v45 = vor.u32 %v7116_v35, %v5858_v33  ;;  %2896 = vmatpush.bf16.msra.mxu3 %v6131_v34  ;;  %2826 = vmatmul.bf16.vlgmr.msrb.gmra.mxu1 %v7815_v44 }
  0x75   :  { %v6114_v39 = vld [vmem:[#allocation5 + $0xbc0] sm:$0xf]  ;;  %v7180_v40 = vld [vmem:[#allocation5 + $0xbcc] sm:$0xf0]  ;;  %v5987_v46 = vor.u32 %v7148_v37, %v5986_v36  ;;  %2852 = vmatmul.bf16.vlgmr.msrb.gmra.mxu3 %v7813_v42  ;;  %2858 = vmatpush.bf16.msra.mxu0 %v5731_v43 }
  0x76   :  { %v5714_v47 = vld [vmem:[#allocation5 + $0x8a0] sm:$0xf]  ;;  %v7080_v48 = vld [vmem:[#allocation5 + $0x8ac] sm:$0xf0]  ;;  %v6115_v50 = vor.u32 %v7180_v40, %v6114_v39 }
  0x77   :  { %v5842_v49 = vld [vmem:[#allocation5 + $0x9a0] sm:$0xf]  ;;  %v7112_v51 = vld [vmem:[#allocation5 + $0x9ac] sm:$0xf0]  ;;  %v5715_v56 = vor.u32 %v7080_v48, %v5714_v47  ;;  %2871 = vmatpush.bf16.msra.mxu1 %v5859_v45  ;;  %2884 = vmatpush.bf16.msra.mxu2 %v5987_v46 }
  0x78   :  { %v5970_v52 = vld [vmem:[#allocation5 + $0xaa0] sm:$0xf]  ;;  %v7144_v53 = vld [vmem:[#allocation5 + $0xaac] sm:$0xf0]  ;;  %v5843_v57 = vor.u32 %v7112_v51, %v5842_v49  ;;  %2897 = vmatpush.bf16.msra.mxu3 %v6115_v50 }
  0x79   :  { %v6098_v54 = vld [vmem:[#allocation5 + $0xba0] sm:$0xf]  ;;  %v7176_v55 = vld [vmem:[#allocation5 + $0xbac] sm:$0xf0]  ;;  %v5971_v58 = vor.u32 %v7144_v53, %v5970_v52  ;;  %2859 = vmatpush.bf16.msra.mxu0 %v5715_v56 }
  0x7a   :  { %v5698_v59 = vld [vmem:[#allocation5 + $0x880] sm:$0xf]  ;;  %v7076_v60 = vld [vmem:[#allocation5 + $0x88c] sm:$0xf0]  ;;  %v6099_v62 = vor.u32 %v7176_v55, %v6098_v54 }
  0x7b   :  { %v5826_v61 = vld [vmem:[#allocation5 + $0x980] sm:$0xf]  ;;  %v7108_v63 = vld [vmem:[#allocation5 + $0x98c] sm:$0xf0]  ;;  %v5699_v4 = vor.u32 %v7076_v60, %v5698_v59  ;;  %2872 = vmatpush.bf16.msra.mxu1 %v5843_v57  ;;  %2885 = vmatpush.bf16.msra.mxu2 %v5971_v58 }
  0x7c   :  { %v5954_v0 = vld [vmem:[#allocation5 + $0xa80] sm:$0xf]  ;;  %v7140_v1 = vld [vmem:[#allocation5 + $0xa8c] sm:$0xf0]  ;;  %v5827_v5 = vor.u32 %v7108_v63, %v5826_v61  ;;  %2898 = vmatpush.bf16.msra.mxu3 %v6099_v62  ;;  %v192_v61 = vld [vmem:[#allocation2 + $0x28] sm:$0xff] }
  0x7d   :  { %v6082_v2 = vld [vmem:[#allocation5 + $0xb80] sm:$0xf]  ;;  %v7172_v3 = vld [vmem:[#allocation5 + $0xb8c] sm:$0xf0]  ;;  %v5955_v6 = vor.u32 %v7140_v1, %v5954_v0  ;;  %2860 = vmatpush.bf16.msra.mxu0 %v5699_v4  ;;  %v6830_v62 = vld [vmem:[#allocation5 + $0xe4] sm:$0xf] }
  0x7e   :  { %v5682_v7 = vld [vmem:[#allocation5 + $0x860] sm:$0xf]  ;;  %v7072_v8 = vld [vmem:[#allocation5 + $0x86c] sm:$0xf0]  ;;  %v6083_v10 = vor.u32 %v7172_v3, %v6082_v2  ;;  %v4724_v63 = vld [vmem:[#allocation5 + $0xf0] sm:$0xf0] }
  0x7f   :  { %v5810_v9 = vld [vmem:[#allocation5 + $0x960] sm:$0xf]  ;;  %v7104_v11 = vld [vmem:[#allocation5 + $0x96c] sm:$0xf0]  ;;  %v5683_v16 = vor.u32 %v7072_v8, %v5682_v7  ;;  %2873 = vmatpush.bf16.msra.mxu1 %v5827_v5  ;;  %2886 = vmatpush.bf16.msra.mxu2 %v5955_v6  ;;  %v6862_v0 = vld [vmem:[#allocation5 + $0x1e4] sm:$0xf] }
  0x80   :  { %v5938_v12 = vld [vmem:[#allocation5 + $0xa60] sm:$0xf]  ;;  %v7136_v13 = vld [vmem:[#allocation5 + $0xa6c] sm:$0xf0]  ;;  %v5811_v17 = vor.u32 %v7104_v11, %v5810_v9  ;;  %2899 = vmatpush.bf16.msra.mxu3 %v6083_v10  ;;  %v4852_v2 = vld [vmem:[#allocation5 + $0x1f0] sm:$0xf0]  ;;  %v807_v10 = vunpack.c.l.b16 %v192_v61 }
  0x81   :  { %v6066_v14 = vld [vmem:[#allocation5 + $0xb60] sm:$0xf]  ;;  %v7168_v15 = vld [vmem:[#allocation5 + $0xb6c] sm:$0xf0]  ;;  %v5939_v21 = vor.u32 %v7136_v13, %v5938_v12  ;;  %2861 = vmatpush.bf16.msra.mxu0 %v5683_v16  ;;  %v6894_v3 = vld [vmem:[#allocation5 + $0x2e4] sm:$0xf]  ;;  %v4727_v13 = vor.u32 %v6830_v62, %v4724_v63 }
  0x82   :  { %v5666_v23 = vld [vmem:[#allocation5 + $0x840] sm:$0xf]  ;;  %v7068_v24 = vld [vmem:[#allocation5 + $0x84c] sm:$0xf0]  ;;  %v6067_v26 = vor.u32 %v7168_v15, %v6066_v14  ;;  %v4980_v4 = vld [vmem:[#allocation5 + $0x2f0] sm:$0xf0]  ;;  %v808_v14 = vunpack.c.h.b16 %v192_v61  ;;  %v4855_v15 = vor.u32 %v6862_v0, %v4852_v2 }
  0x83   :  { %v5794_v25 = vld [vmem:[#allocation5 + $0x940] sm:$0xf]  ;;  %v7100_v27 = vld [vmem:[#allocation5 + $0x94c] sm:$0xf0]  ;;  %v5667_v32 = vor.u32 %v7068_v24, %v5666_v23  ;;  %2874 = vmatpush.bf16.msra.mxu1 %v5811_v17  ;;  %2887 = vmatpush.bf16.msra.mxu2 %v5939_v21  ;;  %v6926_v8 = vld [vmem:[#allocation5 + $0x3e4] sm:$0xf]  ;;  %v4983_v16 = vor.u32 %v6894_v3, %v4980_v4 }
  0x84   :  { %v5922_v28 = vld [vmem:[#allocation5 + $0xa40] sm:$0xf]  ;;  %v7132_v29 = vld [vmem:[#allocation5 + $0xa4c] sm:$0xf0]  ;;  %v5795_v35 = vor.u32 %v7100_v27, %v5794_v25  ;;  %2900 = vmatpush.bf16.msra.mxu3 %v6067_v26  ;;  %v5108_v9 = vld [vmem:[#allocation5 + $0x3f0] sm:$0xf0] }
  0x85   :  { %v6050_v30 = vld [vmem:[#allocation5 + $0xb40] sm:$0xf]  ;;  %v7164_v31 = vld [vmem:[#allocation5 + $0xb4c] sm:$0xf0]  ;;  %v5923_v36 = vor.u32 %v7132_v29, %v5922_v28  ;;  %2862 = vmatpush.bf16.msra.mxu0 %v5667_v32  ;;  %v6826_v17 = vld [vmem:[#allocation5 + $0xc4] sm:$0xf]  ;;  %v5111_v24 = vor.u32 %v6926_v8, %v5108_v9  ;;  %v7823_v29 = vpack.c.b16 %v807_v10, %v807_v10 }
  0x86   :  { %v5650_v33 = vld [vmem:[#allocation5 + $0x820] sm:$0xf]  ;;  %v7064_v34 = vld [vmem:[#allocation5 + $0x82c] sm:$0xf0]  ;;  %v6051_v43 = vor.u32 %v7164_v31, %v6050_v30  ;;  %v4708_v21 = vld [vmem:[#allocation5 + $0xd0] sm:$0xf0] }
  0x87   :  { %v5778_v37 = vld [vmem:[#allocation5 + $0x920] sm:$0xf]  ;;  %v7096_v39 = vld [vmem:[#allocation5 + $0x92c] sm:$0xf0]  ;;  %v5651_v49 = vor.u32 %v7064_v34, %v5650_v33  ;;  %2875 = vmatpush.bf16.msra.mxu1 %v5795_v35  ;;  %2888 = vmatpush.bf16.msra.mxu2 %v5923_v36  ;;  %v6858_v23 = vld [vmem:[#allocation5 + $0x1c4] sm:$0xf]  ;;  %v7827_v33 = vpack.c.b16 %v808_v14, %v808_v14  ;;  %v4711_v34 = vor.u32 %v6826_v17, %v4708_v21 }
  0x88   :  { %v5906_v40 = vld [vmem:[#allocation5 + $0xa20] sm:$0xf]  ;;  %v7128_v45 = vld [vmem:[#allocation5 + $0xa2c] sm:$0xf0]  ;;  %v5779_v53 = vor.u32 %v7096_v39, %v5778_v37  ;;  %2901 = vmatpush.bf16.msra.mxu3 %v6051_v43  ;;  %v4836_v26 = vld [vmem:[#allocation5 + $0x1d0] sm:$0xf0] }
  0x89   :  { %v6034_v46 = vld [vmem:[#allocation5 + $0xb20] sm:$0xf]  ;;  %v7160_v47 = vld [vmem:[#allocation5 + $0xb2c] sm:$0xf0]  ;;  %v5907_v54 = vor.u32 %v7128_v45, %v5906_v40  ;;  %2863 = vmatpush.bf16.msra.mxu0 %v5651_v49  ;;  %v6890_v27 = vld [vmem:[#allocation5 + $0x2c4] sm:$0xf]  ;;  %v4839_v35 = vor.u32 %v6858_v23, %v4836_v26 }
  0x8a   :  { %v5634_v48 = vld [vmem:[#allocation5 + $0x800] sm:$0xf]  ;;  %v7060_v50 = vld [vmem:[#allocation5 + $0x80c] sm:$0xf0]  ;;  %v6035_v58 = vor.u32 %v7160_v47, %v6034_v46  ;;  %v4964_v28 = vld [vmem:[#allocation5 + $0x2d0] sm:$0xf0] }
  0x8b   :  { %v5762_v51 = vld [vmem:[#allocation5 + $0x900] sm:$0xf]  ;;  %v7092_v52 = vld [vmem:[#allocation5 + $0x90c] sm:$0xf0]  ;;  %v5635_v1 = vor.u32 %v7060_v50, %v5634_v48  ;;  %2876 = vmatpush.bf16.msra.mxu1 %v5779_v53  ;;  %2889 = vmatpush.bf16.msra.mxu2 %v5907_v54  ;;  %v6922_v31 = vld [vmem:[#allocation5 + $0x3c4] sm:$0xf]  ;;  %v4967_v36 = vor.u32 %v6890_v27, %v4964_v28 }
  0x8c   :  { %v5890_v55 = vld [vmem:[#allocation5 + $0xa00] sm:$0xf]  ;;  %v7124_v56 = vld [vmem:[#allocation5 + $0xa0c] sm:$0xf0]  ;;  %v5763_v6 = vor.u32 %v7092_v52, %v5762_v51  ;;  %2902 = vmatpush.bf16.msra.mxu3 %v6035_v58  ;;  %v5092_v32 = vld [vmem:[#allocation5 + $0x3d0] sm:$0xf0] }
  0x8d   :  { %v191_v57 = vld [vmem:[#allocation2 + $0x20] sm:$0xff]  ;;  %v6018_v59 = vld [vmem:[#allocation5 + $0xb00] sm:$0xf]  ;;  %v5891_v7 = vor.u32 %v7124_v56, %v5890_v55  ;;  %2864 = vmatpush.bf16.msra.mxu0 %v5635_v1  ;;  %v6822_v37 = vld [vmem:[#allocation5 + $0xa4] sm:$0xf]  ;;  %v5095_v43 = vor.u32 %v6922_v31, %v5092_v32 }
  0x8e   :  { %v7156_v60 = vld [vmem:[#allocation5 + $0xb0c] sm:$0xf0]  ;;  %v805_v5 = vunpack.c.l.b16 %v191_v57  ;;  %v806_v11 = vunpack.c.h.b16 %v191_v57  ;;  %v4692_v39 = vld [vmem:[#allocation5 + $0xb0] sm:$0xf0]  ;;  %v6854_v40 = vld [vmem:[#allocation5 + $0x1a4] sm:$0xf] }
  0x8f   :  { %v6019_v12 = vor.u32 %v7156_v60, %v6018_v59  ;;  %2877 = vmatpush.bf16.msra.mxu1 %v5763_v6  ;;  %2890 = vmatpush.bf16.msra.mxu2 %v5891_v7  ;;  %v4820_v45 = vld [vmem:[#allocation5 + $0x1b0] sm:$0xf0]  ;;  %v6886_v46 = vld [vmem:[#allocation5 + $0x2a4] sm:$0xf]  ;;  %v4695_v50 = vor.u32 %v6822_v37, %v4692_v39 }
  0x90   :  { %v7821_v25 = vpack.c.b16 %v805_v5, %v805_v5  ;;  %v7825_v30 = vpack.c.b16 %v806_v11, %v806_v11  ;;  %v4948_v47 = vld [vmem:[#allocation5 + $0x2b0] sm:$0xf0]  ;;  %v6918_v48 = vld [vmem:[#allocation5 + $0x3a4] sm:$0xf]  ;;  %v4823_v51 = vor.u32 %v6854_v40, %v4820_v45 }
  0x91   :  { %2903 = vmatpush.bf16.msra.mxu3 %v6019_v12  ;;  %2909 = vmatpush.bf16.msrb.mxu0 %v4727_v13  ;;  %v5076_v49 = vld [vmem:[#allocation5 + $0x3b0] sm:$0xf0]  ;;  %v4951_v52 = vor.u32 %v6886_v46, %v4948_v47  ;;  %v6818_v53 = vld [vmem:[#allocation5 + $0x84] sm:$0xf] }
  0x92   :  { %2865 = vmatmul.bf16.vlgmr.msra.gmra.mxu0 %v7821_v25  ;;  %2891 = vmatmul.bf16.vlgmr.msra.gmra.mxu2 %v7823_v29  ;;  %v4676_v54 = vld [vmem:[#allocation5 + $0x90] sm:$0xf0]  ;;  %v6850_v55 = vld [vmem:[#allocation5 + $0x184] sm:$0xf]  ;;  %v5079_v56 = vor.u32 %v6918_v48, %v5076_v49 }
  0x93   :  { %2922 = vmatpush.bf16.msrb.mxu1 %v4855_v15  ;;  %2935 = vmatpush.bf16.msrb.mxu2 %v4983_v16  ;;  %v4804_v57 = vld [vmem:[#allocation5 + $0x190] sm:$0xf0]  ;;  %v6882_v58 = vld [vmem:[#allocation5 + $0x284] sm:$0xf]  ;;  %v4679_v62 = vor.u32 %v6818_v53, %v4676_v54 }
  0x94   :  { %2878 = vmatmul.bf16.vlgmr.msra.gmra.mxu1 %v7825_v30  ;;  %2904 = vmatmul.bf16.vlgmr.msra.gmra.mxu3 %v7827_v33  ;;  %v4932_v59 = vld [vmem:[#allocation5 + $0x290] sm:$0xf0]  ;;  %v6914_v60 = vld [vmem:[#allocation5 + $0x384] sm:$0xf]  ;;  %v4807_v63 = vor.u32 %v6850_v55, %v4804_v57 }
  0x95   :  { %2948 = vmatpush.bf16.msrb.mxu3 %v5111_v24  ;;  %2910 = vmatpush.bf16.msrb.mxu0 %v4711_v34  ;;  %v5060_v61 = vld [vmem:[#allocation5 + $0x390] sm:$0xf0]  ;;  %v4935_v0 = vor.u32 %v6882_v58, %v4932_v59  ;;  %v6814_v1 = vld [vmem:[#allocation5 + $0x64] sm:$0xf] }
  0x96   :  { %v4660_v2 = vld [vmem:[#allocation5 + $0x70] sm:$0xf0]  ;;  %v6846_v3 = vld [vmem:[#allocation5 + $0x164] sm:$0xf]  ;;  %v5063_v4 = vor.u32 %v6914_v60, %v5060_v61 }
  0x97   :  { %2923 = vmatpush.bf16.msrb.mxu1 %v4839_v35  ;;  %2936 = vmatpush.bf16.msrb.mxu2 %v4967_v36  ;;  %v4788_v5 = vld [vmem:[#allocation5 + $0x170] sm:$0xf0]  ;;  %v6878_v6 = vld [vmem:[#allocation5 + $0x264] sm:$0xf]  ;;  %v4663_v10 = vor.u32 %v6814_v1, %v4660_v2 }
  0x98   :  { %v4916_v7 = vld [vmem:[#allocation5 + $0x270] sm:$0xf0]  ;;  %v6910_v8 = vld [vmem:[#allocation5 + $0x364] sm:$0xf]  ;;  %v4791_v11 = vor.u32 %v6846_v3, %v4788_v5 }
  0x99   :  { %2949 = vmatpush.bf16.msrb.mxu3 %v5095_v43  ;;  %2911 = vmatpush.bf16.msrb.mxu0 %v4695_v50  ;;  %v5044_v9 = vld [vmem:[#allocation5 + $0x370] sm:$0xf0]  ;;  %v4919_v12 = vor.u32 %v6878_v6, %v4916_v7  ;;  %v6810_v13 = vld [vmem:[#allocation5 + $0x44] sm:$0xf] }
  0x9a   :  { %v4644_v14 = vld [vmem:[#allocation5 + $0x50] sm:$0xf0]  ;;  %v6842_v15 = vld [vmem:[#allocation5 + $0x144] sm:$0xf]  ;;  %v5047_v16 = vor.u32 %v6910_v8, %v5044_v9 }
  0x9b   :  { %2924 = vmatpush.bf16.msrb.mxu1 %v4823_v51  ;;  %2937 = vmatpush.bf16.msrb.mxu2 %v4951_v52  ;;  %v4772_v17 = vld [vmem:[#allocation5 + $0x150] sm:$0xf0]  ;;  %v6874_v21 = vld [vmem:[#allocation5 + $0x244] sm:$0xf]  ;;  %v4647_v27 = vor.u32 %v6810_v13, %v4644_v14 }
  0x9c   :  { %v4900_v23 = vld [vmem:[#allocation5 + $0x250] sm:$0xf0]  ;;  %v6906_v24 = vld [vmem:[#allocation5 + $0x344] sm:$0xf]  ;;  %v4775_v28 = vor.u32 %v6842_v15, %v4772_v17 }
  0x9d   :  { %2950 = vmatpush.bf16.msrb.mxu3 %v5079_v56  ;;  %2912 = vmatpush.bf16.msrb.mxu0 %v4679_v62  ;;  %v5028_v26 = vld [vmem:[#allocation5 + $0x350] sm:$0xf0]  ;;  %v4903_v31 = vor.u32 %v6874_v21, %v4900_v23  ;;  %v6806_v32 = vld [vmem:[#allocation5 + $0x24] sm:$0xf] }
  0x9e   :  { %v4628_v34 = vld [vmem:[#allocation5 + $0x30] sm:$0xf0]  ;;  %v6838_v35 = vld [vmem:[#allocation5 + $0x124] sm:$0xf]  ;;  %v5031_v36 = vor.u32 %v6906_v24, %v5028_v26 }
  0x9f   :  { %2925 = vmatpush.bf16.msrb.mxu1 %v4807_v63  ;;  %2938 = vmatpush.bf16.msrb.mxu2 %v4935_v0  ;;  %v4756_v37 = vld [vmem:[#allocation5 + $0x130] sm:$0xf0]  ;;  %v6870_v39 = vld [vmem:[#allocation5 + $0x224] sm:$0xf]  ;;  %v4631_v46 = vor.u32 %v6806_v32, %v4628_v34 }
  0xa0   :  { %v4884_v40 = vld [vmem:[#allocation5 + $0x230] sm:$0xf0]  ;;  %v6902_v43 = vld [vmem:[#allocation5 + $0x324] sm:$0xf]  ;;  %v4759_v49 = vor.u32 %v6838_v35, %v4756_v37 }
  0xa1   :  { %2951 = vmatpush.bf16.msrb.mxu3 %v5063_v4  ;;  %2913 = vmatpush.bf16.msrb.mxu0 %v4663_v10  ;;  %v5012_v45 = vld [vmem:[#allocation5 + $0x330] sm:$0xf0]  ;;  %v6802_v47 = vld [vmem:[#allocation5 + $0x4] sm:$0xf]  ;;  %v4887_v50 = vor.u32 %v6870_v39, %v4884_v40 }
  0xa2   :  { %v4612_v48 = vld [vmem:[#allocation5 + $0x10] sm:$0xf0]  ;;  %v6834_v51 = vld [vmem:[#allocation5 + $0x104] sm:$0xf]  ;;  %v5015_v54 = vor.u32 %v6902_v43, %v5012_v45 }
  0xa3   :  { %2926 = vmatpush.bf16.msrb.mxu1 %v4791_v11  ;;  %2939 = vmatpush.bf16.msrb.mxu2 %v4919_v12  ;;  %v4740_v52 = vld [vmem:[#allocation5 + $0x110] sm:$0xf0]  ;;  %v6866_v53 = vld [vmem:[#allocation5 + $0x204] sm:$0xf]  ;;  %v4615_v61 = vor.u32 %v6802_v47, %v4612_v48 }
  0xa4   :  { %v4868_v55 = vld [vmem:[#allocation5 + $0x210] sm:$0xf0]  ;;  %v6898_v56 = vld [vmem:[#allocation5 + $0x304] sm:$0xf]  ;;  %v4743_v1 = vor.u32 %v6834_v51, %v4740_v52 }
  0xa5   :  { %2952 = vmatpush.bf16.msrb.mxu3 %v5047_v16  ;;  %2914 = vmatpush.bf16.msrb.mxu0 %v4647_v27  ;;  %v4996_v57 = vld [vmem:[#allocation5 + $0x310] sm:$0xf0]  ;;  %v6958_v58 = vld [vmem:[#allocation5 + $0x4e4] sm:$0xf]  ;;  %v4871_v2 = vor.u32 %v6866_v53, %v4868_v55 }
  0xa6   :  { %v5236_v59 = vld [vmem:[#allocation5 + $0x4f0] sm:$0xf0]  ;;  %v6990_v60 = vld [vmem:[#allocation5 + $0x5e4] sm:$0xf]  ;;  %v4999_v5 = vor.u32 %v6898_v56, %v4996_v57 }
  0xa7   :  { %2927 = vmatpush.bf16.msrb.mxu1 %v4775_v28  ;;  %2940 = vmatpush.bf16.msrb.mxu2 %v4903_v31  ;;  %v5364_v62 = vld [vmem:[#allocation5 + $0x5f0] sm:$0xf0]  ;;  %v7022_v63 = vld [vmem:[#allocation5 + $0x6e4] sm:$0xf]  ;;  %v5239_v6 = vor.u32 %v6958_v58, %v5236_v59 }
  0xa8   :  { %v5492_v0 = vld [vmem:[#allocation5 + $0x6f0] sm:$0xf0]  ;;  %v7054_v3 = vld [vmem:[#allocation5 + $0x7e4] sm:$0xf]  ;;  %v5367_v7 = vor.u32 %v6990_v60, %v5364_v62 }
  0xa9   :  { %2953 = vmatpush.bf16.msrb.mxu3 %v5031_v36  ;;  %2915 = vmatpush.bf16.msrb.mxu0 %v4631_v46  ;;  %v5620_v4 = vld [vmem:[#allocation5 + $0x7f0] sm:$0xf0]  ;;  %v5495_v8 = vor.u32 %v7022_v63, %v5492_v0  ;;  %v6954_v9 = vld [vmem:[#allocation5 + $0x4c4] sm:$0xf] }
  0xaa   :  { %v5220_v10 = vld [vmem:[#allocation5 + $0x4d0] sm:$0xf0]  ;;  %v6986_v11 = vld [vmem:[#allocation5 + $0x5c4] sm:$0xf]  ;;  %v5623_v12 = vor.u32 %v7054_v3, %v5620_v4 }
  0xab   :  { %2928 = vmatpush.bf16.msrb.mxu1 %v4759_v49  ;;  %2941 = vmatpush.bf16.msrb.mxu2 %v4887_v50  ;;  %v5348_v13 = vld [vmem:[#allocation5 + $0x5d0] sm:$0xf0]  ;;  %v7018_v14 = vld [vmem:[#allocation5 + $0x6c4] sm:$0xf]  ;;  %v5223_v21 = vor.u32 %v6954_v9, %v5220_v10 }
  0xac   :  { %v5476_v15 = vld [vmem:[#allocation5 + $0x6d0] sm:$0xf0]  ;;  %v7050_v16 = vld [vmem:[#allocation5 + $0x7c4] sm:$0xf]  ;;  %v5351_v23 = vor.u32 %v6986_v11, %v5348_v13 }
  0xad   :  { %2954 = vmatpush.bf16.msrb.mxu3 %v5015_v54  ;;  %2916 = vmatpush.bf16.msrb.mxu0 %v4615_v61  ;;  %v5604_v17 = vld [vmem:[#allocation5 + $0x7d0] sm:$0xf0]  ;;  %v5479_v24 = vor.u32 %v7018_v14, %v5476_v15  ;;  %v6950_v26 = vld [vmem:[#allocation5 + $0x4a4] sm:$0xf] }
  0xae   :  { %v5204_v27 = vld [vmem:[#allocation5 + $0x4b0] sm:$0xf0]  ;;  %v6982_v28 = vld [vmem:[#allocation5 + $0x5a4] sm:$0xf]  ;;  %v5607_v31 = vor.u32 %v7050_v16, %v5604_v17 }
  0xaf   :  { %2929 = vmatpush.bf16.msrb.mxu1 %v4743_v1  ;;  %2942 = vmatpush.bf16.msrb.mxu2 %v4871_v2  ;;  %v5332_v32 = vld [vmem:[#allocation5 + $0x5b0] sm:$0xf0]  ;;  %v7014_v34 = vld [vmem:[#allocation5 + $0x6a4] sm:$0xf]  ;;  %v5207_v39 = vor.u32 %v6950_v26, %v5204_v27 }
  0xb0   :  { %v5460_v35 = vld [vmem:[#allocation5 + $0x6b0] sm:$0xf0]  ;;  %v7046_v36 = vld [vmem:[#allocation5 + $0x7a4] sm:$0xf]  ;;  %2917 = vmatmul.bf16.vlgmr.msrb.gmra.mxu0 %v7799_v19  ;;  %v5335_v40 = vor.u32 %v6982_v28, %v5332_v32 }
  0xb1   :  { %2955 = vmatpush.bf16.msrb.mxu3 %v4999_v5  ;;  %2961 = vmatpush.bf16.msra.mxu0 %v5239_v6  ;;  %v5588_v37 = vld [vmem:[#allocation5 + $0x7b0] sm:$0xf0]  ;;  %v5463_v43 = vor.u32 %v7014_v34, %v5460_v35  ;;  %v6946_v45 = vld [vmem:[#allocation5 + $0x484] sm:$0xf] }
  0xb2   :  { %2943 = vmatmul.bf16.vlgmr.msrb.gmra.mxu2 %v7797_v18  ;;  %2930 = vmatmul.bf16.vlgmr.msrb.gmra.mxu1 %v7803_v22  ;;  %v5188_v46 = vld [vmem:[#allocation5 + $0x490] sm:$0xf0]  ;;  %v6978_v47 = vld [vmem:[#allocation5 + $0x584] sm:$0xf]  ;;  %v5591_v48 = vor.u32 %v7046_v36, %v5588_v37 }
  0xb3   :  { %2974 = vmatpush.bf16.msra.mxu1 %v5367_v7  ;;  %2987 = vmatpush.bf16.msra.mxu2 %v5495_v8  ;;  %v5316_v49 = vld [vmem:[#allocation5 + $0x590] sm:$0xf0]  ;;  %v7010_v50 = vld [vmem:[#allocation5 + $0x684] sm:$0xf]  ;;  %v5191_v54 = vor.u32 %v6946_v45, %v5188_v46 }
  0xb4   :  { %2956 = vmatmul.bf16.vlgmr.msrb.gmra.mxu3 %v7801_v20  ;;  %v5444_v51 = vld [vmem:[#allocation5 + $0x690] sm:$0xf0]  ;;  %v7042_v52 = vld [vmem:[#allocation5 + $0x784] sm:$0xf]  ;;  %v5319_v55 = vor.u32 %v6978_v47, %v5316_v49 }
  0xb5   :  { %3000 = vmatpush.bf16.msra.mxu3 %v5623_v12  ;;  %2962 = vmatpush.bf16.msra.mxu0 %v5223_v21  ;;  %v5572_v53 = vld [vmem:[#allocation5 + $0x790] sm:$0xf0]  ;;  %v5447_v56 = vor.u32 %v7010_v50, %v5444_v51  ;;  %v6942_v57 = vld [vmem:[#allocation5 + $0x464] sm:$0xf] }
  0xb6   :  { %v5172_v58 = vld [vmem:[#allocation5 + $0x470] sm:$0xf0]  ;;  %v6974_v59 = vld [vmem:[#allocation5 + $0x564] sm:$0xf]  ;;  %v5575_v60 = vor.u32 %v7042_v52, %v5572_v53 }
  0xb7   :  { %2975 = vmatpush.bf16.msra.mxu1 %v5351_v23  ;;  %2988 = vmatpush.bf16.msra.mxu2 %v5479_v24  ;;  %v5300_v61 = vld [vmem:[#allocation5 + $0x570] sm:$0xf0]  ;;  %v7006_v62 = vld [vmem:[#allocation5 + $0x664] sm:$0xf]  ;;  %v5175_v2 = vor.u32 %v6942_v57, %v5172_v58 }
  0xb8   :  { %v5428_v63 = vld [vmem:[#allocation5 + $0x670] sm:$0xf0]  ;;  %v7038_v0 = vld [vmem:[#allocation5 + $0x764] sm:$0xf]  ;;  %v5303_v3 = vor.u32 %v6974_v59, %v5300_v61 }
  0xb9   :  { %3001 = vmatpush.bf16.msra.mxu3 %v5607_v31  ;;  %2963 = vmatpush.bf16.msra.mxu0 %v5207_v39  ;;  %v5556_v1 = vld [vmem:[#allocation5 + $0x770] sm:$0xf0]  ;;  %v5431_v4 = vor.u32 %v7006_v62, %v5428_v63  ;;  %v6938_v5 = vld [vmem:[#allocation5 + $0x444] sm:$0xf] }
  0xba   :  { %v5156_v6 = vld [vmem:[#allocation5 + $0x450] sm:$0xf0]  ;;  %v6970_v7 = vld [vmem:[#allocation5 + $0x544] sm:$0xf]  ;;  %v5559_v8 = vor.u32 %v7038_v0, %v5556_v1 }
  0xbb   :  { %2976 = vmatpush.bf16.msra.mxu1 %v5335_v40  ;;  %2989 = vmatpush.bf16.msra.mxu2 %v5463_v43  ;;  %v5284_v9 = vld [vmem:[#allocation5 + $0x550] sm:$0xf0]  ;;  %v7002_v10 = vld [vmem:[#allocation5 + $0x644] sm:$0xf]  ;;  %v5159_v14 = vor.u32 %v6938_v5, %v5156_v6 }
  0xbc   :  { %v5412_v11 = vld [vmem:[#allocation5 + $0x650] sm:$0xf0]  ;;  %v7034_v12 = vld [vmem:[#allocation5 + $0x744] sm:$0xf]  ;;  %v5287_v15 = vor.u32 %v6970_v7, %v5284_v9 }
  0xbd   :  { %3002 = vmatpush.bf16.msra.mxu3 %v5591_v48  ;;  %2964 = vmatpush.bf16.msra.mxu0 %v5191_v54  ;;  %v5540_v13 = vld [vmem:[#allocation5 + $0x750] sm:$0xf0]  ;;  %v5415_v16 = vor.u32 %v7002_v10, %v5412_v11  ;;  %v6934_v17 = vld [vmem:[#allocation5 + $0x424] sm:$0xf] }
  0xbe   :  { %v5140_v21 = vld [vmem:[#allocation5 + $0x430] sm:$0xf0]  ;;  %v6966_v23 = vld [vmem:[#allocation5 + $0x524] sm:$0xf]  ;;  %v5543_v24 = vor.u32 %v7034_v12, %v5540_v13 }
  0xbf   :  { %2977 = vmatpush.bf16.msra.mxu1 %v5319_v55  ;;  %2990 = vmatpush.bf16.msra.mxu2 %v5447_v56  ;;  %v5268_v26 = vld [vmem:[#allocation5 + $0x530] sm:$0xf0]  ;;  %v6998_v27 = vld [vmem:[#allocation5 + $0x624] sm:$0xf]  ;;  %v5143_v34 = vor.u32 %v6934_v17, %v5140_v21 }
  0xc0   :  { %v5396_v28 = vld [vmem:[#allocation5 + $0x630] sm:$0xf0]  ;;  %v7030_v31 = vld [vmem:[#allocation5 + $0x724] sm:$0xf]  ;;  %v5271_v37 = vor.u32 %v6966_v23, %v5268_v26 }
  0xc1   :  { %3003 = vmatpush.bf16.msra.mxu3 %v5575_v60  ;;  %2965 = vmatpush.bf16.msra.mxu0 %v5175_v2  ;;  %v5524_v32 = vld [vmem:[#allocation5 + $0x730] sm:$0xf0]  ;;  %v6930_v35 = vld [vmem:[#allocation5 + $0x404] sm:$0xf]  ;;  %v5399_v39 = vor.u32 %v6998_v27, %v5396_v28 }
  0xc2   :  { %v5124_v36 = vld [vmem:[#allocation5 + $0x410] sm:$0xf0]  ;;  %v6962_v40 = vld [vmem:[#allocation5 + $0x504] sm:$0xf]  ;;  %v5527_v46 = vor.u32 %v7030_v31, %v5524_v32 }
  0xc3   :  { %2978 = vmatpush.bf16.msra.mxu1 %v5303_v3  ;;  %2991 = vmatpush.bf16.msra.mxu2 %v5431_v4  ;;  %v5252_v43 = vld [vmem:[#allocation5 + $0x510] sm:$0xf0]  ;;  %v6994_v45 = vld [vmem:[#allocation5 + $0x604] sm:$0xf]  ;;  %v5127_v53 = vor.u32 %v6930_v35, %v5124_v36 }
  0xc4   :  { %v5380_v47 = vld [vmem:[#allocation5 + $0x610] sm:$0xf0]  ;;  %v7026_v48 = vld [vmem:[#allocation5 + $0x704] sm:$0xf]  ;;  %v5255_v57 = vor.u32 %v6962_v40, %v5252_v43 }
  0xc5   :  { %3004 = vmatpush.bf16.msra.mxu3 %v5559_v8  ;;  %2966 = vmatpush.bf16.msra.mxu0 %v5159_v14  ;;  %v5508_v49 = vld [vmem:[#allocation5 + $0x710] sm:$0xf0]  ;;  %v7086_v50 = vld [vmem:[#allocation5 + $0x8e4] sm:$0xf]  ;;  %v5383_v58 = vor.u32 %v6994_v45, %v5380_v47 }
  0xc6   :  { %v5748_v51 = vld [vmem:[#allocation5 + $0x8f0] sm:$0xf0]  ;;  %v7118_v52 = vld [vmem:[#allocation5 + $0x9e4] sm:$0xf]  ;;  %v5511_v61 = vor.u32 %v7026_v48, %v5508_v49 }
  0xc7   :  { %2979 = vmatpush.bf16.msra.mxu1 %v5287_v15  ;;  %2992 = vmatpush.bf16.msra.mxu2 %v5415_v16  ;;  %v5876_v54 = vld [vmem:[#allocation5 + $0x9f0] sm:$0xf0]  ;;  %v7150_v55 = vld [vmem:[#allocation5 + $0xae4] sm:$0xf]  ;;  %v5751_v62 = vor.u32 %v7086_v50, %v5748_v51 }
  0xc8   :  { %v6004_v56 = vld [vmem:[#allocation5 + $0xaf0] sm:$0xf0]  ;;  %v7182_v59 = vld [vmem:[#allocation5 + $0xbe4] sm:$0xf]  ;;  %v5879_v63 = vor.u32 %v7118_v52, %v5876_v54 }
  0xc9   :  { %3005 = vmatpush.bf16.msra.mxu3 %v5543_v24  ;;  %2967 = vmatpush.bf16.msra.mxu0 %v5143_v34  ;;  %v6132_v60 = vld [vmem:[#allocation5 + $0xbf0] sm:$0xf0]  ;;  %v6007_v0 = vor.u32 %v7150_v55, %v6004_v56  ;;  %v7082_v1 = vld [vmem:[#allocation5 + $0x8c4] sm:$0xf]  ;;  %v7841_v56 = vld [vmem:[#allocation7] sm:$0xf] }
  0xca   :  { %v5732_v2 = vld [vmem:[#allocation5 + $0x8d0] sm:$0xf0]  ;;  %v7114_v3 = vld [vmem:[#allocation5 + $0x9c4] sm:$0xf]  ;;  %v6135_v4 = vor.u32 %v7182_v59, %v6132_v60 }
  0xcb   :  { %2980 = vmatpush.bf16.msra.mxu1 %v5271_v37  ;;  %2993 = vmatpush.bf16.msra.mxu2 %v5399_v39  ;;  %v5860_v5 = vld [vmem:[#allocation5 + $0x9d0] sm:$0xf0]  ;;  %v7146_v6 = vld [vmem:[#allocation5 + $0xac4] sm:$0xf]  ;;  %v5735_v10 = vor.u32 %v7082_v1, %v5732_v2  ;;  %v783_v1 = vperm.slane %v7841_v56, 0 }
  0xcc   :  { %v5988_v7 = vld [vmem:[#allocation5 + $0xad0] sm:$0xf0]  ;;  %v7178_v8 = vld [vmem:[#allocation5 + $0xbc4] sm:$0xf]  ;;  %v5863_v11 = vor.u32 %v7114_v3, %v5860_v5 }
  0xcd   :  { %3006 = vmatpush.bf16.msra.mxu3 %v5527_v46  ;;  %2968 = vmatpush.bf16.msra.mxu0 %v5127_v53  ;;  %v6116_v9 = vld [vmem:[#allocation5 + $0xbd0] sm:$0xf0]  ;;  %v5991_v12 = vor.u32 %v7146_v6, %v5988_v7  ;;  %v7078_v13 = vld [vmem:[#allocation5 + $0x8a4] sm:$0xf] }
  0xce   :  { %v5716_v14 = vld [vmem:[#allocation5 + $0x8b0] sm:$0xf0]  ;;  %v7110_v15 = vld [vmem:[#allocation5 + $0x9a4] sm:$0xf]  ;;  %v6119_v16 = vor.u32 %v7178_v8, %v6116_v9 }
  0xcf   :  { %2981 = vmatpush.bf16.msra.mxu1 %v5255_v57  ;;  %2994 = vmatpush.bf16.msra.mxu2 %v5383_v58  ;;  %v5844_v17 = vld [vmem:[#allocation5 + $0x9b0] sm:$0xf0]  ;;  %v7142_v21 = vld [vmem:[#allocation5 + $0xaa4] sm:$0xf]  ;;  %v5719_v27 = vor.u32 %v7078_v13, %v5716_v14 }
  0xd0   :  { %v5972_v23 = vld [vmem:[#allocation5 + $0xab0] sm:$0xf0]  ;;  %v7174_v24 = vld [vmem:[#allocation5 + $0xba4] sm:$0xf]  ;;  %2969 = vmatmul.bf16.vlgmr.msra.gmra.mxu0 %v7811_v41  ;;  %v5847_v28 = vor.u32 %v7110_v15, %v5844_v17 }
  0xd1   :  { %3007 = vmatpush.bf16.msra.mxu3 %v5511_v61  ;;  %3013 = vmatpush.bf16.msrb.mxu0 %v5751_v62  ;;  %v6100_v26 = vld [vmem:[#allocation5 + $0xbb0] sm:$0xf0]  ;;  %v5975_v31 = vor.u32 %v7142_v21, %v5972_v23  ;;  %v7074_v32 = vld [vmem:[#allocation5 + $0x884] sm:$0xf] }
  0xd2   :  { %2995 = vmatmul.bf16.vlgmr.msra.gmra.mxu2 %v7809_v38  ;;  %2982 = vmatmul.bf16.vlgmr.msra.gmra.mxu1 %v7815_v44  ;;  %v5700_v34 = vld [vmem:[#allocation5 + $0x890] sm:$0xf0]  ;;  %v7106_v35 = vld [vmem:[#allocation5 + $0x984] sm:$0xf]  ;;  %v6103_v36 = vor.u32 %v7174_v24, %v6100_v26 }
  0xd3   :  { %3026 = vmatpush.bf16.msrb.mxu1 %v5879_v63  ;;  %3039 = vmatpush.bf16.msrb.mxu2 %v6007_v0  ;;  %v5828_v37 = vld [vmem:[#allocation5 + $0x990] sm:$0xf0]  ;;  %v7138_v39 = vld [vmem:[#allocation5 + $0xa84] sm:$0xf]  ;;  %v5703_v46 = vor.u32 %v7074_v32, %v5700_v34 }
  0xd4   :  { %3008 = vmatmul.bf16.vlgmr.msra.gmra.mxu3 %v7813_v42  ;;  %v5956_v40 = vld [vmem:[#allocation5 + $0xa90] sm:$0xf0]  ;;  %v7170_v43 = vld [vmem:[#allocation5 + $0xb84] sm:$0xf]  ;;  %v5831_v48 = vor.u32 %v7106_v35, %v5828_v37 }
  0xd5   :  { %3052 = vmatpush.bf16.msrb.mxu3 %v6135_v4  ;;  %3014 = vmatpush.bf16.msrb.mxu0 %v5735_v10  ;;  %v6084_v45 = vld [vmem:[#allocation5 + $0xb90] sm:$0xf0]  ;;  %v7070_v47 = vld [vmem:[#allocation5 + $0x864] sm:$0xf]  ;;  %v5959_v49 = vor.u32 %v7138_v39, %v5956_v40 }
  0xd6   :  { %v5684_v50 = vld [vmem:[#allocation5 + $0x870] sm:$0xf0]  ;;  %v7102_v51 = vld [vmem:[#allocation5 + $0x964] sm:$0xf]  ;;  %v6087_v53 = vor.u32 %v7170_v43, %v6084_v45  ;;  %v2788_v43 = vpop.f32.mrf.mxu2 }
  0xd7   :  { %3027 = vmatpush.bf16.msrb.mxu1 %v5863_v11  ;;  %3040 = vmatpush.bf16.msrb.mxu2 %v5991_v12  ;;  %v5812_v52 = vld [vmem:[#allocation5 + $0x970] sm:$0xf0]  ;;  %v7134_v54 = vld [vmem:[#allocation5 + $0xa64] sm:$0xf]  ;;  %v5687_v59 = vor.u32 %v7070_v47, %v5684_v50  ;;  %v2801_v50 = vpop.f32.mrf.mxu3 }
  0xd8   :  { %v5940_v55 = vld [vmem:[#allocation5 + $0xa70] sm:$0xf0]  ;;  %v7166_v57 = vld [vmem:[#allocation5 + $0xb64] sm:$0xf]  ;;  %v5815_v61 = vor.u32 %v7102_v51, %v5812_v52  ;;  %v4730_v51 = vld [vmem:[#allocation5 + $0xe8] sm:$0xf] }
  0xd9   :  { %3053 = vmatpush.bf16.msrb.mxu3 %v6119_v16  ;;  %3015 = vmatpush.bf16.msrb.mxu0 %v5719_v27  ;;  %v6068_v58 = vld [vmem:[#allocation5 + $0xb70] sm:$0xf0]  ;;  %v7066_v60 = vld [vmem:[#allocation5 + $0x844] sm:$0xf]  ;;  %v5943_v62 = vor.u32 %v7134_v54, %v5940_v55  ;;  %v6833_v52 = vld [vmem:[#allocation5 + $0xf4] sm:$0xf0] }
  0xda   :  { %v5668_v63 = vld [vmem:[#allocation5 + $0x850] sm:$0xf0]  ;;  %v7098_v0 = vld [vmem:[#allocation5 + $0x944] sm:$0xf]  ;;  %v6071_v2 = vor.u32 %v7166_v57, %v6068_v58  ;;  %v6865_v55 = vld [vmem:[#allocation5 + $0x1f4] sm:$0xf0] }
  0xdb   :  { %3028 = vmatpush.bf16.msrb.mxu1 %v5847_v28  ;;  %3041 = vmatpush.bf16.msrb.mxu2 %v5975_v31  ;;  %v5796_v3 = vld [vmem:[#allocation5 + $0x950] sm:$0xf0]  ;;  %v7130_v4 = vld [vmem:[#allocation5 + $0xa44] sm:$0xf]  ;;  %v5671_v8 = vor.u32 %v7066_v60, %v5668_v63  ;;  %v2762_v9 = vpop.f32.mrf.mxu0  ;;  %v2775_v16 = vpop.f32.mrf.mxu1  ;;  %v4986_v57 = vld [vmem:[#allocation5 + $0x2e8] sm:$0xf] }
  0xdc   :  { %v5924_v5 = vld [vmem:[#allocation5 + $0xa50] sm:$0xf0]  ;;  %v7162_v6 = vld [vmem:[#allocation5 + $0xb44] sm:$0xf]  ;;  %v5799_v10 = vor.u32 %v7098_v0, %v5796_v3  ;;  %v2763_v15 = vadd.f32 %v2762_v9, %v783_v1  ;;  %v6897_v58 = vld [vmem:[#allocation5 + $0x2f4] sm:$0xf0]  ;;  %v4731_v3 = vor.u32 %v6833_v52, %v4730_v51 }
  0xdd   :  { %3054 = vmatpush.bf16.msrb.mxu3 %v6103_v36  ;;  %3016 = vmatpush.bf16.msrb.mxu0 %v5703_v46  ;;  %v6052_v7 = vld [vmem:[#allocation5 + $0xb50] sm:$0xf0]  ;;  %v5927_v11 = vor.u32 %v7130_v4, %v5924_v5  ;;  %v7062_v12 = vld [vmem:[#allocation5 + $0x824] sm:$0xf]  ;;  %v5114_v63 = vld [vmem:[#allocation5 + $0x3e8] sm:$0xf]  ;;  %v4987_v5 = vor.u32 %v6897_v58, %v4986_v57 }
  0xde   :  { %v5652_v13 = vld [vmem:[#allocation5 + $0x830] sm:$0xf0]  ;;  %v7094_v14 = vld [vmem:[#allocation5 + $0x924] sm:$0xf]  ;;  %v6055_v17 = vor.u32 %v7162_v6, %v6052_v7  ;;  %v2776_v28 = vadd.f32 %v2775_v16, %v2763_v15  ;;  %v6929_v0 = vld [vmem:[#allocation5 + $0x3f4] sm:$0xf0]  ;;  %v2790_v15 = vpop.f32.mrf.mxu2 }
  0xdf   :  { %3029 = vmatpush.bf16.msrb.mxu1 %v5831_v48  ;;  %3042 = vmatpush.bf16.msrb.mxu2 %v5959_v49  ;;  %v5780_v21 = vld [vmem:[#allocation5 + $0x930] sm:$0xf0]  ;;  %v7126_v23 = vld [vmem:[#allocation5 + $0xa24] sm:$0xf]  ;;  %v5655_v31 = vor.u32 %v7062_v12, %v5652_v13  ;;  %v4714_v6 = vld [vmem:[#allocation5 + $0xc8] sm:$0xf]  ;;  %v5115_v9 = vor.u32 %v6929_v0, %v5114_v63 }
  0xe0   :  { %v5908_v24 = vld [vmem:[#allocation5 + $0xa30] sm:$0xf0]  ;;  %v7158_v26 = vld [vmem:[#allocation5 + $0xb24] sm:$0xf]  ;;  %v5783_v35 = vor.u32 %v7094_v14, %v5780_v21  ;;  %v2789_v49 = vadd.f32 %v2788_v43, %v2776_v28  ;;  %v6829_v7 = vld [vmem:[#allocation5 + $0xd4] sm:$0xf0] }
  0xe1   :  { %3055 = vmatpush.bf16.msrb.mxu3 %v6087_v53  ;;  %3017 = vmatpush.bf16.msrb.mxu0 %v5687_v59  ;;  %v6036_v27 = vld [vmem:[#allocation5 + $0xb30] sm:$0xf0]  ;;  %v7058_v32 = vld [vmem:[#allocation5 + $0x804] sm:$0xf]  ;;  %v5911_v36 = vor.u32 %v7126_v23, %v5908_v24  ;;  %v4858_v53 = vld [vmem:[#allocation5 + $0x1e8] sm:$0xf]  ;;  %v4715_v16 = vor.u32 %v6829_v7, %v4714_v6 }
  0xe2   :  { %v5636_v34 = vld [vmem:[#allocation5 + $0x810] sm:$0xf0]  ;;  %v7090_v37 = vld [vmem:[#allocation5 + $0x904] sm:$0xf]  ;;  %v6039_v45 = vor.u32 %v7158_v26, %v6036_v27  ;;  %v7844_v59 = vadd.f32 %v2801_v50, %v2789_v49  ;;  %v4859_v4 = vor.u32 %v6865_v55, %v4858_v53  ;;  %v6893_v12 = vld [vmem:[#allocation5 + $0x2d4] sm:$0xf0] }
  0xe3   :  { %3030 = vmatpush.bf16.msrb.mxu1 %v5815_v61  ;;  %3043 = vmatpush.bf16.msrb.mxu2 %v5943_v62  ;;  %v5764_v39 = vld [vmem:[#allocation5 + $0x910] sm:$0xf0]  ;;  %v7122_v40 = vld [vmem:[#allocation5 + $0xa04] sm:$0xf]  ;;  %v5639_v54 = vor.u32 %v7058_v32, %v5636_v34  ;;  %v2764_v60 = vpop.f32.mrf.mxu0  ;;  %v2777_v1 = vpop.f32.mrf.mxu1  ;;  %v5098_v13 = vld [vmem:[#allocation5 + $0x3c8] sm:$0xf] }
  0xe4   :  { %v5892_v46 = vld [vmem:[#allocation5 + $0xa10] sm:$0xf0]  ;;  %v7154_v47 = vld [vmem:[#allocation5 + $0xb04] sm:$0xf]  ;;  %v5767_v61 = vor.u32 %v7090_v37, %v5764_v39  ;;  %v6925_v14 = vld [vmem:[#allocation5 + $0x3d4] sm:$0xf0] }
  0xe5   :  { %3056 = vmatpush.bf16.msrb.mxu3 %v6071_v2  ;;  %3018 = vmatpush.bf16.msrb.mxu0 %v5671_v8  ;;  %v6020_v48 = vld [vmem:[#allocation5 + $0xb10] sm:$0xf0]  ;;  %v5895_v62 = vor.u32 %v7122_v40, %v5892_v46  ;;  %v4842_v8 = vld [vmem:[#allocation5 + $0x1c8] sm:$0xf]  ;;  %v6825_v26 = vld [vmem:[#allocation5 + $0xb4] sm:$0xf0]  ;;  %v5099_v28 = vor.u32 %v6925_v14, %v5098_v13 }
  0xe6   :  { %v6023_v2 = vor.u32 %v7154_v47, %v6020_v48  ;;  %v4698_v24 = vld [vmem:[#allocation5 + $0xa8] sm:$0xf]  ;;  %v6889_v34 = vld [vmem:[#allocation5 + $0x2b4] sm:$0xf0] }
  0xe7   :  { %3031 = vmatpush.bf16.msrb.mxu1 %v5799_v10  ;;  %3044 = vmatpush.bf16.msrb.mxu2 %v5927_v11  ;;  %v6861_v10 = vld [vmem:[#allocation5 + $0x1d4] sm:$0xf0]  ;;  %v4970_v11 = vld [vmem:[#allocation5 + $0x2c8] sm:$0xf]  ;;  %v4699_v37 = vor.u32 %v6825_v26, %v4698_v24 }
  0xe8   :  { %v4843_v21 = vor.u32 %v6861_v10, %v4842_v8  ;;  %v4971_v23 = vor.u32 %v6893_v12, %v4970_v11  ;;  %v4826_v27 = vld [vmem:[#allocation5 + $0x1a8] sm:$0xf]  ;;  %v6853_v48 = vld [vmem:[#allocation5 + $0x194] sm:$0xf0] }
  0xe9   :  { %3057 = vmatpush.bf16.msrb.mxu3 %v6055_v17  ;;  %3019 = vmatpush.bf16.msrb.mxu0 %v5655_v31  ;;  %v2803_v17 = vpop.f32.mrf.mxu3  ;;  %v6857_v31 = vld [vmem:[#allocation5 + $0x1b4] sm:$0xf0]  ;;  %v4954_v32 = vld [vmem:[#allocation5 + $0x2a8] sm:$0xf] }
  0xea   :  { %v4827_v39 = vor.u32 %v6857_v31, %v4826_v27  ;;  %v4955_v40 = vor.u32 %v6889_v34, %v4954_v32  ;;  %v4682_v43 = vld [vmem:[#allocation5 + $0x88] sm:$0xf]  ;;  %v6885_v50 = vld [vmem:[#allocation5 + $0x294] sm:$0xf0] }
  0xeb   :  { %3032 = vmatpush.bf16.msrb.mxu1 %v5783_v35  ;;  %3045 = vmatpush.bf16.msrb.mxu2 %v5911_v36  ;;  %v5082_v35 = vld [vmem:[#allocation5 + $0x3a8] sm:$0xf]  ;;  %v6921_v36 = vld [vmem:[#allocation5 + $0x3b4] sm:$0xf0] }
  0xec   :  { %v4810_v46 = vld [vmem:[#allocation5 + $0x188] sm:$0xf]  ;;  %v5083_v47 = vor.u32 %v6921_v36, %v5082_v35  ;;  %v6917_v52 = vld [vmem:[#allocation5 + $0x394] sm:$0xf0] }
  0xed   :  { %3058 = vmatpush.bf16.msrb.mxu3 %v6039_v45  ;;  %3020 = vmatpush.bf16.msrb.mxu0 %v5639_v54  ;;  %v6821_v45 = vld [vmem:[#allocation5 + $0x94] sm:$0xf0]  ;;  %v4938_v49 = vld [vmem:[#allocation5 + $0x288] sm:$0xf]  ;;  %v4811_v55 = vor.u32 %v6853_v48, %v4810_v46 }
  0xee   :  { %v5066_v51 = vld [vmem:[#allocation5 + $0x388] sm:$0xf]  ;;  %v4683_v53 = vor.u32 %v6821_v45, %v4682_v43  ;;  %v4939_v57 = vor.u32 %v6885_v50, %v4938_v49  ;;  %v6817_v60 = vld [vmem:[#allocation5 + $0x74] sm:$0xf0] }
  0xef   :  { %3033 = vmatpush.bf16.msrb.mxu1 %v5767_v61  ;;  %3046 = vmatpush.bf16.msrb.mxu2 %v5895_v62  ;;  %v2814_v54 = vpop.f32.mrf.mxu0  ;;  %v4666_v58 = vld [vmem:[#allocation5 + $0x68] sm:$0xf]  ;;  %v5067_v0 = vor.u32 %v6917_v52, %v5066_v51  ;;  %v6849_v1 = vld [vmem:[#allocation5 + $0x174] sm:$0xf0] }
  0xf0   :  { %3021 = vmatmul.bf16.vlgmr.msrb.gmra.mxu0 %v7821_v25  ;;  %v4794_v61 = vld [vmem:[#allocation5 + $0x168] sm:$0xf]  ;;  %v2815_v62 = vadd.f32 %v2814_v54, %v7844_v59  ;;  %v4667_v7 = vor.u32 %v6817_v60, %v4666_v58  ;;  %v6813_v11 = vld [vmem:[#allocation5 + $0x54] sm:$0xf0] }
  0xf1   :  { %3059 = vmatpush.bf16.msrb.mxu3 %v6023_v2  ;;  %3065 = vmatpush.bf16.msra.mxu0 %v4731_v3  ;;  %v2827_v63 = vpop.f32.mrf.mxu1  ;;  %v4922_v2 = vld [vmem:[#allocation5 + $0x268] sm:$0xf]  ;;  %v6881_v3 = vld [vmem:[#allocation5 + $0x274] sm:$0xf0]  ;;  %v4795_v8 = vor.u32 %v6849_v1, %v4794_v61 }
  0xf2   :  { %3047 = vmatmul.bf16.vlgmr.msrb.gmra.mxu2 %v7823_v29  ;;  %3034 = vmatmul.bf16.vlgmr.msrb.gmra.mxu1 %v7825_v30  ;;  %v2828_v6 = vadd.f32 %v2827_v63, %v2815_v62  ;;  %v4650_v10 = vld [vmem:[#allocation5 + $0x48] sm:$0xf]  ;;  %v6845_v14 = vld [vmem:[#allocation5 + $0x154] sm:$0xf0] }
  0xf3   :  { %3078 = vmatpush.bf16.msra.mxu1 %v4859_v4  ;;  %3091 = vmatpush.bf16.msra.mxu2 %v4987_v5  ;;  %v5050_v4 = vld [vmem:[#allocation5 + $0x368] sm:$0xf]  ;;  %v6913_v5 = vld [vmem:[#allocation5 + $0x374] sm:$0xf0]  ;;  %v4651_v26 = vor.u32 %v6813_v11, %v4650_v10 }
  0xf4   :  { %3060 = vmatmul.bf16.vlgmr.msrb.gmra.mxu3 %v7827_v33  ;;  %v4778_v12 = vld [vmem:[#allocation5 + $0x148] sm:$0xf]  ;;  %v5051_v59 = vor.u32 %v6913_v5, %v5050_v4  ;;  %v6909_v24 = vld [vmem:[#allocation5 + $0x354] sm:$0xf0] }
  0xf5   :  { %3104 = vmatpush.bf16.msra.mxu3 %v5115_v9  ;;  %3066 = vmatpush.bf16.msra.mxu0 %v4715_v16  ;;  %v4923_v9 = vor.u32 %v6881_v3, %v4922_v2  ;;  %v2840_v13 = vpop.f32.mrf.mxu2  ;;  %v4906_v15 = vld [vmem:[#allocation5 + $0x248] sm:$0xf]  ;;  %v6877_v16 = vld [vmem:[#allocation5 + $0x254] sm:$0xf0]  ;;  %v4779_v31 = vor.u32 %v6845_v14, %v4778_v12 }
  0xf6   :  { %v2841_v17 = vadd.f32 %v2840_v13, %v2828_v6  ;;  %v4907_v32 = vor.u32 %v6877_v16, %v4906_v15  ;;  %v4634_v34 = vld [vmem:[#allocation5 + $0x28] sm:$0xf]  ;;  %v6809_v35 = vld [vmem:[#allocation5 + $0x34] sm:$0xf0] }
  0xf7   :  { %3079 = vmatpush.bf16.msra.mxu1 %v4843_v21  ;;  %3092 = vmatpush.bf16.msra.mxu2 %v4971_v23  ;;  %v5034_v23 = vld [vmem:[#allocation5 + $0x348] sm:$0xf]  ;;  %v6873_v45 = vld [vmem:[#allocation5 + $0x234] sm:$0xf0]  ;;  %v4635_v48 = vor.u32 %v6809_v35, %v4634_v34 }
  0xf8   :  { %v2853_v21 = vpop.f32.mrf.mxu3  ;;  %v4762_v36 = vld [vmem:[#allocation5 + $0x128] sm:$0xf]  ;;  %v6805_v50 = vld [vmem:[#allocation5 + $0x14] sm:$0xf0] }
  0xf9   :  { %3105 = vmatpush.bf16.msra.mxu3 %v5099_v28  ;;  %3067 = vmatpush.bf16.msra.mxu0 %v4699_v37  ;;  %v7851_v27 = vadd.f32 %v2853_v21, %v2841_v17  ;;  %v2816_v28 = vpop.f32.mrf.mxu0  ;;  %v2829_v37 = vpop.f32.mrf.mxu1  ;;  %v4890_v43 = vld [vmem:[#allocation5 + $0x228] sm:$0xf]  ;;  %v6837_v54 = vld [vmem:[#allocation5 + $0x114] sm:$0xf0] }
  0xfa   :  { %v5018_v46 = vld [vmem:[#allocation5 + $0x328] sm:$0xf]  ;;  %v4891_v52 = vor.u32 %v6873_v45, %v4890_v43  ;;  %v6869_v60 = vld [vmem:[#allocation5 + $0x214] sm:$0xf0] }
  0xfb   :  { %3080 = vmatpush.bf16.msra.mxu1 %v4827_v39  ;;  %3093 = vmatpush.bf16.msra.mxu2 %v4955_v40  ;;  %v5035_v39 = vor.u32 %v6909_v24, %v5034_v23  ;;  %v6841_v40 = vld [vmem:[#allocation5 + $0x134] sm:$0xf0]  ;;  %v4618_v49 = vld [vmem:[#allocation5 + $0x8] sm:$0xf] }
  0xfc   :  { %v4763_v51 = vor.u32 %v6841_v40, %v4762_v36  ;;  %v5002_v61 = vld [vmem:[#allocation5 + $0x308] sm:$0xf]  ;;  %v6901_v62 = vld [vmem:[#allocation5 + $0x314] sm:$0xf0]  ;;  %v4619_v3 = vor.u32 %v6805_v50, %v4618_v49 }
  0xfd   :  { %3106 = vmatpush.bf16.msra.mxu3 %v5083_v47  ;;  %3068 = vmatpush.bf16.msra.mxu0 %v4683_v53  ;;  %v6905_v47 = vld [vmem:[#allocation5 + $0x334] sm:$0xf0]  ;;  %v4746_v53 = vld [vmem:[#allocation5 + $0x108] sm:$0xf]  ;;  %v5003_v11 = vor.u32 %v6901_v62, %v5002_v61 }
  0xfe   :  { %v5019_v58 = vor.u32 %v6905_v47, %v5018_v46  ;;  %v6961_v1 = vld [vmem:[#allocation5 + $0x4f4] sm:$0xf0]  ;;  %v5370_v2 = vld [vmem:[#allocation5 + $0x5e8] sm:$0xf] }
  0xff   :  { %3081 = vmatpush.bf16.msra.mxu1 %v4811_v55  ;;  %3094 = vmatpush.bf16.msra.mxu2 %v4939_v57  ;;  %v4874_v55 = vld [vmem:[#allocation5 + $0x208] sm:$0xf]  ;;  %v2842_v57 = vpop.f32.mrf.mxu2  ;;  %v6993_v4 = vld [vmem:[#allocation5 + $0x5f4] sm:$0xf0] }
 0x100   :  { %v2855_v63 = vpop.f32.mrf.mxu3  ;;  %v5498_v5 = vld [vmem:[#allocation5 + $0x6e8] sm:$0xf]  ;;  %v7025_v6 = vld [vmem:[#allocation5 + $0x6f4] sm:$0xf0]  ;;  %v5371_v13 = vor.u32 %v6993_v4, %v5370_v2 }
 0x101   :  { %3107 = vmatpush.bf16.msra.mxu3 %v5067_v0  ;;  %3069 = vmatpush.bf16.msra.mxu0 %v4667_v7  ;;  %v5242_v0 = vld [vmem:[#allocation5 + $0x4e8] sm:$0xf]  ;;  %v4747_v7 = vor.u32 %v6837_v54, %v4746_v53  ;;  %v7057_v10 = vld [vmem:[#allocation5 + $0x7f4] sm:$0xf0] }
 0x102   :  { %v5243_v12 = vor.u32 %v6961_v1, %v5242_v0  ;;  %v5226_v14 = vld [vmem:[#allocation5 + $0x4c8] sm:$0xf]  ;;  %v6957_v15 = vld [vmem:[#allocation5 + $0x4d4] sm:$0xf0] }
 0x103   :  { %3082 = vmatpush.bf16.msra.mxu1 %v4795_v8  ;;  %3095 = vmatpush.bf16.msra.mxu2 %v4923_v9  ;;  %v4875_v8 = vor.u32 %v6869_v60, %v4874_v55  ;;  %v5626_v9 = vld [vmem:[#allocation5 + $0x7e8] sm:$0xf]  ;;  %v6989_v21 = vld [vmem:[#allocation5 + $0x5d4] sm:$0xf0] }
 0x104   :  { %v5354_v16 = vld [vmem:[#allocation5 + $0x5c8] sm:$0xf]  ;;  %v5627_v17 = vor.u32 %v7057_v10, %v5626_v9  ;;  %v7021_v24 = vld [vmem:[#allocation5 + $0x6d4] sm:$0xf0] }
 0x105   :  { %3108 = vmatpush.bf16.msra.mxu3 %v5051_v59  ;;  %3070 = vmatpush.bf16.msra.mxu0 %v4651_v26  ;;  %v5499_v59 = vor.u32 %v7025_v6, %v5498_v5  ;;  %v5482_v23 = vld [vmem:[#allocation5 + $0x6c8] sm:$0xf]  ;;  %v7053_v28 = vld [vmem:[#allocation5 + $0x7d4] sm:$0xf0] }
 0x106   :  { %v5610_v26 = vld [vmem:[#allocation5 + $0x7c8] sm:$0xf]  ;;  %v5483_v34 = vor.u32 %v7021_v24, %v5482_v23  ;;  %v6953_v36 = vld [vmem:[#allocation5 + $0x4b4] sm:$0xf0] }
 0x107   :  { %3083 = vmatpush.bf16.msra.mxu1 %v4779_v31  ;;  %3096 = vmatpush.bf16.msra.mxu2 %v4907_v32  ;;  %v5227_v31 = vor.u32 %v6957_v15, %v5226_v14  ;;  %v5355_v32 = vor.u32 %v6989_v21, %v5354_v16  ;;  %v5210_v35 = vld [vmem:[#allocation5 + $0x4a8] sm:$0xf]  ;;  %v6985_v40 = vld [vmem:[#allocation5 + $0x5b4] sm:$0xf0] }
 0x108   :  { %v5338_v37 = vld [vmem:[#allocation5 + $0x5a8] sm:$0xf]  ;;  %v7017_v45 = vld [vmem:[#allocation5 + $0x6b4] sm:$0xf0] }
 0x109   :  { %3109 = vmatpush.bf16.msra.mxu3 %v5035_v39  ;;  %3071 = vmatpush.bf16.msra.mxu0 %v4635_v48  ;;  %v5611_v39 = vor.u32 %v7053_v28, %v5610_v26  ;;  %v5466_v43 = vld [vmem:[#allocation5 + $0x6a8] sm:$0xf]  ;;  %v7049_v47 = vld [vmem:[#allocation5 + $0x7b4] sm:$0xf0]  ;;  %v5211_v48 = vor.u32 %v6953_v36, %v5210_v35  ;;  %v5339_v49 = vor.u32 %v6985_v40, %v5338_v37 }
 0x10a   :  { %v5594_v46 = vld [vmem:[#allocation5 + $0x7a8] sm:$0xf]  ;;  %v5467_v50 = vor.u32 %v7017_v45, %v5466_v43  ;;  %v6981_v55 = vld [vmem:[#allocation5 + $0x594] sm:$0xf0] }
 0x10b   :  { %3084 = vmatpush.bf16.msra.mxu1 %v4763_v51  ;;  %3097 = vmatpush.bf16.msra.mxu2 %v4891_v52  ;;  %v5194_v51 = vld [vmem:[#allocation5 + $0x488] sm:$0xf]  ;;  %v6949_v52 = vld [vmem:[#allocation5 + $0x494] sm:$0xf0]  ;;  %v5595_v54 = vor.u32 %v7049_v47, %v5594_v46 }
 0x10c   :  { %v5322_v53 = vld [vmem:[#allocation5 + $0x588] sm:$0xf]  ;;  %v7045_v62 = vld [vmem:[#allocation5 + $0x794] sm:$0xf0]  ;;  %v5195_v0 = vor.u32 %v6949_v52, %v5194_v51 }
 0x10d   :  { %3110 = vmatpush.bf16.msra.mxu3 %v5019_v58  ;;  %3072 = vmatpush.bf16.msra.mxu0 %v4619_v3  ;;  %v5450_v57 = vld [vmem:[#allocation5 + $0x688] sm:$0xf]  ;;  %v7013_v58 = vld [vmem:[#allocation5 + $0x694] sm:$0xf0]  ;;  %v5323_v2 = vor.u32 %v6981_v55, %v5322_v53 }
 0x10e   :  { %v5578_v61 = vld [vmem:[#allocation5 + $0x788] sm:$0xf]  ;;  %v5451_v3 = vor.u32 %v7013_v58, %v5450_v57  ;;  %v6945_v5 = vld [vmem:[#allocation5 + $0x474] sm:$0xf0] }
 0x10f   :  { %3085 = vmatpush.bf16.msra.mxu1 %v4747_v7  ;;  %3098 = vmatpush.bf16.msra.mxu2 %v4875_v8  ;;  %v2866_v60 = vpop.f32.mrf.mxu0  ;;  %v5178_v4 = vld [vmem:[#allocation5 + $0x468] sm:$0xf]  ;;  %v5579_v7 = vor.u32 %v7045_v62, %v5578_v61  ;;  %v6977_v9 = vld [vmem:[#allocation5 + $0x574] sm:$0xf0] }
 0x110   :  { %3073 = vmatmul.bf16.vlgmr.msra.gmra.mxu0 %v7799_v19  ;;  %v2867_v63 = vadd.f32 %v2866_v60, %v7851_v27  ;;  %v5306_v6 = vld [vmem:[#allocation5 + $0x568] sm:$0xf]  ;;  %v6941_v16 = vld [vmem:[#allocation5 + $0x454] sm:$0xf0] }
 0x111   :  { %3111 = vmatpush.bf16.msra.mxu3 %v5003_v11  ;;  %3117 = vmatpush.bf16.msrb.mxu0 %v5243_v12  ;;  %v2879_v1 = vpop.f32.mrf.mxu1  ;;  %v5434_v10 = vld [vmem:[#allocation5 + $0x668] sm:$0xf]  ;;  %v7009_v11 = vld [vmem:[#allocation5 + $0x674] sm:$0xf0]  ;;  %v5307_v27 = vor.u32 %v6977_v9, %v5306_v6 }
 0x112   :  { %3099 = vmatmul.bf16.vlgmr.msra.gmra.mxu2 %v7797_v18  ;;  %3086 = vmatmul.bf16.vlgmr.msra.gmra.mxu1 %v7803_v22  ;;  %v2880_v8 = vadd.f32 %v2879_v1, %v2867_v63  ;;  %v5562_v12 = vld [vmem:[#allocation5 + $0x768] sm:$0xf]  ;;  %v5435_v14 = vor.u32 %v7009_v11, %v5434_v10  ;;  %v6973_v24 = vld [vmem:[#allocation5 + $0x554] sm:$0xf0] }
 0x113   :  { %3130 = vmatpush.bf16.msrb.mxu1 %v5371_v13  ;;  %3143 = vmatpush.bf16.msrb.mxu2 %v5499_v59  ;;  %v7041_v13 = vld [vmem:[#allocation5 + $0x774] sm:$0xf0]  ;;  %v5179_v59 = vor.u32 %v6945_v5, %v5178_v4  ;;  %v5162_v15 = vld [vmem:[#allocation5 + $0x448] sm:$0xf] }
 0x114   :  { %3112 = vmatmul.bf16.vlgmr.msra.gmra.mxu3 %v7801_v20  ;;  %v5563_v21 = vor.u32 %v7041_v13, %v5562_v12  ;;  %v5418_v26 = vld [vmem:[#allocation5 + $0x648] sm:$0xf]  ;;  %v7005_v28 = vld [vmem:[#allocation5 + $0x654] sm:$0xf0]  ;;  %v5163_v37 = vor.u32 %v6941_v16, %v5162_v15 }
 0x115   :  { %3156 = vmatpush.bf16.msrb.mxu3 %v5627_v17  ;;  %3118 = vmatpush.bf16.msrb.mxu0 %v5227_v31  ;;  %v5290_v17 = vld [vmem:[#allocation5 + $0x548] sm:$0xf]  ;;  %v2892_v23 = vpop.f32.mrf.mxu2  ;;  %v7037_v35 = vld [vmem:[#allocation5 + $0x754] sm:$0xf0]  ;;  %v5419_v45 = vor.u32 %v7005_v28, %v5418_v26 }
 0x116   :  { %v2893_v31 = vadd.f32 %v2892_v23, %v2880_v8  ;;  %v5291_v43 = vor.u32 %v6973_v24, %v5290_v17  ;;  %v5146_v46 = vld [vmem:[#allocation5 + $0x428] sm:$0xf]  ;;  %v6937_v47 = vld [vmem:[#allocation5 + $0x434] sm:$0xf0] }
 0x117   :  { %3131 = vmatpush.bf16.msrb.mxu1 %v5355_v32  ;;  %3144 = vmatpush.bf16.msrb.mxu2 %v5483_v34  ;;  %v2905_v32 = vpop.f32.mrf.mxu3  ;;  %v5546_v34 = vld [vmem:[#allocation5 + $0x748] sm:$0xf]  ;;  %v2868_v36 = vpop.f32.mrf.mxu0  ;;  %v7001_v52 = vld [vmem:[#allocation5 + $0x634] sm:$0xf0]  ;;  %v5147_v55 = vor.u32 %v6937_v47, %v5146_v46 }
 0x118   :  { %v7858_v40 = vadd.f32 %v2905_v32, %v2893_v31  ;;  %v5402_v51 = vld [vmem:[#allocation5 + $0x628] sm:$0xf]  ;;  %v6933_v58 = vld [vmem:[#allocation5 + $0x414] sm:$0xf0] }
 0x119   :  { %3157 = vmatpush.bf16.msrb.mxu3 %v5611_v39  ;;  %3119 = vmatpush.bf16.msrb.mxu0 %v5211_v48  ;;  %v2881_v39 = vpop.f32.mrf.mxu1  ;;  %v5274_v48 = vld [vmem:[#allocation5 + $0x528] sm:$0xf]  ;;  %v5403_v61 = vor.u32 %v7001_v52, %v5402_v51  ;;  %v6965_v63 = vld [vmem:[#allocation5 + $0x514] sm:$0xf0] }
 0x11a   :  { %v5530_v53 = vld [vmem:[#allocation5 + $0x728] sm:$0xf]  ;;  %v7029_v4 = vld [vmem:[#allocation5 + $0x714] sm:$0xf0] }
 0x11b   :  { %3132 = vmatpush.bf16.msrb.mxu1 %v5339_v49  ;;  %3145 = vmatpush.bf16.msrb.mxu2 %v5467_v50  ;;  %v5547_v49 = vor.u32 %v7037_v35, %v5546_v34  ;;  %v6969_v50 = vld [vmem:[#allocation5 + $0x534] sm:$0xf0]  ;;  %v5130_v57 = vld [vmem:[#allocation5 + $0x408] sm:$0xf] }
 0x11c   :  { %v5275_v60 = vor.u32 %v6969_v50, %v5274_v48  ;;  %v5258_v62 = vld [vmem:[#allocation5 + $0x508] sm:$0xf]  ;;  %v5131_v10 = vor.u32 %v6933_v58, %v5130_v57  ;;  %v7121_v11 = vld [vmem:[#allocation5 + $0x9f4] sm:$0xf0] }
 0x11d   :  { %3158 = vmatpush.bf16.msrb.mxu3 %v5595_v54  ;;  %3120 = vmatpush.bf16.msrb.mxu0 %v5195_v0  ;;  %v7033_v54 = vld [vmem:[#allocation5 + $0x734] sm:$0xf0]  ;;  %v5386_v0 = vld [vmem:[#allocation5 + $0x608] sm:$0xf]  ;;  %v2894_v5 = vpop.f32.mrf.mxu2 }
 0x11e   :  { %v5531_v1 = vor.u32 %v7033_v54, %v5530_v53  ;;  %v5754_v6 = vld [vmem:[#allocation5 + $0x8e8] sm:$0xf]  ;;  %v7153_v13 = vld [vmem:[#allocation5 + $0xaf4] sm:$0xf0] }
 0x11f   :  { %3133 = vmatpush.bf16.msrb.mxu1 %v5323_v2  ;;  %3146 = vmatpush.bf16.msrb.mxu2 %v5451_v3  ;;  %v6997_v2 = vld [vmem:[#allocation5 + $0x614] sm:$0xf0]  ;;  %v5514_v3 = vld [vmem:[#allocation5 + $0x708] sm:$0xf]  ;;  %v2907_v9 = vpop.f32.mrf.mxu3 }
 0x120   :  { %v5882_v8 = vld [vmem:[#allocation5 + $0x9e8] sm:$0xf]  ;;  %v7185_v15 = vld [vmem:[#allocation5 + $0xbf4] sm:$0xf0]  ;;  %v5515_v16 = vor.u32 %v7029_v4, %v5514_v3 }
 0x121   :  { %3159 = vmatpush.bf16.msrb.mxu3 %v5579_v7  ;;  %3121 = vmatpush.bf16.msrb.mxu0 %v5179_v59  ;;  %v7089_v7 = vld [vmem:[#allocation5 + $0x8f4] sm:$0xf0]  ;;  %v6010_v12 = vld [vmem:[#allocation5 + $0xae8] sm:$0xf]  ;;  %v5259_v59 = vor.u32 %v6965_v63, %v5258_v62  ;;  %v784_v63 = vperm.slane %v7841_v56, 1 }
 0x122   :  { %v5755_v17 = vor.u32 %v7089_v7, %v5754_v6  ;;  %v6011_v23 = vor.u32 %v7153_v13, %v6010_v12  ;;  %v5738_v24 = vld [vmem:[#allocation5 + $0x8c8] sm:$0xf]  ;;  %v7085_v26 = vld [vmem:[#allocation5 + $0x8d4] sm:$0xf0] }
 0x123   :  { %3134 = vmatpush.bf16.msrb.mxu1 %v5307_v27  ;;  %3147 = vmatpush.bf16.msrb.mxu2 %v5435_v14  ;;  %v5387_v27 = vor.u32 %v6997_v2, %v5386_v0  ;;  %v6138_v14 = vld [vmem:[#allocation5 + $0xbe8] sm:$0xf]  ;;  %v7117_v32 = vld [vmem:[#allocation5 + $0x9d4] sm:$0xf0]  ;;  %v5739_v39 = vor.u32 %v7085_v26, %v5738_v24 }
 0x124   :  { %v5866_v28 = vld [vmem:[#allocation5 + $0x9c8] sm:$0xf]  ;;  %v6139_v31 = vor.u32 %v7185_v15, %v6138_v14  ;;  %v7149_v35 = vld [vmem:[#allocation5 + $0xad4] sm:$0xf0] }
 0x125   :  { %3160 = vmatpush.bf16.msrb.mxu3 %v5563_v21  ;;  %3122 = vmatpush.bf16.msrb.mxu0 %v5163_v37  ;;  %v5883_v21 = vor.u32 %v7121_v11, %v5882_v8  ;;  %v5994_v34 = vld [vmem:[#allocation5 + $0xac8] sm:$0xf]  ;;  %v7181_v37 = vld [vmem:[#allocation5 + $0xbd4] sm:$0xf0] }
 0x126   :  { %v6122_v36 = vld [vmem:[#allocation5 + $0xbc8] sm:$0xf]  ;;  %v7081_v47 = vld [vmem:[#allocation5 + $0x8b4] sm:$0xf0] }
 0x127   :  { %3135 = vmatpush.bf16.msrb.mxu1 %v5291_v43  ;;  %3148 = vmatpush.bf16.msrb.mxu2 %v5419_v45  ;;  %v5867_v43 = vor.u32 %v7117_v32, %v5866_v28  ;;  %v5995_v45 = vor.u32 %v7149_v35, %v5994_v34  ;;  %v5722_v46 = vld [vmem:[#allocation5 + $0x8a8] sm:$0xf]  ;;  %v7113_v50 = vld [vmem:[#allocation5 + $0x9b4] sm:$0xf0] }
 0x128   :  { %v5850_v48 = vld [vmem:[#allocation5 + $0x9a8] sm:$0xf]  ;;  %v7145_v52 = vld [vmem:[#allocation5 + $0xab4] sm:$0xf0] }
 0x129   :  { %3161 = vmatpush.bf16.msrb.mxu3 %v5547_v49  ;;  %3123 = vmatpush.bf16.msrb.mxu0 %v5147_v55  ;;  %v6123_v49 = vor.u32 %v7181_v37, %v6122_v36  ;;  %v5978_v51 = vld [vmem:[#allocation5 + $0xaa8] sm:$0xf]  ;;  %v7177_v54 = vld [vmem:[#allocation5 + $0xbb4] sm:$0xf0]  ;;  %v5723_v55 = vor.u32 %v7081_v47, %v5722_v46  ;;  %v5851_v58 = vor.u32 %v7113_v50, %v5850_v48 }
 0x12a   :  { %v6106_v53 = vld [vmem:[#allocation5 + $0xba8] sm:$0xf]  ;;  %v7141_v3 = vld [vmem:[#allocation5 + $0xa94] sm:$0xf0] }
 0x12b   :  { %3136 = vmatpush.bf16.msrb.mxu1 %v5275_v60  ;;  %3149 = vmatpush.bf16.msrb.mxu2 %v5403_v61  ;;  %v5706_v57 = vld [vmem:[#allocation5 + $0x888] sm:$0xf]  ;;  %v5979_v60 = vor.u32 %v7145_v52, %v5978_v51  ;;  %v7077_v61 = vld [vmem:[#allocation5 + $0x894] sm:$0xf0]  ;;  %v6107_v0 = vor.u32 %v7177_v54, %v6106_v53 }
 0x12c   :  { %v5834_v62 = vld [vmem:[#allocation5 + $0x988] sm:$0xf]  ;;  %v7173_v5 = vld [vmem:[#allocation5 + $0xb94] sm:$0xf0]  ;;  %v5707_v6 = vor.u32 %v7077_v61, %v5706_v57 }
 0x12d   :  { %3162 = vmatpush.bf16.msrb.mxu3 %v5531_v1  ;;  %3124 = vmatpush.bf16.msrb.mxu0 %v5131_v10  ;;  %v7109_v1 = vld [vmem:[#allocation5 + $0x994] sm:$0xf0]  ;;  %v5962_v2 = vld [vmem:[#allocation5 + $0xa88] sm:$0xf]  ;;  %v2918_v7 = vpop.f32.mrf.mxu0 }
 0x12e   :  { %v6090_v4 = vld [vmem:[#allocation5 + $0xb88] sm:$0xf]  ;;  %v5835_v8 = vor.u32 %v7109_v1, %v5834_v62  ;;  %v5963_v9 = vor.u32 %v7141_v3, %v5962_v2  ;;  %v7073_v11 = vld [vmem:[#allocation5 + $0x874] sm:$0xf0]  ;;  %v2919_v13 = vadd.f32 %v2918_v7, %v784_v63 }
 0x12f   :  { %3137 = vmatpush.bf16.msrb.mxu1 %v5259_v59  ;;  %3150 = vmatpush.bf16.msrb.mxu2 %v5387_v27  ;;  %v5690_v10 = vld [vmem:[#allocation5 + $0x868] sm:$0xf]  ;;  %v2931_v59 = vpop.f32.mrf.mxu1  ;;  %v6091_v56 = vor.u32 %v7173_v5, %v6090_v4  ;;  %v7105_v27 = vld [vmem:[#allocation5 + $0x974] sm:$0xf0] }
 0x130   :  { %3125 = vmatmul.bf16.vlgmr.msrb.gmra.mxu0 %v7811_v41  ;;  %v5818_v12 = vld [vmem:[#allocation5 + $0x968] sm:$0xf]  ;;  %v7137_v15 = vld [vmem:[#allocation5 + $0xa74] sm:$0xf0] }
 0x131   :  { %3163 = vmatpush.bf16.msrb.mxu3 %v5515_v16  ;;  %3169 = vmatpush.bf16.msra.mxu0 %v5755_v17  ;;  %v5946_v14 = vld [vmem:[#allocation5 + $0xa68] sm:$0xf]  ;;  %v7169_v17 = vld [vmem:[#allocation5 + $0xb74] sm:$0xf0]  ;;  %v5819_v24 = vor.u32 %v7105_v27, %v5818_v12  ;;  %v4732_v27 = vld [vmem:[#allocation5 + $0xf8] sm:$0xf0] }
 0x132   :  { %3151 = vmatmul.bf16.vlgmr.msrb.gmra.mxu2 %v7809_v38  ;;  %3138 = vmatmul.bf16.vlgmr.msrb.gmra.mxu1 %v7815_v44  ;;  %v6074_v16 = vld [vmem:[#allocation5 + $0xb68] sm:$0xf]  ;;  %v5947_v26 = vor.u32 %v7137_v15, %v5946_v14  ;;  %v7101_v36 = vld [vmem:[#allocation5 + $0x954] sm:$0xf0]  ;;  %v6863_v14 = vld [vmem:[#allocation5 + $0x1ec] sm:$0xf] }
 0x133   :  { %3182 = vmatpush.bf16.msra.mxu1 %v5883_v21  ;;  %3195 = vmatpush.bf16.msra.mxu2 %v6011_v23  ;;  %v2932_v21 = vadd.f32 %v2931_v59, %v2919_v13  ;;  %v5691_v23 = vor.u32 %v7073_v11, %v5690_v10  ;;  %v5674_v28 = vld [vmem:[#allocation5 + $0x848] sm:$0xf]  ;;  %v6075_v35 = vor.u32 %v7169_v17, %v6074_v16  ;;  %v7165_v47 = vld [vmem:[#allocation5 + $0xb54] sm:$0xf0]  ;;  %v4860_v16 = vld [vmem:[#allocation5 + $0x1f8] sm:$0xf0] }
 0x134   :  { %3164 = vmatmul.bf16.vlgmr.msrb.gmra.mxu3 %v7813_v42  ;;  %v5802_v32 = vld [vmem:[#allocation5 + $0x948] sm:$0xf]  ;;  %v7065_v54 = vld [vmem:[#allocation5 + $0x834] sm:$0xf0]  ;;  %v6895_v17 = vld [vmem:[#allocation5 + $0x2ec] sm:$0xf] }
 0x135   :  { %3208 = vmatpush.bf16.msra.mxu3 %v6139_v31  ;;  %3170 = vmatpush.bf16.msra.mxu0 %v5739_v39  ;;  %v7069_v31 = vld [vmem:[#allocation5 + $0x854] sm:$0xf0]  ;;  %v2944_v34 = vpop.f32.mrf.mxu2  ;;  %v5930_v37 = vld [vmem:[#allocation5 + $0xa48] sm:$0xf]  ;;  %v2920_v50 = vpop.f32.mrf.mxu0  ;;  %v5803_v51 = vor.u32 %v7101_v36, %v5802_v32  ;;  %v6827_v36 = vld [vmem:[#allocation5 + $0xcc] sm:$0xf] }
 0x136   :  { %v7133_v39 = vld [vmem:[#allocation5 + $0xa54] sm:$0xf0]  ;;  %v6058_v46 = vld [vmem:[#allocation5 + $0xb48] sm:$0xf]  ;;  %v5675_v48 = vor.u32 %v7069_v31, %v5674_v28  ;;  %v5116_v28 = vld [vmem:[#allocation5 + $0x3f8] sm:$0xf0] }
 0x137   :  { %3183 = vmatpush.bf16.msra.mxu1 %v5867_v43  ;;  %3196 = vmatpush.bf16.msra.mxu2 %v5995_v45  ;;  %v2945_v43 = vadd.f32 %v2944_v34, %v2932_v21  ;;  %v2957_v45 = vpop.f32.mrf.mxu3  ;;  %v5931_v52 = vor.u32 %v7133_v39, %v5930_v37  ;;  %v5658_v53 = vld [vmem:[#allocation5 + $0x828] sm:$0xf]  ;;  %v2933_v57 = vpop.f32.mrf.mxu1  ;;  %v7129_v62 = vld [vmem:[#allocation5 + $0xa34] sm:$0xf0]  ;;  %v4988_v21 = vld [vmem:[#allocation5 + $0x2f8] sm:$0xf0]  ;;  %v4863_v34 = vor.u32 %v6863_v14, %v4860_v16 }
 0x138   :  { %v5914_v61 = vld [vmem:[#allocation5 + $0xa28] sm:$0xf]  ;;  %v5659_v1 = vor.u32 %v7065_v54, %v5658_v53  ;;  %v7061_v3 = vld [vmem:[#allocation5 + $0x814] sm:$0xf0]  ;;  %v4716_v37 = vld [vmem:[#allocation5 + $0xd8] sm:$0xf0] }
 0x139   :  { %3209 = vmatpush.bf16.msra.mxu3 %v6123_v49  ;;  %3171 = vmatpush.bf16.msra.mxu0 %v5723_v55  ;;  %v7865_v49 = vadd.f32 %v2957_v45, %v2945_v43  ;;  %v5786_v55 = vld [vmem:[#allocation5 + $0x928] sm:$0xf]  ;;  %v5915_v5 = vor.u32 %v7129_v62, %v5914_v61  ;;  %v7093_v7 = vld [vmem:[#allocation5 + $0x914] sm:$0xf0]  ;;  %v6859_v39 = vld [vmem:[#allocation5 + $0x1cc] sm:$0xf] }
 0x13a   :  { %v6042_v63 = vld [vmem:[#allocation5 + $0xb28] sm:$0xf]  ;;  %v7125_v11 = vld [vmem:[#allocation5 + $0xa14] sm:$0xf0]  ;;  %v4844_v45 = vld [vmem:[#allocation5 + $0x1d8] sm:$0xf0] }
 0x13b   :  { %3184 = vmatpush.bf16.msra.mxu1 %v5851_v58  ;;  %3197 = vmatpush.bf16.msra.mxu2 %v5979_v60  ;;  %v6059_v58 = vor.u32 %v7165_v47, %v6058_v46  ;;  %v7097_v60 = vld [vmem:[#allocation5 + $0x934] sm:$0xf0]  ;;  %v5642_v2 = vld [vmem:[#allocation5 + $0x808] sm:$0xf]  ;;  %v6891_v46 = vld [vmem:[#allocation5 + $0x2cc] sm:$0xf] }
 0x13c   :  { %v5787_v4 = vor.u32 %v7097_v60, %v5786_v55  ;;  %v6026_v12 = vld [vmem:[#allocation5 + $0xb08] sm:$0xf]  ;;  %v7157_v13 = vld [vmem:[#allocation5 + $0xb14] sm:$0xf0]  ;;  %v5643_v15 = vor.u32 %v7061_v3, %v5642_v2  ;;  %v4972_v47 = vld [vmem:[#allocation5 + $0x2d8] sm:$0xf0] }
 0x13d   :  { %3210 = vmatpush.bf16.msra.mxu3 %v6107_v0  ;;  %3172 = vmatpush.bf16.msra.mxu0 %v5707_v6  ;;  %v7161_v0 = vld [vmem:[#allocation5 + $0xb34] sm:$0xf0]  ;;  %v5770_v6 = vld [vmem:[#allocation5 + $0x908] sm:$0xf]  ;;  %v6027_v31 = vor.u32 %v7157_v13, %v6026_v12  ;;  %v5100_v50 = vld [vmem:[#allocation5 + $0x3d8] sm:$0xf0]  ;;  %v4975_v53 = vor.u32 %v6891_v46, %v4972_v47 }
 0x13e   :  { %v6043_v10 = vor.u32 %v7161_v0, %v6042_v63  ;;  %v6823_v54 = vld [vmem:[#allocation5 + $0xac] sm:$0xf]  ;;  %v4700_v55 = vld [vmem:[#allocation5 + $0xb8] sm:$0xf0] }
 0x13f   :  { %3185 = vmatpush.bf16.msra.mxu1 %v5835_v8  ;;  %3198 = vmatpush.bf16.msra.mxu2 %v5963_v9  ;;  %v5898_v8 = vld [vmem:[#allocation5 + $0xa08] sm:$0xf]  ;;  %v2946_v9 = vpop.f32.mrf.mxu2  ;;  %v2959_v59 = vpop.f32.mrf.mxu3  ;;  %v6855_v57 = vld [vmem:[#allocation5 + $0x1ac] sm:$0xf]  ;;  %v4828_v60 = vld [vmem:[#allocation5 + $0x1b8] sm:$0xf0] }
 0x140   :  { %v6887_v61 = vld [vmem:[#allocation5 + $0x2ac] sm:$0xf]  ;;  %v4956_v62 = vld [vmem:[#allocation5 + $0x2b8] sm:$0xf0]  ;;  %v4831_v2 = vor.u32 %v6855_v57, %v4828_v60 }
 0x141   :  { %3211 = vmatpush.bf16.msra.mxu3 %v6091_v56  ;;  %3173 = vmatpush.bf16.msra.mxu0 %v5691_v23  ;;  %v6831_v56 = vld [vmem:[#allocation5 + $0xec] sm:$0xf]  ;;  %v5771_v23 = vor.u32 %v7093_v7, %v5770_v6  ;;  %v5084_v0 = vld [vmem:[#allocation5 + $0x3b8] sm:$0xf0]  ;;  %v4959_v3 = vor.u32 %v6887_v61, %v4956_v62 }
 0x142   :  { %v4735_v32 = vor.u32 %v6831_v56, %v4732_v27  ;;  %v6919_v63 = vld [vmem:[#allocation5 + $0x3ac] sm:$0xf]  ;;  %v5068_v12 = vld [vmem:[#allocation5 + $0x398] sm:$0xf0] }
 0x143   :  { %3186 = vmatpush.bf16.msra.mxu1 %v5819_v24  ;;  %3199 = vmatpush.bf16.msra.mxu2 %v5947_v26  ;;  %v5899_v24 = vor.u32 %v7125_v11, %v5898_v8  ;;  %v6927_v26 = vld [vmem:[#allocation5 + $0x3ec] sm:$0xf]  ;;  %v5087_v7 = vor.u32 %v6919_v63, %v5084_v0  ;;  %v4812_v8 = vld [vmem:[#allocation5 + $0x198] sm:$0xf0] }
 0x144   :  { %v5119_v43 = vor.u32 %v6927_v26, %v5116_v28  ;;  %v6851_v6 = vld [vmem:[#allocation5 + $0x18c] sm:$0xf]  ;;  %v4924_v28 = vld [vmem:[#allocation5 + $0x278] sm:$0xf0] }
 0x145   :  { %3212 = vmatpush.bf16.msra.mxu3 %v6075_v35  ;;  %3174 = vmatpush.bf16.msra.mxu0 %v5675_v48  ;;  %v4991_v35 = vor.u32 %v6895_v17, %v4988_v21  ;;  %v6923_v48 = vld [vmem:[#allocation5 + $0x3cc] sm:$0xf]  ;;  %v4815_v56 = vor.u32 %v6851_v6, %v4812_v8  ;;  %v4780_v47 = vld [vmem:[#allocation5 + $0x158] sm:$0xf0] }
 0x146   :  { %v6883_v9 = vld [vmem:[#allocation5 + $0x28c] sm:$0xf]  ;;  %v4636_v63 = vld [vmem:[#allocation5 + $0x38] sm:$0xf0] }
 0x147   :  { %3187 = vmatpush.bf16.msra.mxu1 %v5803_v51  ;;  %3200 = vmatpush.bf16.msra.mxu2 %v5931_v52  ;;  %v4719_v51 = vor.u32 %v6827_v36, %v4716_v37  ;;  %v4847_v52 = vor.u32 %v6859_v39, %v4844_v45  ;;  %v6915_v11 = vld [vmem:[#allocation5 + $0x38c] sm:$0xf] }
 0x148   :  { %v6815_v14 = vld [vmem:[#allocation5 + $0x6c] sm:$0xf] }
 0x149   :  { %3213 = vmatpush.bf16.msra.mxu3 %v6059_v58  ;;  %3175 = vmatpush.bf16.msra.mxu0 %v5659_v1  ;;  %v5103_v58 = vor.u32 %v6923_v48, %v5100_v50  ;;  %v4703_v1 = vor.u32 %v6823_v54, %v4700_v55  ;;  %v6847_v16 = vld [vmem:[#allocation5 + $0x16c] sm:$0xf]  ;;  %v4908_v50 = vld [vmem:[#allocation5 + $0x258] sm:$0xf0] }
 0x14a   :  { %v6879_v26 = vld [vmem:[#allocation5 + $0x26c] sm:$0xf]  ;;  %v5036_v54 = vld [vmem:[#allocation5 + $0x358] sm:$0xf0] }
 0x14b   :  { %3188 = vmatpush.bf16.msra.mxu1 %v5787_v4  ;;  %3201 = vmatpush.bf16.msra.mxu2 %v5915_v5  ;;  %v6819_v4 = vld [vmem:[#allocation5 + $0x8c] sm:$0xf]  ;;  %v4684_v5 = vld [vmem:[#allocation5 + $0x98] sm:$0xf0]  ;;  %v4927_v37 = vor.u32 %v6879_v26, %v4924_v28 }
 0x14c   :  { %v4687_v13 = vor.u32 %v6819_v4, %v4684_v5  ;;  %v6811_v39 = vld [vmem:[#allocation5 + $0x4c] sm:$0xf]  ;;  %v4892_v5 = vld [vmem:[#allocation5 + $0x238] sm:$0xf0] }
 0x14d   :  { %3214 = vmatpush.bf16.msra.mxu3 %v6043_v10  ;;  %3176 = vmatpush.bf16.msra.mxu0 %v5643_v15  ;;  %v4940_v10 = vld [vmem:[#allocation5 + $0x298] sm:$0xf0]  ;;  %v2970_v59 = vpop.f32.mrf.mxu0  ;;  %v6843_v45 = vld [vmem:[#allocation5 + $0x14c] sm:$0xf] }
 0x14e   :  { %v4943_v27 = vor.u32 %v6883_v9, %v4940_v10  ;;  %v4668_v15 = vld [vmem:[#allocation5 + $0x78] sm:$0xf0]  ;;  %v2971_v17 = vadd.f32 %v2970_v59, %v7865_v49  ;;  %v6875_v48 = vld [vmem:[#allocation5 + $0x24c] sm:$0xf]  ;;  %v4783_v60 = vor.u32 %v6843_v45, %v4780_v47 }
 0x14f   :  { %3189 = vmatpush.bf16.msra.mxu1 %v5771_v23  ;;  %3202 = vmatpush.bf16.msra.mxu2 %v5899_v24  ;;  %v2983_v21 = vpop.f32.mrf.mxu1  ;;  %v5071_v23 = vor.u32 %v6915_v11, %v5068_v12  ;;  %v4796_v24 = vld [vmem:[#allocation5 + $0x178] sm:$0xf0]  ;;  %v4911_v61 = vor.u32 %v6875_v48, %v4908_v50  ;;  %v6807_v62 = vld [vmem:[#allocation5 + $0x2c] sm:$0xf] }
 0x150   :  { %3177 = vmatmul.bf16.vlgmr.msra.gmra.mxu0 %v7821_v25  ;;  %v4799_v36 = vor.u32 %v6847_v16, %v4796_v24  ;;  %v6839_v0 = vld [vmem:[#allocation5 + $0x12c] sm:$0xf]  ;;  %v4639_v8 = vor.u32 %v6807_v62, %v4636_v63  ;;  %v4620_v10 = vld [vmem:[#allocation5 + $0x18] sm:$0xf0] }
 0x151   :  { %3215 = vmatpush.bf16.msra.mxu3 %v6027_v31  ;;  %3221 = vmatpush.bf16.msrb.mxu0 %v4735_v32  ;;  %v6911_v31 = vld [vmem:[#allocation5 + $0x36c] sm:$0xf]  ;;  %v5052_v32 = vld [vmem:[#allocation5 + $0x378] sm:$0xf0] }
 0x152   :  { %3203 = vmatmul.bf16.vlgmr.msra.gmra.mxu2 %v7823_v29  ;;  %3190 = vmatmul.bf16.vlgmr.msra.gmra.mxu1 %v7825_v30  ;;  %v5055_v49 = vor.u32 %v6911_v31, %v5052_v32  ;;  %v6871_v4 = vld [vmem:[#allocation5 + $0x22c] sm:$0xf]  ;;  %v4748_v59 = vld [vmem:[#allocation5 + $0x118] sm:$0xf0] }
 0x153   :  { %3234 = vmatpush.bf16.msrb.mxu1 %v4863_v34  ;;  %3247 = vmatpush.bf16.msrb.mxu2 %v4991_v35  ;;  %v2984_v34 = vadd.f32 %v2983_v21, %v2971_v17  ;;  %v4671_v35 = vor.u32 %v6815_v14, %v4668_v15  ;;  %v6903_v6 = vld [vmem:[#allocation5 + $0x32c] sm:$0xf]  ;;  %v4895_v12 = vor.u32 %v6871_v4, %v4892_v5  ;;  %v4876_v15 = vld [vmem:[#allocation5 + $0x218] sm:$0xf0] }
 0x154   :  { %3216 = vmatmul.bf16.vlgmr.msra.gmra.mxu3 %v7827_v33  ;;  %v6803_v9 = vld [vmem:[#allocation5 + $0xc] sm:$0xf]  ;;  %v5004_v17 = vld [vmem:[#allocation5 + $0x318] sm:$0xf0] }
 0x155   :  { %3260 = vmatpush.bf16.msrb.mxu3 %v5119_v43  ;;  %3222 = vmatpush.bf16.msrb.mxu0 %v4719_v51  ;;  %v4652_v43 = vld [vmem:[#allocation5 + $0x58] sm:$0xf0]  ;;  %v2996_v46 = vpop.f32.mrf.mxu2  ;;  %v6899_v16 = vld [vmem:[#allocation5 + $0x30c] sm:$0xf]  ;;  %v4623_v28 = vor.u32 %v6803_v9, %v4620_v10 }
 0x156   :  { %v2997_v51 = vadd.f32 %v2996_v46, %v2984_v34  ;;  %v4655_v55 = vor.u32 %v6811_v39, %v4652_v43  ;;  %v5244_v24 = vld [vmem:[#allocation5 + $0x4f8] sm:$0xf0]  ;;  %v6991_v26 = vld [vmem:[#allocation5 + $0x5ec] sm:$0xf]  ;;  %v5007_v43 = vor.u32 %v6899_v16, %v5004_v17 }
 0x157   :  { %3235 = vmatpush.bf16.msrb.mxu1 %v4847_v52  ;;  %3248 = vmatpush.bf16.msrb.mxu2 %v4975_v53  ;;  %v3009_v52 = vpop.f32.mrf.mxu3  ;;  %v6907_v53 = vld [vmem:[#allocation5 + $0x34c] sm:$0xf]  ;;  %v5372_v31 = vld [vmem:[#allocation5 + $0x5f8] sm:$0xf0] }
 0x158   :  { %v7872_v57 = vadd.f32 %v3009_v52, %v2997_v51  ;;  %v7023_v32 = vld [vmem:[#allocation5 + $0x6ec] sm:$0xf]  ;;  %v5500_v34 = vld [vmem:[#allocation5 + $0x6f8] sm:$0xf0]  ;;  %v5375_v46 = vor.u32 %v6991_v26, %v5372_v31 }
 0x159   :  { %3261 = vmatpush.bf16.msrb.mxu3 %v5103_v58  ;;  %3223 = vmatpush.bf16.msrb.mxu0 %v4703_v1  ;;  %v2972_v58 = vpop.f32.mrf.mxu0  ;;  %v2985_v1 = vpop.f32.mrf.mxu1  ;;  %v5628_v39 = vld [vmem:[#allocation5 + $0x7f8] sm:$0xf0]  ;;  %v6955_v47 = vld [vmem:[#allocation5 + $0x4cc] sm:$0xf] }
 0x15a   :  { %v5228_v48 = vld [vmem:[#allocation5 + $0x4d8] sm:$0xf0]  ;;  %v6987_v50 = vld [vmem:[#allocation5 + $0x5cc] sm:$0xf] }
 0x15b   :  { %3236 = vmatpush.bf16.msrb.mxu1 %v4831_v2  ;;  %3249 = vmatpush.bf16.msrb.mxu2 %v4959_v3  ;;  %v5039_v2 = vor.u32 %v6907_v53, %v5036_v54  ;;  %v4764_v3 = vld [vmem:[#allocation5 + $0x138] sm:$0xf0]  ;;  %v7019_v53 = vld [vmem:[#allocation5 + $0x6cc] sm:$0xf] }
 0x15c   :  { %v4767_v11 = vor.u32 %v6839_v0, %v4764_v3  ;;  %v5356_v52 = vld [vmem:[#allocation5 + $0x5d8] sm:$0xf0]  ;;  %v6951_v63 = vld [vmem:[#allocation5 + $0x4ac] sm:$0xf] }
 0x15d   :  { %3262 = vmatpush.bf16.msrb.mxu3 %v5087_v7  ;;  %3224 = vmatpush.bf16.msrb.mxu0 %v4687_v13  ;;  %v5020_v7 = vld [vmem:[#allocation5 + $0x338] sm:$0xf0]  ;;  %v6835_v13 = vld [vmem:[#allocation5 + $0x10c] sm:$0xf] }
 0x15e   :  { %v5023_v14 = vor.u32 %v6903_v6, %v5020_v7  ;;  %v5484_v54 = vld [vmem:[#allocation5 + $0x6d8] sm:$0xf0]  ;;  %v6983_v1 = vld [vmem:[#allocation5 + $0x5ac] sm:$0xf] }
 0x15f   :  { %3237 = vmatpush.bf16.msrb.mxu1 %v4815_v56  ;;  %3250 = vmatpush.bf16.msrb.mxu2 %v4943_v27  ;;  %v6867_v56 = vld [vmem:[#allocation5 + $0x20c] sm:$0xf]  ;;  %v2998_v27 = vpop.f32.mrf.mxu2  ;;  %v3011_v21 = vpop.f32.mrf.mxu3  ;;  %v5612_v58 = vld [vmem:[#allocation5 + $0x7d8] sm:$0xf0]  ;;  %v5487_v62 = vor.u32 %v7019_v53, %v5484_v54 }
 0x160   :  { %v5212_v0 = vld [vmem:[#allocation5 + $0x4b8] sm:$0xf0]  ;;  %v7015_v4 = vld [vmem:[#allocation5 + $0x6ac] sm:$0xf] }
 0x161   :  { %3263 = vmatpush.bf16.msrb.mxu3 %v5071_v23  ;;  %3225 = vmatpush.bf16.msrb.mxu0 %v4671_v35  ;;  %v6959_v23 = vld [vmem:[#allocation5 + $0x4ec] sm:$0xf]  ;;  %v4751_v35 = vor.u32 %v6835_v13, %v4748_v59  ;;  %v5340_v3 = vld [vmem:[#allocation5 + $0x5b8] sm:$0xf0] }
 0x162   :  { %v5247_v45 = vor.u32 %v6959_v23, %v5244_v24  ;;  %v5468_v5 = vld [vmem:[#allocation5 + $0x6b8] sm:$0xf0]  ;;  %v7047_v6 = vld [vmem:[#allocation5 + $0x7ac] sm:$0xf]  ;;  %v5343_v9 = vor.u32 %v6983_v1, %v5340_v3 }
 0x163   :  { %3238 = vmatpush.bf16.msrb.mxu1 %v4799_v36  ;;  %3251 = vmatpush.bf16.msrb.mxu2 %v4927_v37  ;;  %v4879_v36 = vor.u32 %v6867_v56, %v4876_v15  ;;  %v7055_v37 = vld [vmem:[#allocation5 + $0x7ec] sm:$0xf]  ;;  %v5596_v7 = vld [vmem:[#allocation5 + $0x7b8] sm:$0xf0]  ;;  %v5471_v10 = vor.u32 %v7015_v4, %v5468_v5 }
 0x164   :  { %v5631_v51 = vor.u32 %v7055_v37, %v5628_v39  ;;  %v6979_v13 = vld [vmem:[#allocation5 + $0x58c] sm:$0xf]  ;;  %v5599_v59 = vor.u32 %v7047_v6, %v5596_v7  ;;  %v5452_v27 = vld [vmem:[#allocation5 + $0x698] sm:$0xf0] }
 0x165   :  { %3264 = vmatpush.bf16.msrb.mxu3 %v5055_v49  ;;  %3226 = vmatpush.bf16.msrb.mxu0 %v4655_v55  ;;  %v5503_v49 = vor.u32 %v7023_v32, %v5500_v34  ;;  %v7051_v55 = vld [vmem:[#allocation5 + $0x7cc] sm:$0xf]  ;;  %v5580_v15 = vld [vmem:[#allocation5 + $0x798] sm:$0xf0] }
 0x166   :  { %v7011_v56 = vld [vmem:[#allocation5 + $0x68c] sm:$0xf]  ;;  %v5180_v24 = vld [vmem:[#allocation5 + $0x478] sm:$0xf0] }
 0x167   :  { %3239 = vmatpush.bf16.msrb.mxu1 %v4783_v60  ;;  %3252 = vmatpush.bf16.msrb.mxu2 %v4911_v61  ;;  %v5231_v60 = vor.u32 %v6955_v47, %v5228_v48  ;;  %v5359_v61 = vor.u32 %v6987_v50, %v5356_v52  ;;  %v5455_v21 = vor.u32 %v7011_v56, %v5452_v27  ;;  %v6943_v23 = vld [vmem:[#allocation5 + $0x46c] sm:$0xf]  ;;  %v5308_v32 = vld [vmem:[#allocation5 + $0x578] sm:$0xf0] }
 0x168   :  { %v6975_v26 = vld [vmem:[#allocation5 + $0x56c] sm:$0xf]  ;;  %v5564_v37 = vld [vmem:[#allocation5 + $0x778] sm:$0xf0]  ;;  %v5183_v39 = vor.u32 %v6943_v23, %v5180_v24 }
 0x169   :  { %3265 = vmatpush.bf16.msrb.mxu3 %v5039_v2  ;;  %3227 = vmatpush.bf16.msrb.mxu0 %v4639_v8  ;;  %v5615_v2 = vor.u32 %v7051_v55, %v5612_v58  ;;  %v5215_v8 = vor.u32 %v6951_v63, %v5212_v0  ;;  %v7007_v34 = vld [vmem:[#allocation5 + $0x66c] sm:$0xf]  ;;  %v5292_v50 = vld [vmem:[#allocation5 + $0x558] sm:$0xf0] }
 0x16a   :  { %v5420_v52 = vld [vmem:[#allocation5 + $0x658] sm:$0xf0]  ;;  %v7035_v55 = vld [vmem:[#allocation5 + $0x74c] sm:$0xf] }
 0x16b   :  { %3240 = vmatpush.bf16.msrb.mxu1 %v4767_v11  ;;  %3253 = vmatpush.bf16.msrb.mxu2 %v4895_v12  ;;  %v6947_v11 = vld [vmem:[#allocation5 + $0x48c] sm:$0xf]  ;;  %v5196_v12 = vld [vmem:[#allocation5 + $0x498] sm:$0xf0] }
 0x16c   :  { %v5199_v16 = vor.u32 %v6947_v11, %v5196_v12  ;;  %v5548_v58 = vld [vmem:[#allocation5 + $0x758] sm:$0xf0]  ;;  %v6967_v4 = vld [vmem:[#allocation5 + $0x52c] sm:$0xf] }
 0x16d   :  { %3266 = vmatpush.bf16.msrb.mxu3 %v5023_v14  ;;  %3228 = vmatpush.bf16.msrb.mxu0 %v4623_v28  ;;  %v3022_v14 = vpop.f32.mrf.mxu0  ;;  %v5148_v3 = vld [vmem:[#allocation5 + $0x438] sm:$0xf0]  ;;  %v5551_v5 = vor.u32 %v7035_v55, %v5548_v58  ;;  %v6999_v7 = vld [vmem:[#allocation5 + $0x62c] sm:$0xf] }
 0x16e   :  { %v5276_v6 = vld [vmem:[#allocation5 + $0x538] sm:$0xf0]  ;;  %v6931_v12 = vld [vmem:[#allocation5 + $0x40c] sm:$0xf] }
 0x16f   :  { %3241 = vmatpush.bf16.msrb.mxu1 %v4751_v35  ;;  %3254 = vmatpush.bf16.msrb.mxu2 %v4879_v36  ;;  %v5436_v35 = vld [vmem:[#allocation5 + $0x678] sm:$0xf0]  ;;  %v7039_v36 = vld [vmem:[#allocation5 + $0x76c] sm:$0xf] }
 0x170   :  { %3229 = vmatmul.bf16.vlgmr.msrb.gmra.mxu0 %v7799_v19  ;;  %v7043_v19 = vld [vmem:[#allocation5 + $0x78c] sm:$0xf]  ;;  %v5567_v47 = vor.u32 %v7039_v36, %v5564_v37  ;;  %v5260_v27 = vld [vmem:[#allocation5 + $0x518] sm:$0xf0] }
 0x171   :  { %3267 = vmatpush.bf16.msrb.mxu3 %v5007_v43  ;;  %3273 = vmatpush.bf16.msra.mxu0 %v5247_v45  ;;  %v5583_v28 = vor.u32 %v7043_v19, %v5580_v15  ;;  %v5439_v43 = vor.u32 %v7007_v34, %v5436_v35  ;;  %v6939_v45 = vld [vmem:[#allocation5 + $0x44c] sm:$0xf]  ;;  %v5388_v15 = vld [vmem:[#allocation5 + $0x618] sm:$0xf0] }
 0x172   :  { %3255 = vmatmul.bf16.vlgmr.msrb.gmra.mxu2 %v7797_v18  ;;  %3242 = vmatmul.bf16.vlgmr.msrb.gmra.mxu1 %v7803_v22  ;;  %v5324_v18 = vld [vmem:[#allocation5 + $0x598] sm:$0xf0]  ;;  %v3035_v22 = vpop.f32.mrf.mxu1  ;;  %v6963_v56 = vld [vmem:[#allocation5 + $0x50c] sm:$0xf] }
 0x173   :  { %3286 = vmatpush.bf16.msra.mxu1 %v5375_v46  ;;  %3299 = vmatpush.bf16.msra.mxu2 %v5503_v49  ;;  %v5327_v17 = vor.u32 %v6979_v13, %v5324_v18  ;;  %v5164_v46 = vld [vmem:[#allocation5 + $0x458] sm:$0xf0]  ;;  %v6971_v49 = vld [vmem:[#allocation5 + $0x54c] sm:$0xf]  ;;  %v5263_v34 = vor.u32 %v6963_v56, %v5260_v27 }
 0x174   :  { %3268 = vmatmul.bf16.vlgmr.msrb.gmra.mxu3 %v7801_v20  ;;  %v3023_v20 = vadd.f32 %v3022_v14, %v7872_v57  ;;  %v5311_v57 = vor.u32 %v6975_v26, %v5308_v32  ;;  %v5295_v0 = vor.u32 %v6971_v49, %v5292_v50  ;;  %v5132_v13 = vld [vmem:[#allocation5 + $0x418] sm:$0xf0]  ;;  %v6995_v14 = vld [vmem:[#allocation5 + $0x60c] sm:$0xf] }
 0x175   :  { %3312 = vmatpush.bf16.msra.mxu3 %v5631_v51  ;;  %3274 = vmatpush.bf16.msra.mxu0 %v5231_v60  ;;  %v3048_v48 = vpop.f32.mrf.mxu2  ;;  %v7003_v51 = vld [vmem:[#allocation5 + $0x64c] sm:$0xf]  ;;  %v3024_v60 = vpop.f32.mrf.mxu0  ;;  %v5135_v26 = vor.u32 %v6931_v12, %v5132_v13  ;;  %v6012_v32 = vld [vmem:[#allocation5 + $0xaf8] sm:$0xf0]  ;;  %v5391_v35 = vor.u32 %v6995_v14, %v5388_v15 }
 0x176   :  { %v3036_v31 = vadd.f32 %v3035_v22, %v3023_v20  ;;  %v5423_v1 = vor.u32 %v7003_v51, %v5420_v52  ;;  %v7027_v20 = vld [vmem:[#allocation5 + $0x70c] sm:$0xf]  ;;  %v6140_v37 = vld [vmem:[#allocation5 + $0xbf8] sm:$0xf0] }
 0x177   :  { %3287 = vmatpush.bf16.msra.mxu1 %v5359_v61  ;;  %3300 = vmatpush.bf16.msra.mxu2 %v5487_v62  ;;  %v3061_v54 = vpop.f32.mrf.mxu3  ;;  %v5167_v61 = vor.u32 %v6939_v45, %v5164_v46  ;;  %v7119_v23 = vld [vmem:[#allocation5 + $0x9ec] sm:$0xf]  ;;  %v5740_v49 = vld [vmem:[#allocation5 + $0x8d8] sm:$0xf0] }
 0x178   :  { %v3049_v53 = vadd.f32 %v3048_v48, %v3036_v31  ;;  %v7151_v31 = vld [vmem:[#allocation5 + $0xaec] sm:$0xf]  ;;  %v5868_v50 = vld [vmem:[#allocation5 + $0x9d8] sm:$0xf0] }
 0x179   :  { %3313 = vmatpush.bf16.msra.mxu3 %v5615_v2  ;;  %3275 = vmatpush.bf16.msra.mxu0 %v5215_v8  ;;  %v6935_v2 = vld [vmem:[#allocation5 + $0x42c] sm:$0xf]  ;;  %v5404_v8 = vld [vmem:[#allocation5 + $0x638] sm:$0xf0]  ;;  %v6015_v45 = vor.u32 %v7151_v31, %v6012_v32 }
 0x17a   :  { %v3037_v62 = vpop.f32.mrf.mxu1  ;;  %v7879_v63 = vadd.f32 %v3061_v54, %v3049_v53  ;;  %v5151_v11 = vor.u32 %v6935_v2, %v5148_v3  ;;  %v5407_v18 = vor.u32 %v6999_v7, %v5404_v8  ;;  %v7183_v36 = vld [vmem:[#allocation5 + $0xbec] sm:$0xf]  ;;  %v5996_v52 = vld [vmem:[#allocation5 + $0xad8] sm:$0xf0] }
 0x17b   :  { %3288 = vmatpush.bf16.msra.mxu1 %v5343_v9  ;;  %3301 = vmatpush.bf16.msra.mxu2 %v5471_v10  ;;  %v7031_v9 = vld [vmem:[#allocation5 + $0x72c] sm:$0xf]  ;;  %v5532_v10 = vld [vmem:[#allocation5 + $0x738] sm:$0xf0]  ;;  %v6143_v48 = vor.u32 %v7183_v36, %v6140_v37 }
 0x17c   :  { %v5535_v19 = vor.u32 %v7031_v9, %v5532_v10  ;;  %v7083_v46 = vld [vmem:[#allocation5 + $0x8cc] sm:$0xf]  ;;  %v6124_v54 = vld [vmem:[#allocation5 + $0xbd8] sm:$0xf0] }
 0x17d   :  { %3314 = vmatpush.bf16.msra.mxu3 %v5599_v59  ;;  %3276 = vmatpush.bf16.msra.mxu0 %v5199_v16  ;;  %v5279_v59 = vor.u32 %v6967_v4, %v5276_v6  ;;  %v5516_v16 = vld [vmem:[#allocation5 + $0x718] sm:$0xf0]  ;;  %v3050_v22 = vpop.f32.mrf.mxu2  ;;  %v7147_v51 = vld [vmem:[#allocation5 + $0xacc] sm:$0xf]  ;;  %v5743_v55 = vor.u32 %v7083_v46, %v5740_v49 }
 0x17e   :  { %v7179_v53 = vld [vmem:[#allocation5 + $0xbcc] sm:$0xf]  ;;  %v5999_v60 = vor.u32 %v7147_v51, %v5996_v52  ;;  %v5724_v62 = vld [vmem:[#allocation5 + $0x8b8] sm:$0xf0] }
 0x17f   :  { %3289 = vmatpush.bf16.msra.mxu1 %v5327_v17  ;;  %3302 = vmatpush.bf16.msra.mxu2 %v5455_v21  ;;  %v7087_v17 = vld [vmem:[#allocation5 + $0x8ec] sm:$0xf]  ;;  %v5756_v21 = vld [vmem:[#allocation5 + $0x8f8] sm:$0xf0]  ;;  %v3063_v24 = vpop.f32.mrf.mxu3 }
 0x180   :  { %v5852_v2 = vld [vmem:[#allocation5 + $0x9b8] sm:$0xf0]  ;;  %v7143_v3 = vld [vmem:[#allocation5 + $0xaac] sm:$0xf] }
 0x181   :  { %3315 = vmatpush.bf16.msra.mxu3 %v5583_v28  ;;  %3277 = vmatpush.bf16.msra.mxu0 %v5183_v39  ;;  %v5884_v28 = vld [vmem:[#allocation5 + $0x9f8] sm:$0xf0]  ;;  %v5519_v39 = vor.u32 %v7027_v20, %v5516_v16  ;;  %v7075_v10 = vld [vmem:[#allocation5 + $0x88c] sm:$0xf] }
 0x182   :  { %v5980_v4 = vld [vmem:[#allocation5 + $0xab8] sm:$0xf0]  ;;  %v7171_v56 = vld [vmem:[#allocation5 + $0xb8c] sm:$0xf] }
 0x183   :  { %3290 = vmatpush.bf16.msra.mxu1 %v5311_v57  ;;  %3303 = vmatpush.bf16.msra.mxu2 %v5439_v43  ;;  %v5759_v57 = vor.u32 %v7087_v17, %v5756_v21  ;;  %v5887_v43 = vor.u32 %v7119_v23, %v5884_v28  ;;  %v6108_v6 = vld [vmem:[#allocation5 + $0xbb8] sm:$0xf0]  ;;  %v5983_v9 = vor.u32 %v7143_v3, %v5980_v4  ;;  %v7103_v20 = vld [vmem:[#allocation5 + $0x96c] sm:$0xf] }
 0x184   :  { %v5836_v13 = vld [vmem:[#allocation5 + $0x998] sm:$0xf0]  ;;  %v7135_v21 = vld [vmem:[#allocation5 + $0xa6c] sm:$0xf] }
 0x185   :  { %3316 = vmatpush.bf16.msra.mxu3 %v5567_v47  ;;  %3278 = vmatpush.bf16.msra.mxu0 %v5167_v61  ;;  %v7115_v47 = vld [vmem:[#allocation5 + $0x9cc] sm:$0xf]  ;;  %v5692_v15 = vld [vmem:[#allocation5 + $0x878] sm:$0xf0] }
 0x186   :  { %v5871_v58 = vor.u32 %v7115_v47, %v5868_v50  ;;  %v7079_v61 = vld [vmem:[#allocation5 + $0x8ac] sm:$0xf]  ;;  %v5820_v17 = vld [vmem:[#allocation5 + $0x978] sm:$0xf0] }
 0x187   :  { %3291 = vmatpush.bf16.msra.mxu1 %v5295_v0  ;;  %3304 = vmatpush.bf16.msra.mxu2 %v5423_v1  ;;  %v7111_v0 = vld [vmem:[#allocation5 + $0x9ac] sm:$0xf]  ;;  %v6127_v1 = vor.u32 %v7179_v53, %v6124_v54  ;;  %v5727_v7 = vor.u32 %v7079_v61, %v5724_v62  ;;  %v5948_v23 = vld [vmem:[#allocation5 + $0xa78] sm:$0xf0]  ;;  %v5823_v31 = vor.u32 %v7103_v20, %v5820_v17 }
 0x188   :  { %v5855_v8 = vor.u32 %v7111_v0, %v5852_v2  ;;  %v7167_v24 = vld [vmem:[#allocation5 + $0xb6c] sm:$0xf]  ;;  %v5951_v32 = vor.u32 %v7135_v21, %v5948_v23  ;;  %v6060_v47 = vld [vmem:[#allocation5 + $0xb58] sm:$0xf0] }
 0x189   :  { %3317 = vmatpush.bf16.msra.mxu3 %v5551_v5  ;;  %3279 = vmatpush.bf16.msra.mxu0 %v5151_v11  ;;  %v7175_v5 = vld [vmem:[#allocation5 + $0xbac] sm:$0xf]  ;;  %v5708_v11 = vld [vmem:[#allocation5 + $0x898] sm:$0xf0] }
 0x18a   :  { %v6111_v12 = vor.u32 %v7175_v5, %v6108_v6  ;;  %v7099_v36 = vld [vmem:[#allocation5 + $0x94c] sm:$0xf]  ;;  %v5660_v54 = vld [vmem:[#allocation5 + $0x838] sm:$0xf0] }
 0x18b   :  { %3292 = vmatpush.bf16.msra.mxu1 %v5279_v59  ;;  %3305 = vmatpush.bf16.msra.mxu2 %v5407_v18  ;;  %v7139_v59 = vld [vmem:[#allocation5 + $0xa8c] sm:$0xf]  ;;  %v5964_v18 = vld [vmem:[#allocation5 + $0xa98] sm:$0xf0] }
 0x18c   :  { %v5967_v14 = vor.u32 %v7139_v59, %v5964_v18  ;;  %v7163_v49 = vld [vmem:[#allocation5 + $0xb4c] sm:$0xf]  ;;  %v5788_v61 = vld [vmem:[#allocation5 + $0x938] sm:$0xf0] }
 0x18d   :  { %3318 = vmatpush.bf16.msra.mxu3 %v5535_v19  ;;  %3280 = vmatpush.bf16.msra.mxu0 %v5135_v26  ;;  %v7885_v27 = vpop.f32.mrf.mxu0  ;;  %v7071_v19 = vld [vmem:[#allocation5 + $0x86c] sm:$0xf]  ;;  %v6076_v26 = vld [vmem:[#allocation5 + $0xb78] sm:$0xf0] }
 0x18e   :  { %v5695_v28 = vor.u32 %v7071_v19, %v5692_v15  ;;  %v7063_v53 = vld [vmem:[#allocation5 + $0x82c] sm:$0xf]  ;;  %v5916_v0 = vld [vmem:[#allocation5 + $0xa38] sm:$0xf0]  ;;  %v6514_v19 = vld [vmem:[#allocation8 + $0x2e0] sm:$0xf] }
 0x18f   :  { %3293 = vmatpush.bf16.msra.mxu1 %v5263_v34  ;;  %3306 = vmatpush.bf16.msra.mxu2 %v5391_v35  ;;  %v7887_v16 = vpop.f32.mrf.mxu1  ;;  %v7067_v34 = vld [vmem:[#allocation5 + $0x84c] sm:$0xf]  ;;  %v5676_v35 = vld [vmem:[#allocation5 + $0x858] sm:$0xf0]  ;;  %v5663_v3 = vor.u32 %v7063_v53, %v5660_v54  ;;  %v7280_v15 = vld [vmem:[#allocation8 + $0x2ec] sm:$0xf0] }
 0x190   :  { %3281 = vmatmul.bf16.vlgmr.msra.gmra.mxu0 %v7811_v41  ;;  %v6092_v41 = vld [vmem:[#allocation5 + $0xb98] sm:$0xf0]  ;;  %v7127_v62 = vld [vmem:[#allocation5 + $0xa2c] sm:$0xf] }
 0x191   :  { %3319 = vmatpush.bf16.msra.mxu3 %v5519_v39  ;;  %3325 = vmatpush.bf16.msrb.mxu0 %v5759_v57  ;;  %v6095_v22 = vor.u32 %v7171_v56, %v6092_v41  ;;  %v6079_v39 = vor.u32 %v7167_v24, %v6076_v26  ;;  %v5804_v57 = vld [vmem:[#allocation5 + $0x958] sm:$0xf0]  ;;  %v7059_v4 = vld [vmem:[#allocation5 + $0x80c] sm:$0xf]  ;;  %v6258_v56 = vld [vmem:[#allocation8 + $0xe0] sm:$0xf]  ;;  %v6515_v24 = vor.u32 %v7280_v15, %v6514_v19 }
 0x192   :  { %3307 = vmatmul.bf16.vlgmr.msra.gmra.mxu2 %v7809_v38  ;;  %3294 = vmatmul.bf16.vlgmr.msra.gmra.mxu1 %v7815_v44  ;;  %v7107_v38 = vld [vmem:[#allocation5 + $0x98c] sm:$0xf]  ;;  %v5807_v51 = vor.u32 %v7099_v36, %v5804_v57  ;;  %v6044_v2 = vld [vmem:[#allocation5 + $0xb38] sm:$0xf0]  ;;  %v7216_v41 = vld [vmem:[#allocation8 + $0xec] sm:$0xf0] }
 0x193   :  { %3338 = vmatpush.bf16.msrb.mxu1 %v5887_v43  ;;  %3351 = vmatpush.bf16.msrb.mxu2 %v6015_v45  ;;  %v5839_v44 = vor.u32 %v7107_v38, %v5836_v13  ;;  %v7131_v43 = vld [vmem:[#allocation5 + $0xa4c] sm:$0xf]  ;;  %v5932_v45 = vld [vmem:[#allocation5 + $0xa58] sm:$0xf0]  ;;  %v6259_v21 = vor.u32 %v7216_v41, %v6258_v56  ;;  %v6242_v26 = vld [vmem:[#allocation8 + $0xc0] sm:$0xf] }
 0x194   :  { %3320 = vmatmul.bf16.vlgmr.msra.gmra.mxu3 %v7813_v42  ;;  %v5711_v42 = vor.u32 %v7075_v10, %v5708_v11  ;;  %v5935_v52 = vor.u32 %v7131_v43, %v5932_v45  ;;  %v5644_v5 = vld [vmem:[#allocation5 + $0x818] sm:$0xf0]  ;;  %v7123_v10 = vld [vmem:[#allocation5 + $0xa0c] sm:$0xf]  ;;  %v6226_v43 = vld [vmem:[#allocation8 + $0xa0] sm:$0xf] }
 0x195   :  { %3364 = vmatpush.bf16.msrb.mxu3 %v6143_v48  ;;  %3326 = vmatpush.bf16.msrb.mxu0 %v5743_v55  ;;  %v7889_v37 = vpop.f32.mrf.mxu2  ;;  %v5679_v48 = vor.u32 %v7067_v34, %v5676_v35  ;;  %v3076_v50 = vpop.f32.mrf.mxu0  ;;  %v7095_v55 = vld [vmem:[#allocation5 + $0x92c] sm:$0xf]  ;;  %v6028_v59 = vld [vmem:[#allocation5 + $0xb18] sm:$0xf0]  ;;  %v6498_v34 = vld [vmem:[#allocation8 + $0x2c0] sm:$0xf] }
 0x196   :  { %v5791_v6 = vor.u32 %v7095_v55, %v5788_v61  ;;  %v7155_v13 = vld [vmem:[#allocation5 + $0xb0c] sm:$0xf]  ;;  %v7276_v35 = vld [vmem:[#allocation8 + $0x2cc] sm:$0xf0]  ;;  %v6466_v61 = vld [vmem:[#allocation8 + $0x280] sm:$0xf] }
 0x197   :  { %3339 = vmatpush.bf16.msrb.mxu1 %v5871_v58  ;;  %3352 = vmatpush.bf16.msrb.mxu2 %v5999_v60  ;;  %v7891_v46 = vpop.f32.mrf.mxu3  ;;  %v3089_v58 = vpop.f32.mrf.mxu1  ;;  %v6063_v60 = vor.u32 %v7163_v49, %v6060_v47  ;;  %v6031_v17 = vor.u32 %v7155_v13, %v6028_v59  ;;  %v6499_v57 = vor.u32 %v7276_v35, %v6498_v34  ;;  %v7208_v45 = vld [vmem:[#allocation8 + $0xac] sm:$0xf0]  ;;  %v6354_v49 = vld [vmem:[#allocation8 + $0x1a0] sm:$0xf] }
 0x198   :  { %v7240_v47 = vld [vmem:[#allocation8 + $0x1ac] sm:$0xf0]  ;;  %v6227_v53 = vor.u32 %v7208_v45, %v6226_v43  ;;  %v6306_v59 = vld [vmem:[#allocation8 + $0x140] sm:$0xf] }
 0x199   :  { %3365 = vmatpush.bf16.msrb.mxu3 %v6127_v1  ;;  %3327 = vmatpush.bf16.msrb.mxu0 %v5727_v7  ;;  %v7159_v1 = vld [vmem:[#allocation5 + $0xb2c] sm:$0xf]  ;;  %v5919_v7 = vor.u32 %v7127_v62, %v5916_v0  ;;  %v7272_v50 = vld [vmem:[#allocation8 + $0x2ac] sm:$0xf0]  ;;  %v6355_v54 = vor.u32 %v7240_v47, %v6354_v49  ;;  %v6434_v41 = vld [vmem:[#allocation8 + $0x240] sm:$0xf] }
 0x19a   :  { %v6047_v38 = vor.u32 %v7159_v1, %v6044_v2  ;;  %v7204_v58 = vld [vmem:[#allocation8 + $0x8c] sm:$0xf0]  ;;  %v6402_v45 = vld [vmem:[#allocation8 + $0x200] sm:$0xf]  ;;  %v7214_v47 = vld [vmem:[#allocation8 + $0xe4] sm:$0xf] }
 0x19b   :  { %3340 = vmatpush.bf16.msrb.mxu1 %v5855_v8  ;;  %3353 = vmatpush.bf16.msrb.mxu2 %v5983_v9  ;;  %v7091_v8 = vld [vmem:[#allocation5 + $0x90c] sm:$0xf]  ;;  %v5772_v9 = vld [vmem:[#allocation5 + $0x918] sm:$0xf0]  ;;  %v7268_v62 = vld [vmem:[#allocation8 + $0x28c] sm:$0xf0] }
 0x19c   :  { %v5775_v20 = vor.u32 %v7091_v8, %v5772_v9  ;;  %v6467_v2 = vor.u32 %v7268_v62, %v6466_v61  ;;  %v6450_v8 = vld [vmem:[#allocation8 + $0x260] sm:$0xf]  ;;  %v7264_v9 = vld [vmem:[#allocation8 + $0x26c] sm:$0xf0]  ;;  %v3378_v61 = vmax.f32 %v7879_v63, 0.0 }
 0x19d   :  { %3366 = vmatpush.bf16.msrb.mxu3 %v6111_v12  ;;  %3328 = vmatpush.bf16.msrb.mxu0 %v5711_v42  ;;  %v3102_v11 = vpop.f32.mrf.mxu2  ;;  %v5900_v12 = vld [vmem:[#allocation5 + $0xa18] sm:$0xf0]  ;;  %v6386_v42 = vld [vmem:[#allocation8 + $0x1e0] sm:$0xf]  ;;  %v7196_v13 = vld [vmem:[#allocation8 + $0x4c] sm:$0xf0] }
 0x19e   :  { %v7228_v56 = vld [vmem:[#allocation8 + $0x14c] sm:$0xf0] }
 0x19f   :  { %3341 = vmatpush.bf16.msrb.mxu1 %v5839_v44  ;;  %3354 = vmatpush.bf16.msrb.mxu2 %v5967_v14  ;;  %v3115_v18 = vpop.f32.mrf.mxu3  ;;  %v5647_v44 = vor.u32 %v7059_v4, %v5644_v5  ;;  %v7248_v14 = vld [vmem:[#allocation8 + $0x1ec] sm:$0xf0]  ;;  %v6322_v5 = vld [vmem:[#allocation8 + $0x160] sm:$0xf] }
 0x1a0   :  { %v6387_v23 = vor.u32 %v7248_v14, %v6386_v42  ;;  %v7200_v4 = vld [vmem:[#allocation8 + $0x6c] sm:$0xf0] }
 0x1a1   :  { %3367 = vmatpush.bf16.msrb.mxu3 %v6095_v22  ;;  %3329 = vmatpush.bf16.msrb.mxu0 %v5695_v28  ;;  %v5903_v22 = vor.u32 %v7123_v10, %v5900_v12  ;;  %v7212_v28 = vld [vmem:[#allocation8 + $0xcc] sm:$0xf0]  ;;  %v6178_v12 = vld [vmem:[#allocation8 + $0x40] sm:$0xf] }
 0x1a2   :  { %v6243_v36 = vor.u32 %v7212_v28, %v6242_v26  ;;  %v7260_v42 = vld [vmem:[#allocation8 + $0x24c] sm:$0xf0]  ;;  %v6179_v14 = vor.u32 %v7196_v13, %v6178_v12  ;;  %v6418_v26 = vld [vmem:[#allocation8 + $0x220] sm:$0xf]  ;;  %v6356_v12 = vld [vmem:[#allocation8 + $0x1b0] sm:$0xf0] }
 0x1a3   :  { %3342 = vmatpush.bf16.msrb.mxu1 %v5823_v31  ;;  %3355 = vmatpush.bf16.msrb.mxu2 %v5951_v32  ;;  %v6370_v31 = vld [vmem:[#allocation8 + $0x1c0] sm:$0xf]  ;;  %v7244_v32 = vld [vmem:[#allocation8 + $0x1cc] sm:$0xf0]  ;;  %v7270_v13 = vld [vmem:[#allocation8 + $0x2a4] sm:$0xf] }
 0x1a4   :  { %v7256_v28 = vld [vmem:[#allocation8 + $0x22c] sm:$0xf0] }
 0x1a5   :  { %3368 = vmatpush.bf16.msrb.mxu3 %v6079_v39  ;;  %3330 = vmatpush.bf16.msrb.mxu0 %v5679_v48  ;;  %v6371_v39 = vor.u32 %v7244_v32, %v6370_v31  ;;  %v6482_v48 = vld [vmem:[#allocation8 + $0x2a0] sm:$0xf]  ;;  %v7252_v49 = vld [vmem:[#allocation8 + $0x20c] sm:$0xf0] }
 0x1a6   :  { %v6483_v55 = vor.u32 %v7272_v50, %v6482_v48  ;;  %v6146_v32 = vld [vmem:[#allocation8] sm:$0xf]  ;;  %v6260_v50 = vld [vmem:[#allocation8 + $0xf0] sm:$0xf0] }
 0x1a7   :  { %3343 = vmatpush.bf16.msrb.mxu1 %v5807_v51  ;;  %3356 = vmatpush.bf16.msrb.mxu2 %v5935_v52  ;;  %v7897_v51 = vld [vmem:[#allocation7] sm:$0xf]  ;;  %v6263_v62 = vor.u32 %v7214_v47, %v6260_v50  ;;  %v7226_v47 = vld [vmem:[#allocation8 + $0x144] sm:$0xf] }
 0x1a8   :  { %v785_v52 = vperm.slane %v7897_v51, 2 }
 0x1a9   :  { %3369 = vmatpush.bf16.msrb.mxu3 %v6063_v60  ;;  %3331 = vmatpush.bf16.msrb.mxu0 %v5663_v3  ;;  %v7236_v60 = vld [vmem:[#allocation8 + $0x18c] sm:$0xf0]  ;;  %v6194_v3 = vld [vmem:[#allocation8 + $0x60] sm:$0xf] }
 0x1aa   :  { %v6195_v10 = vor.u32 %v7200_v4, %v6194_v3  ;;  %v7242_v3 = vld [vmem:[#allocation8 + $0x1c4] sm:$0xf]  ;;  %v6372_v4 = vld [vmem:[#allocation8 + $0x1d0] sm:$0xf0] }
 0x1ab   :  { %3344 = vmatpush.bf16.msrb.mxu1 %v5791_v6  ;;  %3357 = vmatpush.bf16.msrb.mxu2 %v5919_v7  ;;  %v7232_v7 = vld [vmem:[#allocation8 + $0x16c] sm:$0xf0] }
 0x1ad   :  { %3370 = vmatpush.bf16.msrb.mxu3 %v6047_v38  ;;  %3332 = vmatpush.bf16.msrb.mxu0 %v5647_v44  ;;  %v7900_v0 = vpop.f32.mrf.mxu0  ;;  %v6323_v38 = vor.u32 %v7232_v7, %v6322_v5  ;;  %v7274_v5 = vld [vmem:[#allocation8 + $0x2c4] sm:$0xf]  ;;  %v6500_v7 = vld [vmem:[#allocation8 + $0x2d0] sm:$0xf0] }
 0x1af   :  { %3345 = vmatpush.bf16.msrb.mxu1 %v5775_v20  ;;  %3358 = vmatpush.bf16.msrb.mxu2 %v5903_v22  ;;  %v7903_v6 = vpop.f32.mrf.mxu1  ;;  %v6435_v20 = vor.u32 %v7260_v42, %v6434_v41  ;;  %v6162_v22 = vld [vmem:[#allocation8 + $0x20] sm:$0xf]  ;;  %v7202_v42 = vld [vmem:[#allocation8 + $0x84] sm:$0xf] }
 0x1b0   :  { %3333 = vmatmul.bf16.vlgmr.msrb.gmra.mxu0 %v7821_v25  ;;  %v6210_v25 = vld [vmem:[#allocation8 + $0x80] sm:$0xf] }
 0x1b1   :  { %3371 = vmatpush.bf16.msrb.mxu3 %v6031_v17  ;;  %4034 = vmatpush.bf16.msra.mxu0 %v6259_v21  ;;  %v7192_v17 = vld [vmem:[#allocation8 + $0x2c] sm:$0xf0]  ;;  %v6290_v21 = vld [vmem:[#allocation8 + $0x120] sm:$0xf] }
 0x1b2   :  { %3346 = vmatmul.bf16.vlgmr.msrb.gmra.mxu1 %v7825_v30  ;;  %3359 = vmatmul.bf16.vlgmr.msrb.gmra.mxu2 %v7823_v29  ;;  %v6338_v30 = vld [vmem:[#allocation8 + $0x180] sm:$0xf]  ;;  %v6211_v29 = vor.u32 %v7204_v58, %v6210_v25  ;;  %v6163_v31 = vor.u32 %v7192_v17, %v6162_v22  ;;  %v6516_v25 = vld [vmem:[#allocation8 + $0x2f0] sm:$0xf0] }
 0x1b3   :  { %4047 = vmatpush.bf16.msra.mxu1 %v6387_v23  ;;  %4060 = vmatpush.bf16.msra.mxu2 %v6515_v24  ;;  %v6339_v1 = vor.u32 %v7236_v60, %v6338_v30  ;;  %v7224_v24 = vld [vmem:[#allocation8 + $0x12c] sm:$0xf0]  ;;  %v6403_v60 = vor.u32 %v7252_v49, %v6402_v45  ;;  %v6468_v22 = vld [vmem:[#allocation8 + $0x290] sm:$0xf0] }
 0x1b4   :  { %3372 = vmatmul.bf16.vlgmr.msrb.gmra.mxu3 %v7827_v33  ;;  %v3075_v33 = vadd.f32 %v7885_v27, %v785_v52  ;;  %v6451_v27 = vor.u32 %v7264_v9, %v6450_v8  ;;  %v6291_v35 = vor.u32 %v7224_v24, %v6290_v21  ;;  %v7246_v52 = vld [vmem:[#allocation8 + $0x1e4] sm:$0xf]  ;;  %v6375_v9 = vor.u32 %v7242_v3, %v6372_v4  ;;  %v6180_v49 = vld [vmem:[#allocation8 + $0x50] sm:$0xf0] }
 0x1b5   :  { %4035 = vmatpush.bf16.msra.mxu0 %v6243_v36  ;;  %v7906_v18 = vpop.f32.mrf.mxu2  ;;  %v3128_v19 = vpop.f32.mrf.mxu0  ;;  %v7188_v36 = vld [vmem:[#allocation8 + $0xc] sm:$0xf0]  ;;  %v6420_v3 = vld [vmem:[#allocation8 + $0x230] sm:$0xf0] }
 0x1b6   :  { %v3088_v11 = vadd.f32 %v7887_v16, %v3075_v33  ;;  %v6307_v16 = vor.u32 %v7228_v56, %v6306_v59  ;;  %v7210_v33 = vld [vmem:[#allocation8 + $0xc4] sm:$0xf]  ;;  %v6212_v19 = vld [vmem:[#allocation8 + $0x90] sm:$0xf0] }
 0x1b7   :  { %4048 = vmatpush.bf16.msra.mxu1 %v6371_v39  ;;  %4061 = vmatpush.bf16.msra.mxu2 %v6499_v57  ;;  %v7908_v44 = vpop.f32.mrf.mxu3  ;;  %v3141_v23 = vpop.f32.mrf.mxu1  ;;  %v6274_v39 = vld [vmem:[#allocation8 + $0x100] sm:$0xf]  ;;  %v7220_v57 = vld [vmem:[#allocation8 + $0x10c] sm:$0xf0] }
 0x1b8   :  { %v3101_v15 = vadd.f32 %v7889_v37, %v3088_v11  ;;  %v6419_v37 = vor.u32 %v7256_v28, %v6418_v26  ;;  %v6275_v30 = vor.u32 %v7220_v57, %v6274_v39  ;;  %v6503_v11 = vor.u32 %v7274_v5, %v6500_v7  ;;  %v7198_v26 = vld [vmem:[#allocation8 + $0x64] sm:$0xf]  ;;  %v6148_v7 = vld [vmem:[#allocation8 + $0x10] sm:$0xf0] }
 0x1b9   :  { %4036 = vmatpush.bf16.msra.mxu0 %v6227_v53  ;;  %v6388_v53 = vld [vmem:[#allocation8 + $0x1f0] sm:$0xf0]  ;;  %v6215_v23 = vor.u32 %v7202_v42, %v6212_v19  ;;  %v7186_v5 = vld [vmem:[#allocation8 + $0x4] sm:$0xf]  ;;  %v7249_v19 = vld [vmem:[#allocation8 + $0x1f4] sm:$0xf0] }
 0x1ba   :  { %v3114_v34 = vadd.f32 %v7891_v46, %v3101_v15  ;;  %v3377_v46 = vmax.f32 %v7858_v40, 0.0  ;;  %v7234_v15 = vld [vmem:[#allocation8 + $0x184] sm:$0xf] }
 0x1bb   :  { %4049 = vmatpush.bf16.msra.mxu1 %v6355_v54  ;;  %4062 = vmatpush.bf16.msra.mxu2 %v6483_v55  ;;  %v6147_v54 = vor.u32 %v7188_v36, %v6146_v32  ;;  %v7278_v55 = vld [vmem:[#allocation8 + $0x2e4] sm:$0xf]  ;;  %v6196_v32 = vld [vmem:[#allocation8 + $0x70] sm:$0xf0] }
 0x1bc   :  { %v3127_v58 = vadd.f32 %v7900_v0, %v3114_v34  ;;  %v7915_v8 = vpack.c.bf16 %v3377_v46, %v3377_v46  ;;  %v7918_v0 = vpack.c.bf16 %v3378_v61, %v3378_v61  ;;  %v7230_v34 = vld [vmem:[#allocation8 + $0x164] sm:$0xf]  ;;  %v6452_v36 = vld [vmem:[#allocation8 + $0x270] sm:$0xf0]  ;;  %v6199_v39 = vor.u32 %v7198_v26, %v6196_v32  ;;  %v6626_v32 = vld [vmem:[#allocation8 + $0x3c0] sm:$0xf] }
 0x1bd   :  { %4037 = vmatpush.bf16.msra.mxu0 %v6211_v29  ;;  %v3154_v43 = vpop.f32.mrf.mxu2  ;;  %v6391_v29 = vor.u32 %v7246_v52, %v6388_v53  ;;  %v7258_v52 = vld [vmem:[#allocation8 + $0x244] sm:$0xf]  ;;  %v6436_v53 = vld [vmem:[#allocation8 + $0x250] sm:$0xf0] }
 0x1be   :  { %v3140_v40 = vadd.f32 %v7903_v6, %v3127_v58  ;;  %v6484_v6 = vld [vmem:[#allocation8 + $0x2b0] sm:$0xf0] }
 0x1bf   :  { %4050 = vmatpush.bf16.msra.mxu1 %v6339_v1  ;;  %4063 = vmatpush.bf16.msra.mxu2 %v6467_v2  ;;  %v3167_v48 = vpop.f32.mrf.mxu3  ;;  %v6519_v1 = vor.u32 %v7278_v55, %v6516_v25  ;;  %v6244_v2 = vld [vmem:[#allocation8 + $0xd0] sm:$0xf0] }
 0x1c0   :  { %v6247_v63 = vor.u32 %v7210_v33, %v6244_v2  ;;  %v3153_v59 = vadd.f32 %v7906_v18, %v3140_v40  ;;  %v6308_v48 = vld [vmem:[#allocation8 + $0x150] sm:$0xf0]  ;;  %v7222_v33 = vld [vmem:[#allocation8 + $0x124] sm:$0xf] }
 0x1c1   :  { %4038 = vmatpush.bf16.msra.mxu0 %v6195_v10  ;;  %v7206_v10 = vld [vmem:[#allocation8 + $0xa4] sm:$0xf]  ;;  %v6311_v58 = vor.u32 %v7226_v47, %v6308_v48  ;;  %v6362_v47 = vld [vmem:[#allocation8 + $0x1a8] sm:$0xf]  ;;  %v7241_v48 = vld [vmem:[#allocation8 + $0x1b4] sm:$0xf0] }
 0x1c2   :  { %v3166_v17 = vadd.f32 %v7908_v44, %v3153_v59  ;;  %v7194_v44 = vld [vmem:[#allocation8 + $0x44] sm:$0xf]  ;;  %v6266_v59 = vld [vmem:[#allocation8 + $0xe8] sm:$0xf] }
 0x1c3   :  { %4051 = vmatpush.bf16.msra.mxu1 %v6323_v38  ;;  %4064 = vmatpush.bf16.msra.mxu2 %v6451_v27  ;;  %v6228_v38 = vld [vmem:[#allocation8 + $0xb0] sm:$0xf0]  ;;  %v7238_v27 = vld [vmem:[#allocation8 + $0x1a4] sm:$0xf]  ;;  %v6183_v46 = vor.u32 %v7194_v44, %v6180_v49  ;;  %v6234_v44 = vld [vmem:[#allocation8 + $0xa8] sm:$0xf] }
 0x1c4   :  { %v6231_v56 = vor.u32 %v7206_v10, %v6228_v38  ;;  %v6359_v41 = vor.u32 %v7238_v27, %v6356_v12  ;;  %v7254_v2 = vld [vmem:[#allocation8 + $0x224] sm:$0xf]  ;;  %v6276_v10 = vld [vmem:[#allocation8 + $0x110] sm:$0xf0] }
 0x1c5   :  { %4039 = vmatpush.bf16.msra.mxu0 %v6179_v14  ;;  %v6487_v14 = vor.u32 %v7270_v13, %v6484_v6  ;;  %v6423_v27 = vor.u32 %v7254_v2, %v6420_v3  ;;  %v6404_v12 = vld [vmem:[#allocation8 + $0x210] sm:$0xf0]  ;;  %v6642_v13 = vld [vmem:[#allocation8 + $0x3e0] sm:$0xf]  ;;  %v7312_v6 = vld [vmem:[#allocation8 + $0x3ec] sm:$0xf0] }
 0x1c6   :  { %v7269_v2 = vld [vmem:[#allocation8 + $0x294] sm:$0xf0] }
 0x1c7   :  { %4052 = vmatpush.bf16.msra.mxu1 %v6307_v16  ;;  %4065 = vmatpush.bf16.msra.mxu2 %v6435_v20  ;;  %v6340_v16 = vld [vmem:[#allocation8 + $0x190] sm:$0xf0]  ;;  %v7266_v20 = vld [vmem:[#allocation8 + $0x284] sm:$0xf] }
 0x1c8   :  { %v6343_v24 = vor.u32 %v7234_v15, %v6340_v16  ;;  %v6522_v15 = vld [vmem:[#allocation8 + $0x2e8] sm:$0xf]  ;;  %v7281_v16 = vld [vmem:[#allocation8 + $0x2f4] sm:$0xf0] }
 0x1c9   :  { %4040 = vmatpush.bf16.msra.mxu0 %v6163_v31  ;;  %v6471_v31 = vor.u32 %v7266_v20, %v6468_v22  ;;  %v6151_v22 = vor.u32 %v7186_v5, %v6148_v7  ;;  %v6202_v5 = vld [vmem:[#allocation8 + $0x68] sm:$0xf]  ;;  %v7201_v7 = vld [vmem:[#allocation8 + $0x74] sm:$0xf0] }
 0x1cb   :  { %4053 = vmatpush.bf16.msra.mxu1 %v6291_v35  ;;  %4066 = vmatpush.bf16.msra.mxu2 %v6419_v37  ;;  %v6324_v35 = vld [vmem:[#allocation8 + $0x170] sm:$0xf0]  ;;  %v7262_v37 = vld [vmem:[#allocation8 + $0x264] sm:$0xf] }
 0x1cc   :  { %v6327_v57 = vor.u32 %v7230_v34, %v6324_v35  ;;  %v6455_v45 = vor.u32 %v7262_v37, %v6452_v36  ;;  %v7308_v34 = vld [vmem:[#allocation8 + $0x3cc] sm:$0xf0]  ;;  %v7245_v35 = vld [vmem:[#allocation8 + $0x1d4] sm:$0xf0]  ;;  %v6506_v37 = vld [vmem:[#allocation8 + $0x2c8] sm:$0xf] }
 0x1cd   :  { %4041 = vmatpush.bf16.msra.mxu0 %v6147_v54  ;;  %v3178_v21 = vpop.f32.mrf.mxu0  ;;  %v7277_v36 = vld [vmem:[#allocation8 + $0x2d4] sm:$0xf0] }
 0x1ce   :  { %v3179_v28 = vadd.f32 %v3178_v21, %v3166_v17  ;;  %v6507_v49 = vor.u32 %v7277_v36, %v6506_v37  ;;  %v6298_v37 = vld [vmem:[#allocation8 + $0x128] sm:$0xf] }
 0x1cf   :  { %4054 = vmatpush.bf16.msra.mxu1 %v6275_v30  ;;  %4067 = vmatpush.bf16.msra.mxu2 %v6403_v60  ;;  %v3191_v18 = vpop.f32.mrf.mxu1  ;;  %v7190_v30 = vld [vmem:[#allocation8 + $0x24] sm:$0xf] }
 0x1d0   :  { %4042 = vmatmul.bf16.vlgmr.msra.gmra.mxu0 %v7915_v8  ;;  %v3192_v43 = vadd.f32 %v3191_v18, %v3179_v28  ;;  %v7213_v18 = vld [vmem:[#allocation8 + $0xd4] sm:$0xf0]  ;;  %v6523_v28 = vor.u32 %v7281_v16, %v6522_v15  ;;  %v6314_v16 = vld [vmem:[#allocation8 + $0x148] sm:$0xf] }
 0x1d1   :  { %4086 = vmatpush.bf16.msrb.mxu0 %v6263_v62  ;;  %v6439_v62 = vor.u32 %v7258_v52, %v6436_v53  ;;  %v7273_v52 = vld [vmem:[#allocation8 + $0x2b4] sm:$0xf0]  ;;  %v6610_v53 = vld [vmem:[#allocation8 + $0x3a0] sm:$0xf] }
 0x1d2   :  { %4055 = vmatmul.bf16.vlgmr.msra.gmra.mxu1 %v7918_v0 }
 0x1d3   :  { %4099 = vmatpush.bf16.msrb.mxu1 %v6391_v29  ;;  %4112 = vmatpush.bf16.msrb.mxu2 %v6519_v1  ;;  %v6164_v29 = vld [vmem:[#allocation8 + $0x30] sm:$0xf0] }
 0x1d4   :  { %v6292_v1 = vld [vmem:[#allocation8 + $0x130] sm:$0xf0]  ;;  %v6167_v40 = vor.u32 %v7190_v30, %v6164_v29  ;;  %v6363_v30 = vor.u32 %v7241_v48, %v6362_v47  ;;  %v7300_v29 = vld [vmem:[#allocation8 + $0x38c] sm:$0xf0]  ;;  %v6154_v47 = vld [vmem:[#allocation8 + $0x8] sm:$0xf] }
 0x1d5   :  { %4087 = vmatpush.bf16.msrb.mxu0 %v6247_v63  ;;  %v3204_v50 = vpop.f32.mrf.mxu2  ;;  %v3180_v25 = vpop.f32.mrf.mxu0  ;;  %v6295_v63 = vor.u32 %v7222_v33, %v6292_v1  ;;  %v7237_v33 = vld [vmem:[#allocation8 + $0x194] sm:$0xf0]  ;;  %v6474_v1 = vld [vmem:[#allocation8 + $0x288] sm:$0xf] }
 0x1d6   :  { %v3205_v54 = vadd.f32 %v3204_v50, %v3192_v43  ;;  %v7209_v43 = vld [vmem:[#allocation8 + $0xb4] sm:$0xf0]  ;;  %v6490_v50 = vld [vmem:[#allocation8 + $0x2a8] sm:$0xf] }
 0x1d7   :  { %4100 = vmatpush.bf16.msrb.mxu1 %v6375_v9  ;;  %4113 = vmatpush.bf16.msrb.mxu2 %v6503_v11  ;;  %v3217_v55 = vpop.f32.mrf.mxu3  ;;  %v3193_v60 = vpop.f32.mrf.mxu1  ;;  %v7218_v9 = vld [vmem:[#allocation8 + $0x104] sm:$0xf]  ;;  %v6235_v25 = vor.u32 %v7209_v43, %v6234_v44  ;;  %v7225_v44 = vld [vmem:[#allocation8 + $0x134] sm:$0xf0]  ;;  %v6426_v43 = vld [vmem:[#allocation8 + $0x228] sm:$0xf] }
 0x1d8   :  { %v3218_v61 = vadd.f32 %v3217_v55, %v3205_v54  ;;  %v7250_v11 = vld [vmem:[#allocation8 + $0x204] sm:$0xf]  ;;  %v6279_v17 = vor.u32 %v7218_v9, %v6276_v10  ;;  %v7304_v54 = vld [vmem:[#allocation8 + $0x3ac] sm:$0xf0]  ;;  %v6491_v60 = vor.u32 %v7273_v52, %v6490_v50  ;;  %v6330_v9 = vld [vmem:[#allocation8 + $0x168] sm:$0xf] }
 0x1d9   :  { %4088 = vmatpush.bf16.msrb.mxu0 %v6231_v56  ;;  %v7217_v56 = vld [vmem:[#allocation8 + $0xf4] sm:$0xf0]  ;;  %v6407_v21 = vor.u32 %v7250_v11, %v6404_v12  ;;  %v6611_v55 = vor.u32 %v7304_v54, %v6610_v53  ;;  %v6578_v11 = vld [vmem:[#allocation8 + $0x360] sm:$0xf]  ;;  %v6282_v53 = vld [vmem:[#allocation8 + $0x108] sm:$0xf] }
 0x1da   :  { %v3379_v4 = vmax.f32 %v3218_v61, 0.0  ;;  %v6346_v61 = vld [vmem:[#allocation8 + $0x188] sm:$0xf]  ;;  %v7233_v12 = vld [vmem:[#allocation8 + $0x174] sm:$0xf0] }
 0x1db   :  { %4101 = vmatpush.bf16.msrb.mxu1 %v6359_v41  ;;  %4114 = vmatpush.bf16.msrb.mxu2 %v6487_v14  ;;  %v6394_v41 = vld [vmem:[#allocation8 + $0x1e8] sm:$0xf]  ;;  %v6643_v14 = vor.u32 %v7312_v6, %v6642_v13  ;;  %v7265_v6 = vld [vmem:[#allocation8 + $0x274] sm:$0xf0] }
 0x1dc   :  { %v7924_v38 = vpack.c.bf16 %v3379_v4, %v3379_v4  ;;  %v6395_v26 = vor.u32 %v7249_v19, %v6394_v41  ;;  %v6458_v13 = vld [vmem:[#allocation8 + $0x268] sm:$0xf]  ;;  %v6203_v41 = vor.u32 %v7201_v7, %v6202_v5  ;;  %v6331_v19 = vor.u32 %v7233_v12, %v6330_v9  ;;  %v7189_v48 = vld [vmem:[#allocation8 + $0x14] sm:$0xf0] }
 0x1dd   :  { %4089 = vmatpush.bf16.msrb.mxu0 %v6215_v23  ;;  %v3206_v42 = vpop.f32.mrf.mxu2  ;;  %v6267_v23 = vor.u32 %v7217_v56, %v6266_v59  ;;  %4073 = vmatpush.bf16.msra.mxu3 %v6643_v14  ;;  %v7197_v14 = vld [vmem:[#allocation8 + $0x54] sm:$0xf0]  ;;  %v6459_v15 = vor.u32 %v7265_v6, %v6458_v13  ;;  %v6155_v7 = vor.u32 %v7189_v48, %v6154_v47  ;;  %v7211_v6 = vld [vmem:[#allocation8 + $0xcc] sm:$0xf]  ;;  %v6220_v48 = vld [vmem:[#allocation8 + $0x98] sm:$0xf0] }
 0x1de   :  { %4068 = vmatmul.bf16.vlgmr.msra.gmra.mxu2 %v7924_v38  ;;  %v6186_v42 = vld [vmem:[#allocation8 + $0x48] sm:$0xf]  ;;  %v7221_v54 = vld [vmem:[#allocation8 + $0x114] sm:$0xf0] }
 0x1df   :  { %4102 = vmatpush.bf16.msrb.mxu1 %v6343_v24  ;;  %4115 = vmatpush.bf16.msrb.mxu2 %v6471_v31  ;;  %v3219_v20 = vpop.f32.mrf.mxu3  ;;  %v6250_v24 = vld [vmem:[#allocation8 + $0xc8] sm:$0xf] }
 0x1e0   :  { %v6378_v31 = vld [vmem:[#allocation8 + $0x1c8] sm:$0xf]  ;;  %v6562_v20 = vld [vmem:[#allocation8 + $0x340] sm:$0xf] }
 0x1e1   :  { %4090 = vmatpush.bf16.msrb.mxu0 %v6199_v39  ;;  %v6627_v39 = vor.u32 %v7308_v34, %v6626_v32  ;;  %v7193_v32 = vld [vmem:[#allocation8 + $0x34] sm:$0xf0] }
 0x1e3   :  { %4103 = vmatpush.bf16.msrb.mxu1 %v6327_v57  ;;  %4116 = vmatpush.bf16.msrb.mxu2 %v6455_v45  ;;  %v6251_v57 = vor.u32 %v7213_v18, %v6250_v24  ;;  %v6379_v45 = vor.u32 %v7245_v35, %v6378_v31  ;;  %v6170_v31 = vld [vmem:[#allocation8 + $0x28] sm:$0xf] }
 0x1e4   :  { %4074 = vmatpush.bf16.msra.mxu3 %v6627_v39  ;;  %v6546_v39 = vld [vmem:[#allocation8 + $0x320] sm:$0xf]  ;;  %v6171_v52 = vor.u32 %v7193_v32, %v6170_v31  ;;  %v6236_v32 = vld [vmem:[#allocation8 + $0xb8] sm:$0xf0] }
 0x1e5   :  { %4091 = vmatpush.bf16.msrb.mxu0 %v6183_v46  ;;  %v6218_v46 = vld [vmem:[#allocation8 + $0x88] sm:$0xf] }
 0x1e7   :  { %4104 = vmatpush.bf16.msrb.mxu1 %v6311_v58  ;;  %4117 = vmatpush.bf16.msrb.mxu2 %v6439_v62  ;;  %v7205_v58 = vld [vmem:[#allocation8 + $0x94] sm:$0xf0]  ;;  %v6594_v62 = vld [vmem:[#allocation8 + $0x380] sm:$0xf] }
 0x1e8   :  { %4075 = vmatpush.bf16.msra.mxu3 %v6611_v55  ;;  %v6595_v3 = vor.u32 %v7300_v29, %v6594_v62  ;;  %v6219_v4 = vor.u32 %v7205_v58, %v6218_v46  ;;  %v6410_v55 = vld [vmem:[#allocation8 + $0x208] sm:$0xf]  ;;  %v7253_v58 = vld [vmem:[#allocation8 + $0x214] sm:$0xf0]  ;;  %v7310_v29 = vld [vmem:[#allocation8 + $0x3e4] sm:$0xf] }
 0x1e9   :  { %4092 = vmatpush.bf16.msrb.mxu0 %v6167_v40  ;;  %v6347_v40 = vor.u32 %v7237_v33, %v6346_v61  ;;  %v7215_v61 = vld [vmem:[#allocation8 + $0xec] sm:$0xf]  ;;  %v6644_v33 = vld [vmem:[#allocation8 + $0x3f0] sm:$0xf0] }
 0x1ea   :  { %v6647_v9 = vor.u32 %v7310_v29, %v6644_v33  ;;  %v6204_v29 = vld [vmem:[#allocation8 + $0x78] sm:$0xf0]  ;;  %v7231_v33 = vld [vmem:[#allocation8 + $0x16c] sm:$0xf] }
 0x1eb   :  { %4105 = vmatpush.bf16.msrb.mxu1 %v6295_v63  ;;  %4118 = vmatpush.bf16.msrb.mxu2 %v6423_v27  ;;  %v6475_v63 = vor.u32 %v7269_v2, %v6474_v1  ;;  %v7296_v27 = vld [vmem:[#allocation8 + $0x36c] sm:$0xf0]  ;;  %v6268_v1 = vld [vmem:[#allocation8 + $0xf8] sm:$0xf0]  ;;  %v7247_v2 = vld [vmem:[#allocation8 + $0x1ec] sm:$0xf] }
 0x1ec   :  { %4076 = vmatpush.bf16.msra.mxu3 %v6595_v3  ;;  %v6579_v56 = vor.u32 %v7296_v27, %v6578_v11  ;;  %v6396_v3 = vld [vmem:[#allocation8 + $0x1f8] sm:$0xf0]  ;;  %v6283_v11 = vor.u32 %v7221_v54, %v6282_v53  ;;  %v6411_v27 = vor.u32 %v7253_v58, %v6410_v55  ;;  %v6271_v12 = vor.u32 %v7215_v61, %v6268_v1  ;;  %v7267_v54 = vld [vmem:[#allocation8 + $0x28c] sm:$0xf]  ;;  %v6580_v61 = vld [vmem:[#allocation8 + $0x370] sm:$0xf0] }
 0x1ed   :  { %4093 = vmatpush.bf16.msrb.mxu0 %v6151_v22  ;;  %v7929_v10 = vpop.f32.mrf.mxu0  ;;  %v7292_v22 = vld [vmem:[#allocation8 + $0x34c] sm:$0xf0]  ;;  %v6399_v13 = vor.u32 %v7247_v2, %v6396_v3  ;;  %v786_v53 = vperm.slane %v7897_v51, 3  ;;  %v6476_v55 = vld [vmem:[#allocation8 + $0x298] sm:$0xf0] }
 0x1ee   :  { %v6332_v1 = vld [vmem:[#allocation8 + $0x178] sm:$0xf0]  ;;  %v7263_v3 = vld [vmem:[#allocation8 + $0x26c] sm:$0xf] }
 0x1ef   :  { %4106 = vmatpush.bf16.msrb.mxu1 %v6279_v17  ;;  %4119 = vmatpush.bf16.msrb.mxu2 %v6407_v21  ;;  %v7932_v59 = vpop.f32.mrf.mxu1  ;;  %v7229_v17 = vld [vmem:[#allocation8 + $0x154] sm:$0xf0]  ;;  %v6442_v21 = vld [vmem:[#allocation8 + $0x248] sm:$0xf]  ;;  %v3231_v51 = vadd.f32 %v7929_v10, %v786_v53  ;;  %v6412_v53 = vld [vmem:[#allocation8 + $0x218] sm:$0xf0] }
 0x1f0   :  { %4094 = vmatmul.bf16.vlgmr.msrb.gmra.mxu0 %v7915_v8  ;;  %4077 = vmatpush.bf16.msra.mxu3 %v6579_v56  ;;  %v6315_v34 = vor.u32 %v7229_v17, %v6314_v16  ;;  %v7306_v56 = vld [vmem:[#allocation8 + $0x3c4] sm:$0xf]  ;;  %v7275_v16 = vld [vmem:[#allocation8 + $0x2cc] sm:$0xf] }
 0x1f1   :  { %4138 = vmatpush.bf16.msra.mxu0 %v6267_v23  ;;  %v7261_v23 = vld [vmem:[#allocation8 + $0x254] sm:$0xf0]  ;;  %v3244_v10 = vadd.f32 %v7932_v59, %v3231_v51 }
 0x1f2   :  { %4107 = vmatmul.bf16.vlgmr.msrb.gmra.mxu1 %v7918_v0  ;;  %4120 = vmatmul.bf16.vlgmr.msrb.gmra.mxu2 %v7924_v38  ;;  %v6443_v35 = vor.u32 %v7261_v23, %v6442_v21  ;;  %v7207_v23 = vld [vmem:[#allocation8 + $0xac] sm:$0xf] }
 0x1f3   :  { %4151 = vmatpush.bf16.msra.mxu1 %v6395_v26  ;;  %4164 = vmatpush.bf16.msra.mxu2 %v6523_v28  ;;  %v6563_v26 = vor.u32 %v7292_v22, %v6562_v20  ;;  %v6187_v28 = vor.u32 %v7197_v14, %v6186_v42  ;;  %v6252_v14 = vld [vmem:[#allocation8 + $0xd8] sm:$0xf0] }
 0x1f4   :  { %v6508_v20 = vld [vmem:[#allocation8 + $0x2d8] sm:$0xf0]  ;;  %v6255_v17 = vor.u32 %v7211_v6, %v6252_v14  ;;  %v7227_v6 = vld [vmem:[#allocation8 + $0x14c] sm:$0xf] }
 0x1f5   :  { %4139 = vmatpush.bf16.msra.mxu0 %v6251_v57  ;;  %v7934_v24 = vpop.f32.mrf.mxu2  ;;  %v3232_v36 = vpop.f32.mrf.mxu0  ;;  %v7288_v57 = vld [vmem:[#allocation8 + $0x32c] sm:$0xf0]  ;;  %4078 = vmatpush.bf16.msra.mxu3 %v6563_v26  ;;  %v7302_v26 = vld [vmem:[#allocation8 + $0x3a4] sm:$0xf]  ;;  %v6511_v31 = vor.u32 %v7275_v16, %v6508_v20 }
 0x1f6   :  { %v6547_v50 = vor.u32 %v7288_v57, %v6546_v39  ;;  %v6492_v36 = vld [vmem:[#allocation8 + $0x2b8] sm:$0xf0]  ;;  %v6239_v57 = vor.u32 %v7207_v23, %v6236_v32  ;;  %v3257_v59 = vadd.f32 %v7934_v24, %v3244_v10  ;;  %v7251_v24 = vld [vmem:[#allocation8 + $0x20c] sm:$0xf]  ;;  %v7305_v10 = vld [vmem:[#allocation8 + $0x3b4] sm:$0xf0] }
 0x1f7   :  { %4152 = vmatpush.bf16.msra.mxu1 %v6379_v45  ;;  %4165 = vmatpush.bf16.msra.mxu2 %v6507_v49  ;;  %v7936_v18 = vpop.f32.mrf.mxu3  ;;  %v7257_v45 = vld [vmem:[#allocation8 + $0x234] sm:$0xf0]  ;;  %v3245_v49 = vpop.f32.mrf.mxu1 }
 0x1f8   :  { %v6427_v46 = vor.u32 %v7257_v45, %v6426_v43  ;;  %v7203_v43 = vld [vmem:[#allocation8 + $0x8c] sm:$0xf]  ;;  %v7298_v45 = vld [vmem:[#allocation8 + $0x384] sm:$0xf]  ;;  %v6596_v49 = vld [vmem:[#allocation8 + $0x390] sm:$0xf0] }
 0x1f9   :  { %4140 = vmatpush.bf16.msra.mxu0 %v6235_v25  ;;  %v6299_v25 = vor.u32 %v7225_v44, %v6298_v37  ;;  %4079 = vmatpush.bf16.msra.mxu3 %v6547_v50  ;;  %v7271_v37 = vld [vmem:[#allocation8 + $0x2ac] sm:$0xf] }
 0x1fa   :  { %v6495_v47 = vor.u32 %v7271_v37, %v6492_v36  ;;  %v7235_v50 = vld [vmem:[#allocation8 + $0x18c] sm:$0xf] }
 0x1fb   :  { %4153 = vmatpush.bf16.msra.mxu1 %v6363_v30  ;;  %4166 = vmatpush.bf16.msra.mxu2 %v6491_v60  ;;  %v6530_v30 = vld [vmem:[#allocation8 + $0x300] sm:$0xf]  ;;  %v7284_v60 = vld [vmem:[#allocation8 + $0x30c] sm:$0xf0] }
 0x1fc   :  { %v6531_v5 = vor.u32 %v7284_v60, %v6530_v30  ;;  %v7199_v30 = vld [vmem:[#allocation8 + $0x6c] sm:$0xf]  ;;  %v7294_v60 = vld [vmem:[#allocation8 + $0x364] sm:$0xf] }
 0x1fd   :  { %4141 = vmatpush.bf16.msra.mxu0 %v6219_v4  ;;  %v3258_v62 = vpop.f32.mrf.mxu2 }
 0x1fe   :  { %4080 = vmatpush.bf16.msra.mxu3 %v6531_v5  ;;  %v6479_v62 = vor.u32 %v7267_v54, %v6476_v55 }
 0x1ff   :  { %4154 = vmatpush.bf16.msra.mxu1 %v6347_v40  ;;  %4167 = vmatpush.bf16.msra.mxu2 %v6475_v63  ;;  %v3271_v4 = vpop.f32.mrf.mxu3  ;;  %v7279_v40 = vld [vmem:[#allocation8 + $0x2ec] sm:$0xf]  ;;  %v6524_v63 = vld [vmem:[#allocation8 + $0x2f8] sm:$0xf0] }
 0x200   :  { %v6527_v42 = vor.u32 %v7279_v40, %v6524_v63  ;;  %v6460_v4 = vld [vmem:[#allocation8 + $0x278] sm:$0xf0]  ;;  %v6207_v40 = vor.u32 %v7199_v30, %v6204_v29  ;;  %v6335_v63 = vor.u32 %v7231_v33, %v6332_v1  ;;  %v6415_v30 = vor.u32 %v7251_v24, %v6412_v53  ;;  %v7303_v24 = vld [vmem:[#allocation8 + $0x3ac] sm:$0xf] }
 0x201   :  { %4142 = vmatpush.bf16.msra.mxu0 %v6203_v41  ;;  %v6628_v41 = vld [vmem:[#allocation8 + $0x3d0] sm:$0xf0]  ;;  %v6620_v53 = vld [vmem:[#allocation8 + $0x3b8] sm:$0xf0] }
 0x202   :  { %4125 = vmatpush.bf16.msrb.mxu3 %v6647_v9  ;;  %v6631_v22 = vor.u32 %v7306_v56, %v6628_v41  ;;  %v7195_v9 = vld [vmem:[#allocation8 + $0x4c] sm:$0xf]  ;;  %v6316_v56 = vld [vmem:[#allocation8 + $0x158] sm:$0xf0] }
 0x203   :  { %4155 = vmatpush.bf16.msra.mxu1 %v6331_v19  ;;  %4168 = vmatpush.bf16.msra.mxu2 %v6459_v15  ;;  %v7243_v19 = vld [vmem:[#allocation8 + $0x1cc] sm:$0xf]  ;;  %v6380_v15 = vld [vmem:[#allocation8 + $0x1d8] sm:$0xf0]  ;;  %v6319_v20 = vor.u32 %v7227_v6, %v6316_v56  ;;  %v6618_v56 = vld [vmem:[#allocation8 + $0x3a8] sm:$0xf] }
 0x204   :  { %v6383_v21 = vor.u32 %v7243_v19, %v6380_v15  ;;  %v7259_v41 = vld [vmem:[#allocation8 + $0x24c] sm:$0xf] }
 0x205   :  { %4143 = vmatpush.bf16.msra.mxu0 %v6187_v28  ;;  %v6612_v28 = vld [vmem:[#allocation8 + $0x3b0] sm:$0xf0] }
 0x206   :  { %4126 = vmatpush.bf16.msrb.mxu3 %v6631_v22  ;;  %v6615_v39 = vor.u32 %v7302_v26, %v6612_v28  ;;  %v7191_v22 = vld [vmem:[#allocation8 + $0x2c] sm:$0xf]  ;;  %v6172_v26 = vld [vmem:[#allocation8 + $0x38] sm:$0xf0] }
 0x207   :  { %4156 = vmatpush.bf16.msra.mxu1 %v6315_v34  ;;  %4169 = vmatpush.bf16.msra.mxu2 %v6443_v35  ;;  %v7239_v34 = vld [vmem:[#allocation8 + $0x1ac] sm:$0xf]  ;;  %v6364_v35 = vld [vmem:[#allocation8 + $0x1b8] sm:$0xf0] }
 0x208   :  { %v6367_v44 = vor.u32 %v7239_v34, %v6364_v35  ;;  %v7223_v28 = vld [vmem:[#allocation8 + $0x12c] sm:$0xf]  ;;  %v6428_v35 = vld [vmem:[#allocation8 + $0x238] sm:$0xf0] }
 0x209   :  { %4144 = vmatpush.bf16.msra.mxu0 %v6171_v52  ;;  %v6348_v52 = vld [vmem:[#allocation8 + $0x198] sm:$0xf0]  ;;  %v7255_v34 = vld [vmem:[#allocation8 + $0x22c] sm:$0xf] }
 0x20a   :  { %4127 = vmatpush.bf16.msrb.mxu3 %v6615_v39  ;;  %v6351_v58 = vor.u32 %v7235_v50, %v6348_v52  ;;  %v6175_v39 = vor.u32 %v7191_v22, %v6172_v26  ;;  %v6284_v50 = vld [vmem:[#allocation8 + $0x118] sm:$0xf0]  ;;  %v3270_v52 = vadd.f32 %v7936_v18, %v3257_v59  ;;  %v7297_v22 = vld [vmem:[#allocation8 + $0x374] sm:$0xf0] }
 0x20b   :  { %4157 = vmatpush.bf16.msra.mxu1 %v6299_v25  ;;  %4170 = vmatpush.bf16.msra.mxu2 %v6427_v46  ;;  %v6599_v25 = vor.u32 %v7298_v45, %v6596_v49  ;;  %v6223_v46 = vor.u32 %v7203_v43, %v6220_v48  ;;  %v7282_v43 = vld [vmem:[#allocation8 + $0x304] sm:$0xf]  ;;  %v6532_v45 = vld [vmem:[#allocation8 + $0x310] sm:$0xf0]  ;;  %v6431_v49 = vor.u32 %v7255_v34, %v6428_v35  ;;  %v7219_v48 = vld [vmem:[#allocation8 + $0x10c] sm:$0xf] }
 0x20c   :  { %v6554_v34 = vld [vmem:[#allocation8 + $0x328] sm:$0xf]  ;;  %v7289_v35 = vld [vmem:[#allocation8 + $0x334] sm:$0xf0] }
 0x20d   :  { %4145 = vmatpush.bf16.msra.mxu0 %v6155_v7  ;;  %v7942_v2 = vpop.f32.mrf.mxu0  ;;  %v6583_v7 = vor.u32 %v7294_v60, %v6580_v61 }
 0x20e   :  { %4128 = vmatpush.bf16.msrb.mxu3 %v6599_v25  ;;  %v6535_v25 = vor.u32 %v7282_v43, %v6532_v45  ;;  %v3283_v60 = vadd.f32 %v7942_v2, %v3270_v52  ;;  %v7311_v43 = vld [vmem:[#allocation8 + $0x3ec] sm:$0xf]  ;;  %v6652_v45 = vld [vmem:[#allocation8 + $0x3f8] sm:$0xf0] }
 0x20f   :  { %4158 = vmatpush.bf16.msra.mxu1 %v6283_v11  ;;  %4171 = vmatpush.bf16.msra.mxu2 %v6411_v27  ;;  %v7945_v5 = vpop.f32.mrf.mxu1  ;;  %v7290_v11 = vld [vmem:[#allocation8 + $0x344] sm:$0xf]  ;;  %v6564_v27 = vld [vmem:[#allocation8 + $0x350] sm:$0xf0] }
 0x210   :  { %4146 = vmatmul.bf16.vlgmr.msra.gmra.mxu0 %v7915_v8  ;;  %v6567_v15 = vor.u32 %v7290_v11, %v6564_v27  ;;  %v3296_v18 = vadd.f32 %v7945_v5, %v3283_v60  ;;  %v7313_v5 = vld [vmem:[#allocation8 + $0x3f4] sm:$0xf0] }
 0x211   :  { %4190 = vmatpush.bf16.msrb.mxu0 %v6271_v12  ;;  %v6463_v12 = vor.u32 %v7263_v3, %v6460_v4 }
 0x212   :  { %4159 = vmatmul.bf16.vlgmr.msra.gmra.mxu1 %v7918_v0  ;;  %4172 = vmatmul.bf16.vlgmr.msra.gmra.mxu2 %v7924_v38 }
 0x213   :  { %4203 = vmatpush.bf16.msrb.mxu1 %v6399_v13  ;;  %4216 = vmatpush.bf16.msrb.mxu2 %v6527_v42  ;;  %v6188_v13 = vld [vmem:[#allocation8 + $0x58] sm:$0xf0] }
 0x214   :  { %v6444_v42 = vld [vmem:[#allocation8 + $0x258] sm:$0xf0]  ;;  %4129 = vmatpush.bf16.msrb.mxu3 %v6583_v7  ;;  %v6191_v16 = vor.u32 %v7195_v9, %v6188_v13  ;;  %v6650_v9 = vld [vmem:[#allocation8 + $0x3e8] sm:$0xf] }
 0x215   :  { %4191 = vmatpush.bf16.msrb.mxu0 %v6255_v17  ;;  %v3308_v14 = vpop.f32.mrf.mxu2  ;;  %v7286_v17 = vld [vmem:[#allocation8 + $0x324] sm:$0xf]  ;;  %v6447_v23 = vor.u32 %v7259_v41, %v6444_v42  ;;  %v3284_v32 = vpop.f32.mrf.mxu0  ;;  %v6619_v41 = vor.u32 %v7305_v10, %v6618_v56  ;;  %v6602_v42 = vld [vmem:[#allocation8 + $0x388] sm:$0xf] }
 0x216   :  { %v3309_v61 = vadd.f32 %v3308_v14, %v3296_v18  ;;  %v7301_v14 = vld [vmem:[#allocation8 + $0x394] sm:$0xf0] }
 0x217   :  { %4204 = vmatpush.bf16.msrb.mxu1 %v6383_v21  ;;  %4217 = vmatpush.bf16.msrb.mxu2 %v6511_v31  ;;  %v3321_v19 = vpop.f32.mrf.mxu3  ;;  %v6548_v21 = vld [vmem:[#allocation8 + $0x330] sm:$0xf0]  ;;  %v6300_v31 = vld [vmem:[#allocation8 + $0x138] sm:$0xf0]  ;;  %v3297_v37 = vpop.f32.mrf.mxu1 }
 0x218   :  { %4130 = vmatpush.bf16.msrb.mxu3 %v6567_v15  ;;  %v6551_v36 = vor.u32 %v7286_v17, %v6548_v21  ;;  %v6603_v15 = vor.u32 %v7301_v14, %v6602_v42 }
 0x219   :  { %4192 = vmatpush.bf16.msrb.mxu0 %v6239_v57  ;;  %v6303_v57 = vor.u32 %v7223_v28, %v6300_v31  ;;  %v6570_v28 = vld [vmem:[#allocation8 + $0x348] sm:$0xf]  ;;  %v7293_v31 = vld [vmem:[#allocation8 + $0x354] sm:$0xf0] }
 0x21a   :  { %v6571_v59 = vor.u32 %v7293_v31, %v6570_v28  ;;  %v7328_v31 = vld [vmem:[#allocation11 + $0x70] sm:$0xff] }
 0x21b   :  { %4205 = vmatpush.bf16.msrb.mxu1 %v6367_v44  ;;  %4218 = vmatpush.bf16.msrb.mxu2 %v6495_v47  ;;  %v7187_v44 = vld [vmem:[#allocation8 + $0xc] sm:$0xf]  ;;  %v6156_v47 = vld [vmem:[#allocation8 + $0x18] sm:$0xf0] }
 0x21c   :  { %4131 = vmatpush.bf16.msrb.mxu3 %v6551_v36  ;;  %v6555_v36 = vor.u32 %v7289_v35, %v6554_v34  ;;  %v7315_v35 = vld [vmem:[#allocation11 + $0x8] sm:$0xff] }
 0x21d   :  { %4193 = vmatpush.bf16.msrb.mxu0 %v6223_v46  ;;  %v3310_v54 = vpop.f32.mrf.mxu2  ;;  %v6159_v46 = vor.u32 %v7187_v44, %v6156_v47  ;;  %v7285_v44 = vld [vmem:[#allocation8 + $0x314] sm:$0xf0]  ;;  %v6655_v47 = vor.u32 %v7311_v43, %v6652_v45  ;;  %v7326_v43 = vld [vmem:[#allocation11 + $0x60] sm:$0xff] }
 0x21e   :  { %v6623_v54 = vor.u32 %v7303_v24, %v6620_v53 }
 0x21f   :  { %4206 = vmatpush.bf16.msrb.mxu1 %v6351_v58  ;;  %4219 = vmatpush.bf16.msrb.mxu2 %v6479_v62  ;;  %v3323_v55 = vpop.f32.mrf.mxu3  ;;  %v6287_v58 = vor.u32 %v7219_v48, %v6284_v50  ;;  %v3322_v62 = vadd.f32 %v3321_v19, %v3309_v61  ;;  %v7958_v19 = vld [vmem:[#allocation10] sm:$0xf]  ;;  %v7307_v48 = vld [vmem:[#allocation8 + $0x3cc] sm:$0xf]  ;;  %v6636_v50 = vld [vmem:[#allocation8 + $0x3d8] sm:$0xf0] }
 0x220   :  { %4132 = vmatpush.bf16.msrb.mxu3 %v6535_v25  ;;  %v6639_v52 = vor.u32 %v7307_v48, %v6636_v50  ;;  %v7299_v55 = vld [vmem:[#allocation8 + $0x38c] sm:$0xf]  ;;  %v6604_v25 = vld [vmem:[#allocation8 + $0x398] sm:$0xf0]  ;;  %v3387_v60 = vperm.slane %v7958_v19, 1  ;;  %v3388_v56 = vperm.slane %v7958_v19, 2 }
 0x221   :  { %4194 = vmatpush.bf16.msrb.mxu0 %v6207_v40  ;;  %v3389_v34 = vperm.slane %v7958_v19, 3  ;;  %v7336_v50 = vld [vmem:[%s8037_s7 + $0x30] sm:$0xff] }
 0x223   :  { %4207 = vmatpush.bf16.msrb.mxu1 %v6335_v63  ;;  %4220 = vmatpush.bf16.msrb.mxu2 %v6463_v12 }
 0x225   :  { %4195 = vmatpush.bf16.msrb.mxu0 %v6191_v16  ;;  %v3386_v16 = vperm.slane %v7958_v19, 0  ;;  %v7324_v19 = vld [vmem:[#allocation11 + $0x50] sm:$0xff] }
 0x227   :  { %4208 = vmatpush.bf16.msrb.mxu1 %v6319_v20  ;;  %4221 = vmatpush.bf16.msrb.mxu2 %v6447_v23  ;;  %v6586_v20 = vld [vmem:[#allocation8 + $0x368] sm:$0xf] }
 0x228   :  { %v6587_v21 = vor.u32 %v7297_v22, %v6586_v20 }
 0x229   :  { %4196 = vmatpush.bf16.msrb.mxu0 %v6175_v39 }
 0x22b   :  { %4209 = vmatpush.bf16.msrb.mxu1 %v6303_v57  ;;  %4222 = vmatpush.bf16.msrb.mxu2 %v6431_v49  ;;  %v6538_v57 = vld [vmem:[#allocation8 + $0x308] sm:$0xf] }
 0x22c   :  { %v6539_v49 = vor.u32 %v7285_v44, %v6538_v57  ;;  %v7314_v44 = vld [vmem:[#allocation11] sm:$0xff] }
 0x22d   :  { %4197 = vmatpush.bf16.msrb.mxu0 %v6159_v46  ;;  %v3334_v29 = vpop.f32.mrf.mxu0  ;;  %v6607_v46 = vor.u32 %v7299_v55, %v6604_v25  ;;  %v7335_v55 = vld [vmem:[%s8037_s7 + $0x28] sm:$0xff] }
 0x22e   :  { %v3335_v1 = vadd.f32 %v3334_v29, %v3322_v62 }
 0x22f   :  { %4210 = vmatpush.bf16.msrb.mxu1 %v6287_v58  ;;  %4223 = vmatpush.bf16.msrb.mxu2 %v6415_v30  ;;  %v3347_v33 = vpop.f32.mrf.mxu1  ;;  %v7295_v58 = vld [vmem:[#allocation8 + $0x36c] sm:$0xf]  ;;  %v6588_v30 = vld [vmem:[#allocation8 + $0x378] sm:$0xf0] }
 0x230   :  { %4198 = vmatmul.bf16.vlgmr.msrb.gmra.mxu0 %v7915_v8  ;;  %v3348_v51 = vadd.f32 %v3347_v33, %v3335_v1  ;;  %v6651_v8 = vor.u32 %v7313_v5, %v6650_v9  ;;  %v6591_v62 = vor.u32 %v7295_v58, %v6588_v30  ;;  %v7291_v1 = vld [vmem:[#allocation8 + $0x34c] sm:$0xf]  ;;  %v7333_v30 = vld [vmem:[%s8037_s7 + $0x18] sm:$0xff] }
 0x231   :  { %v7334_v58 = vld [vmem:[%s8037_s7 + $0x20] sm:$0xff] }
 0x232   :  { %4211 = vmatmul.bf16.vlgmr.msrb.gmra.mxu1 %v7918_v0  ;;  %4224 = vmatmul.bf16.vlgmr.msrb.gmra.mxu2 %v7924_v38  ;;  %v6634_v0 = vld [vmem:[#allocation8 + $0x3c8] sm:$0xf]  ;;  %v7309_v38 = vld [vmem:[#allocation8 + $0x3d4] sm:$0xf0] }
 0x233   :  { %v6635_v6 = vor.u32 %v7309_v38, %v6634_v0  ;;  %v6540_v0 = vld [vmem:[#allocation8 + $0x318] sm:$0xf0] }
 0x235   :  { %v3360_v3 = vpop.f32.mrf.mxu2  ;;  %v3336_v7 = vpop.f32.mrf.mxu0 }
 0x236   :  { %v3361_v4 = vadd.f32 %v3360_v3, %v3348_v51  ;;  %v6572_v51 = vld [vmem:[#allocation8 + $0x358] sm:$0xf0]  ;;  %v7287_v7 = vld [vmem:[#allocation8 + $0x32c] sm:$0xf] }
 0x237   :  { %v3373_v2 = vpop.f32.mrf.mxu3  ;;  %v3349_v40 = vpop.f32.mrf.mxu1 }
 0x238   :  { %v3374_v63 = vadd.f32 %v3373_v2, %v3361_v4  ;;  %v6575_v4 = vor.u32 %v7291_v1, %v6572_v51  ;;  %v6556_v40 = vld [vmem:[#allocation8 + $0x338] sm:$0xf0]  ;;  %v7330_v1 = vld [vmem:[%s8037_s7] sm:$0xff]  ;;  %v7345_v51 = vld [vmem:[%s8037_s7 + $0x78] sm:$0xff] }
 0x239   :  { %v6559_v9 = vor.u32 %v7287_v7, %v6556_v40  ;;  %v7342_v7 = vld [vmem:[%s8037_s7 + $0x60] sm:$0xff] }
 0x23a   :  { %v3380_v11 = vmax.f32 %v3374_v63, 0.0 }
 0x23c   :  { %v7955_v27 = vpack.c.bf16 %v3380_v11, %v3380_v11 }
 0x23d   :  { %v3362_v12 = vpop.f32.mrf.mxu2 }
 0x23e   :  { %4081 = vmatmul.bf16.vlgmr.msra.gmra.mxu3 %v7955_v27 }
 0x23f   :  { %v3375_v13 = vpop.f32.mrf.mxu3  ;;  %4177 = vmatpush.bf16.msra.mxu3 %v6651_v8  ;;  %v7283_v8 = vld [vmem:[#allocation8 + $0x30c] sm:$0xf] }
 0x240   :  { %v6543_v38 = vor.u32 %v7283_v8, %v6540_v0  ;;  %v7340_v8 = vld [vmem:[%s8037_s7 + $0x50] sm:$0xff] }
 0x243   :  { %4178 = vmatpush.bf16.msra.mxu3 %v6635_v6 }
 0x247   :  { %4179 = vmatpush.bf16.msra.mxu3 %v6619_v41 }
 0x24b   :  { %4180 = vmatpush.bf16.msra.mxu3 %v6603_v15  ;;  %v7321_v15 = vld [vmem:[#allocation11 + $0x38] sm:$0xff] }
 0x24c   :  { %4347 = vmatpush.bf16.msra.mxu0 %v7321_v15 }
 0x24d   :  { %v4043_v17 = vpop.f32.mrf.mxu0 }
 0x24e   :  { %v4044_v23 = vadd.f32 %v4043_v17, %v3386_v16  ;;  %4133 = vmatmul.bf16.vlgmr.msrb.gmra.mxu3 %v7955_v27  ;;  %v7320_v16 = vld [vmem:[#allocation11 + $0x30] sm:$0xff] }
 0x24f   :  { %v4056_v26 = vpop.f32.mrf.mxu1  ;;  %4181 = vmatpush.bf16.msra.mxu3 %v6587_v21 }
 0x250   :  { %v4057_v32 = vadd.f32 %v4056_v26, %v4044_v23  ;;  %4348 = vmatpush.bf16.msra.mxu0 %v7320_v16  ;;  %v7319_v23 = vld [vmem:[#allocation11 + $0x28] sm:$0xff]  ;;  %v7318_v26 = vld [vmem:[#allocation11 + $0x20] sm:$0xff] }
 0x253   :  { %4182 = vmatpush.bf16.msra.mxu3 %v6571_v59  ;;  %v7316_v59 = vld [vmem:[#allocation11 + $0x10] sm:$0xff] }
 0x254   :  { %4349 = vmatpush.bf16.msra.mxu0 %v7319_v23  ;;  %v7366_v23 = vld [vmem:[#allocation13] ss:$0 sm:$0xff] }
 0x255   :  { %v4045_v37 = vpop.f32.mrf.mxu0 }
 0x256   :  { %v7327_v37 = vld [vmem:[#allocation11 + $0x68] sm:$0xff] }
 0x257   :  { %v4058_v39 = vpop.f32.mrf.mxu1  ;;  %4183 = vmatpush.bf16.msra.mxu3 %v6555_v36 }
 0x258   :  { %4350 = vmatpush.bf16.msra.mxu0 %v7318_v26  ;;  %v7349_v26 = vld [vmem:[#allocation16 + $0x18] sm:$0xff] }
 0x25b   :  { %4184 = vmatpush.bf16.msra.mxu3 %v6539_v49  ;;  %v7325_v49 = vld [vmem:[#allocation11 + $0x58] sm:$0xff] }
 0x25e   :  { %4185 = vmatmul.bf16.vlgmr.msra.gmra.mxu3 %v7955_v27 }
 0x25f   :  { %4229 = vmatpush.bf16.msrb.mxu3 %v6655_v47  ;;  %v7337_v47 = vld [vmem:[%s8037_s7 + $0x38] sm:$0xff] }
 0x260   :  { %4493 = vmatpush.bf16.msra.mxu2 %v7337_v47 }
 0x261   :  { %v4069_v18 = vpop.f32.mrf.mxu2 }
 0x262   :  { %v7964_v61 = vadd.f32 %v4069_v18, %v4057_v32  ;;  %v7317_v32 = vld [vmem:[#allocation11 + $0x18] sm:$0xff] }
 0x263   :  { %4230 = vmatpush.bf16.msrb.mxu3 %v6639_v52  ;;  %4351 = vmatpush.bf16.msra.mxu0 %v7317_v32 }
 0x264   :  { %4494 = vmatpush.bf16.msra.mxu2 %v7336_v50 }
 0x267   :  { %4231 = vmatpush.bf16.msrb.mxu3 %v6623_v54  ;;  %4352 = vmatpush.bf16.msra.mxu0 %v7316_v59  ;;  %v7323_v54 = vld [vmem:[#allocation11 + $0x48] sm:$0xff] }
 0x268   :  { %4495 = vmatpush.bf16.msra.mxu2 %v7335_v55  ;;  %v7347_v59 = vld [vmem:[#allocation16 + $0x8] sm:$0xff] }
 0x269   :  { %v4071_v63 = vpop.f32.mrf.mxu2 }
 0x26b   :  { %4232 = vmatpush.bf16.msrb.mxu3 %v6607_v46  ;;  %4353 = vmatpush.bf16.msra.mxu0 %v7315_v35  ;;  %v7322_v46 = vld [vmem:[#allocation11 + $0x40] sm:$0xff] }
 0x26c   :  { %4496 = vmatpush.bf16.msra.mxu2 %v7334_v58 }
 0x26d   :  { %v4095_v29 = vpop.f32.mrf.mxu0 }
 0x26e   :  { %v4096_v3 = vadd.f32 %v4095_v29, %v3387_v60  ;;  %v7332_v60 = vld [vmem:[%s8037_s7 + $0x10] sm:$0xff] }
 0x26f   :  { %v4108_v33 = vpop.f32.mrf.mxu1  ;;  %4233 = vmatpush.bf16.msrb.mxu3 %v6591_v62  ;;  %4354 = vmatpush.bf16.msra.mxu0 %v7314_v44  ;;  %v7331_v62 = vld [vmem:[%s8037_s7 + $0x8] sm:$0xff]  ;;  %v7346_v44 = vld [vmem:[#allocation16] sm:$0xff] }
 0x270   :  { %v4109_v2 = vadd.f32 %v4108_v33, %v4096_v3  ;;  %4497 = vmatpush.bf16.msra.mxu2 %v7333_v30 }
 0x273   :  { %4234 = vmatpush.bf16.msrb.mxu3 %v6575_v4  ;;  %v7344_v4 = vld [vmem:[%s8037_s7 + $0x70] sm:$0xff]  ;;  %4556 = vmatpush.bf16.msrb.mxu0 %v7349_v26 }
 0x274   :  { %4498 = vmatpush.bf16.msra.mxu2 %v7332_v60  ;;  %v7368_v60 = vld [vmem:[#allocation17] ss:$0 sm:$0xff] }
 0x275   :  { %v4097_v5 = vpop.f32.mrf.mxu0  ;;  %v4121_v12 = vpop.f32.mrf.mxu2 }
 0x276   :  { %v7966_v13 = vadd.f32 %v4121_v12, %v4109_v2 }
 0x277   :  { %v4110_v11 = vpop.f32.mrf.mxu1  ;;  %4235 = vmatpush.bf16.msrb.mxu3 %v6559_v9  ;;  %v7341_v9 = vld [vmem:[%s8037_s7 + $0x58] sm:$0xff] }
 0x278   :  { %4499 = vmatpush.bf16.msra.mxu2 %v7331_v62 }
 0x27b   :  { %4236 = vmatpush.bf16.msrb.mxu3 %v6543_v38  ;;  %v7339_v38 = vld [vmem:[%s8037_s7 + $0x48] sm:$0xff] }
 0x27c   :  { %4500 = vmatpush.bf16.msra.mxu2 %v7330_v1 }
 0x27d   :  { %v4123_v6 = vpop.f32.mrf.mxu2 }
 0x27e   :  { %4237 = vmatmul.bf16.vlgmr.msrb.gmra.mxu3 %v7955_v27  ;;  %v7329_v27 = vld [vmem:[#allocation11 + $0x78] sm:$0xff] }
 0x27f   :  { %4360 = vmatpush.bf16.msra.mxu1 %v7329_v27  ;;  %4506 = vmatpush.bf16.msra.mxu3 %v7345_v51 }
 0x283   :  { %4361 = vmatpush.bf16.msra.mxu1 %v7328_v31  ;;  %4507 = vmatpush.bf16.msra.mxu3 %v7344_v4  ;;  %v7348_v31 = vld [vmem:[#allocation16 + $0x10] sm:$0xff] }
 0x284   :  { %4557 = vmatpush.bf16.msrb.mxu0 %v7348_v31 }
 0x287   :  { %4362 = vmatpush.bf16.msra.mxu1 %v7327_v37 }
 0x288   :  { %4558 = vmatpush.bf16.msrb.mxu0 %v7347_v59 }
 0x28b   :  { %4363 = vmatpush.bf16.msra.mxu1 %v7326_v43 }
 0x28c   :  { %4559 = vmatpush.bf16.msrb.mxu0 %v7346_v44 }
 0x28d   :  { %v4147_v10 = vpop.f32.mrf.mxu0 }
 0x28e   :  { %v4148_v41 = vadd.f32 %v4147_v10, %v3388_v56 }
 0x28f   :  { %v4160_v42 = vpop.f32.mrf.mxu1  ;;  %4364 = vmatpush.bf16.msra.mxu1 %v7325_v49 }
 0x290   :  { %v4161_v14 = vadd.f32 %v4160_v42, %v4148_v41 }
 0x293   :  { %4365 = vmatpush.bf16.msra.mxu1 %v7324_v19 }
 0x295   :  { %v4173_v20 = vpop.f32.mrf.mxu2  ;;  %v4149_v17 = vpop.f32.mrf.mxu0 }
 0x296   :  { %v7970_v22 = vadd.f32 %v4173_v20, %v4161_v14 }
 0x297   :  { %v4162_v21 = vpop.f32.mrf.mxu1  ;;  %4366 = vmatpush.bf16.msra.mxu1 %v7323_v54 }
 0x29b   :  { %4367 = vmatpush.bf16.msra.mxu1 %v7322_v46 }
 0x29d   :  { %v4175_v28 = vpop.f32.mrf.mxu2 }
 0x2ad   :  { %v4199_v36 = vpop.f32.mrf.mxu0 }
 0x2ae   :  { %v4200_v57 = vadd.f32 %v4199_v36, %v3389_v34 }
 0x2af   :  { %v4212_v39 = vpop.f32.mrf.mxu1 }
 0x2b0   :  { %v4213_v45 = vadd.f32 %v4212_v39, %v4200_v57 }
 0x2b5   :  { %v4225_v48 = vpop.f32.mrf.mxu2  ;;  %v4201_v24 = vpop.f32.mrf.mxu0 }
 0x2b6   :  { %v4226_v52 = vadd.f32 %v4225_v48, %v4213_v45 }
 0x2b7   :  { %v4214_v53 = vpop.f32.mrf.mxu1 }
 0x2b8   :  { %v7367_v53 = vld [vmem:[#allocation14] ss:$0 sm:$0xff] }
 0x2bd   :  { %v4227_v25 = vpop.f32.mrf.mxu2 }
 0x2c1   :  { %v4082_v18 = vpop.f32.mrf.mxu3 }
 0x2c2   :  { %v4083_v29 = vadd.f32 %v4082_v18, %v7964_v61  ;;  %v7343_v61 = vld [vmem:[%s8037_s7 + $0x68] sm:$0xff] }
 0x2c3   :  { %4508 = vmatpush.bf16.msra.mxu3 %v7343_v61 }
 0x2c4   :  { %v4242_v33 = vmax.f32 %v4083_v29, 0.0 }
 0x2c6   :  { %v4246_v3 = vpack.c.bf16 %v4242_v33, %v4242_v33 }
 0x2c7   :  { %4509 = vmatpush.bf16.msra.mxu3 %v7342_v7 }
 0x2c8   :  { %4355 = vmatmul.bf16.vlgmr.msra.gmra.mxu0 %v4246_v3 }
 0x2c9   :  { %v4084_v2 = vpop.f32.mrf.mxu3 }
 0x2cb   :  { %4510 = vmatpush.bf16.msra.mxu3 %v7341_v9 }
 0x2cf   :  { %4511 = vmatpush.bf16.msra.mxu3 %v7340_v8 }
 0x2d1   :  { %v4134_v40 = vpop.f32.mrf.mxu3 }
 0x2d2   :  { %v4135_v63 = vadd.f32 %v4134_v40, %v7966_v13  ;;  %v7338_v13 = vld [vmem:[%s8037_s7 + $0x40] sm:$0xff]  ;;  %s7694_s7 = smov [#allocation19]  }
 0x2d3   :  { %4512 = vmatpush.bf16.msra.mxu3 %v7339_v38  ;;  %s4575_s29 = sshll.u32 %s7694_s7, 4  ;;  %s4576_s29 = int_to_ptr.vmem [resolvable:$true] %s4575_s29 }
 0x2d4   :  { %v4243_v5 = vmax.f32 %v4135_v63, 0.0 }
 0x2d6   :  { %v4247_v11 = vpack.c.bf16 %v4243_v5, %v4243_v5 }
 0x2d7   :  { %4513 = vmatpush.bf16.msra.mxu3 %v7338_v13 }
 0x2d8   :  { %4368 = vmatmul.bf16.vlgmr.msra.gmra.mxu1 %v4247_v11 }
 0x2d9   :  { %v4136_v0 = vpop.f32.mrf.mxu3 }
 0x2e1   :  { %v4186_v12 = vpop.f32.mrf.mxu3 }
 0x2e2   :  { %v4187_v6 = vadd.f32 %v4186_v12, %v7970_v22 }
 0x2e4   :  { %v4244_v56 = vmax.f32 %v4187_v6, 0.0 }
 0x2e6   :  { %v4392_v10 = vpack.c.bf16 %v4244_v56, %v4244_v56 }
 0x2e8   :  { %4501 = vmatmul.bf16.vlgmr.msra.gmra.mxu2 %v4392_v10 }
 0x2e9   :  { %v4188_v41 = vpop.f32.mrf.mxu3 }
 0x301   :  { %v4238_v42 = vpop.f32.mrf.mxu3 }
 0x302   :  { %v4239_v14 = vadd.f32 %v4238_v42, %v4226_v52 }
 0x304   :  { %v4245_v15 = vmax.f32 %v4239_v14, 0.0 }
 0x306   :  { %v4393_v16 = vpack.c.bf16 %v4245_v15, %v4245_v15 }
 0x308   :  { %4514 = vmatmul.bf16.vlgmr.msra.gmra.mxu3 %v4393_v16 }
 0x309   :  { %v4240_v20 = vpop.f32.mrf.mxu3 }
 0x345   :  { %v4356_v17 = vpop.f32.mrf.mxu0 }
 0x346   :  { %v4357_v27 = vadd.f32 %v7366_v23, %v4356_v17 }
 0x34d   :  { %v4358_v21 = vpop.f32.mrf.mxu0 }
 0x355   :  { %v4369_v28 = vpop.f32.mrf.mxu1 }
 0x356   :  { %v4370_v22 = vadd.f32 %v4369_v28, %v4357_v27 }
 0x358   :  { %v6720_v32 = vmul.f32 -1.442695, %v4370_v22 }
 0x35a   :  { %7369 = vpow2.f32 %v6720_v32 }
 0x35d   :  { %v4371_v34 = vpop.f32.mrf.mxu1 }
 0x360   :  { %v7370_v35 = vpop.eup %7369 }
 0x361   :  { %v4376_v37 = vadd.f32 1.0, %v7370_v35 }
 0x363   :  { %7371 = vrcp.f32 %v4376_v37  ;;  %v4388_v45 = vand.u32 2147483648, %v4376_v37  ;;  %v4386_v47 = vand.u32 2147483647, %v4376_v37  ;;  %vm4382_vm1 = vweird.f32 %v4376_v37 }
 0x365   :  { %v4389_v19 = vor.u32 1.1754944e-38, %v4388_v45  ;;  %vm4387_vm3 = vcmp.eq.f32.partialorder %v4386_v47, 8.507059e+37 }
 0x369   :  { %v7372_v36 = vpop.eup %7371 }
 0x36a   :  { %v4378_v39 = vmul.f32 %v7372_v36, %v4376_v37  ;;  %vm4383_vm0 = vweird.f32 %v7372_v36 }
 0x36b   :  { %v4502_v57 = vpop.f32.mrf.mxu2  ;;  %vm4384_vm2 = vmor %vm4382_vm1, %vm4383_vm0 }
 0x36c   :  { %v4379_v43 = vsub.f32 1.0, %v4378_v39  ;;  %v4503_v54 = vadd.f32 %v7367_v53, %v4502_v57 }
 0x36e   :  { %v4380_v49 = vmul.f32 %v7372_v36, %v4379_v43 }
 0x370   :  { %v4381_v48 = vadd.f32 %v7372_v36, %v4380_v49 }
 0x372   :  { %v4385_v50 = vsel %vm4384_vm2, %v7372_v36, %v4381_v48 }
 0x373   :  { %v4504_v52 = vpop.f32.mrf.mxu2  ;;  %v4390_v24 = vsel %vm4387_vm3, %v4389_v19, %v4385_v50 }
 0x374   :  { %4568 = vst [vmem:[#allocation19] sm:$0xff] %v4390_v24 }
 0x375   :  { %4580 = dma.vmem_to_hbm [thread:$0]  %s4576_s29, 128, %s4578_s14, [#allocation4]  }
 0x38b   :  { %v4515_v55 = vpop.f32.mrf.mxu3 }
 0x38c   :  { %v4516_v25 = vadd.f32 %v4515_v55, %v4503_v54 }
 0x38e   :  { %v4519_v46 = vmax.f32 %v4516_v25, 0.0 }
 0x390   :  { %v4520_v58 = vpack.c.bf16 %v4519_v46, %v4519_v46 }
 0x392   :  { %6801 = vmatmul.msk.bf16.vlgmr.msrb.gmra.mxu0 %vm4548_vm4, %v4520_v58 }
 0x393   :  { %v4517_v30 = vpop.f32.mrf.mxu3 }
 0x40f   :  { %v4561_v18 = vpop.f32.mrf.mxu0 }
 0x410   :  { %v4562_v62 = vadd.f32 %v7368_v60, %v4561_v18 }
 0x412   :  { %v4565_v29 = vmul.f32 0.01, %v4562_v62 }
 0x414   :  { %7373 = vtanh.f32 %v4565_v29 }
 0x417   :  { %v4563_v33 = vpop.f32.mrf.mxu0 }
 0x41a   :  { %v7374_v1 = vpop.eup %7373 }
 0x41b   :  { %v4567_v51 = vmul.f32 100.0, %v7374_v1 }
 0x41d   :  { %4569 = vst [vmem:[#allocation20] sm:$0xff] %v4567_v51 }
 0x41e   :  { %4591 = dma.vmem_to_hbm [thread:$0]  %s4587_s16, 128, %s4589_s1, [#allocation21]  }
 0x41f   :  { %7676 = dma.done.wait [#allocation4], 128  }
 0x420   :  { %7677 = vsyncadd [#allocation4], 4294967168 }
 0x421   :  { %7678 = dma.done.wait [#allocation21], 128  }
 0x422   :  { %7679 = vsyncadd [#allocation21], 4294967168 }
 0x423   :  { %4600 = vsyncpa [#allocation3], 1 }
 0x424   :  { %4601 = vsyncpa [#allocation6], 1 }
 0x425   :  { %4602 = vsyncpa [#allocation9], 1 }
 0x426   :  { %4603 = vsyncpa [#allocation12], 1 }
 0x427   :  { %4604 = vsyncpa [#allocation15], 1 }
 0x428   :  { %4605 = vsyncpa [#allocation18], 1 }
 0x429   :  { %4606 = vsyncpa [#allocation4], 1 }
 0x42a   :  { %4607 = vsyncpa [#allocation21], 1 }

</bundles_post_ra>
